<compile_context>
chip_gen: v5e
topology: v5e:2x2
jax: 0.10.0
libtpu: 0.0.40
codegen_flags: <defaults>
</compile_context>

<pallas_src>
import functools

import numpy as np
import jax
import jax.numpy as jnp
from jax.experimental import pallas as pl
from jax.experimental.pallas import tpu as pltpu


# ----------------------------- elementwise helpers -----------------------------

def _recip(x, approx):
    # EUP reciprocal on the fast (bf16) path; exact division on the f32-parity path.
    if approx:
        return pl.reciprocal(x, approx=True)
    return 1.0 / x


def _erf(x, approx):
    # Abramowitz & Stegun 7.1.26 rational approximation, |err| <= 1.5e-7 (~f32 eps).
    # Matches PyTorch's exact (erf-based) nn.GELU; exp and (approx) reciprocal run on the EUP.
    a1, a2, a3, a4, a5 = (0.254829592, -0.284496736, 1.421413741,
                          -1.453152027, 1.061405429)
    p = 0.3275911
    sign = jnp.where(x >= 0.0, 1.0, -1.0)
    ax = jnp.abs(x)
    t = _recip(1.0 + p * ax, approx)
    poly = ((((a5 * t + a4) * t + a3) * t + a2) * t + a1) * t
    return sign * (1.0 - poly * jnp.exp(-ax * ax))


def _gelu_exact(x, approx):
    # PyTorch nn.GELU() default: 0.5 * x * (1 + erf(x / sqrt(2)))
    return 0.5 * x * (1.0 + _erf(x * np.float32(1.0 / np.sqrt(2.0)), approx))


def _layernorm(x, w, b, eps):
    # torch.var(..., unbiased=False) == mean of squared deviations; rsqrt -> EUP.
    mean = jnp.mean(x, axis=-1, keepdims=True)
    var = jnp.mean((x - mean) ** 2, axis=-1, keepdims=True)
    return (x - mean) * jax.lax.rsqrt(var + eps) * w + b


def _dot(a, b):
    return jnp.dot(a, b, preferred_element_type=jnp.float32)


def _dot_t(a, b):
    # a @ b.T without materializing a transpose: contract last dims on the MXU.
    return jax.lax.dot_general(a, b, (((1,), (1,)), ((), ())),
                               preferred_element_type=jnp.float32)


# ----------------------------------- kernel -----------------------------------

def _block_kernel(x_ref, ln1w_ref, ln1b_ref,
                  wq_ref, bq_ref, wk_ref, bk_ref, wv_ref, bv_ref,
                  wo_ref, bo_ref, ln2w_ref, ln2b_ref,
                  w1_ref, b1_ref, w2_ref, b2_ref,
                  out_ref,
                  acc_ref, res_ref, xn2_ref,
                  *, num_heads, head_size, seq_len, batch_block, eps,
                  compute_dtype, approx_recip):
    cdt = compute_dtype
    S, hd = seq_len, head_size
    j = pl.program_id(1)                       # MLP hidden-chunk axis ("arbitrary")

    # ---- attention phase: runs once per batch row-block (first hidden step) ----
    @pl.when(j == 0)
    def _attention_phase():
        x = x_ref[...]                                           # (rows, D) f32

        # LayerNorm 1
        xn1 = _layernorm(x, ln1w_ref[...], ln1b_ref[...], eps)
        xn1c = xn1.astype(cdt)

        # Full-width Q/K/V projections: single (rows,D)@(D,D) MXU matmuls.
        q = _dot(xn1c, wq_ref[...]) + bq_ref[...]
        k = _dot(xn1c, wk_ref[...]) + bk_ref[...]
        v = _dot(xn1c, wv_ref[...]) + bv_ref[...]
        q = q * np.float32(1.0 / np.sqrt(hd))    # fold 1/sqrt(head_size) into Q once

        qc = q.astype(cdt)
        kc = k.astype(cdt)
        vc = v.astype(cdt)

        # Per-(batch, head) attention.  All heads of one batch element are
        # concatenated lane-wise and written with a single lane-dense f32 store.
        for b in range(batch_block):
            r0 = b * S
            heads = []
            for h in range(num_heads):
                c0 = h * hd
                qh = qc[r0:r0 + S, c0:c0 + hd]
                kh = kc[r0:r0 + S, c0:c0 + hd]
                vh = vc[r0:r0 + S, c0:c0 + hd]
                sc = _dot_t(qh, kh)                              # (S, S) f32
                sc = sc - jnp.max(sc, axis=-1, keepdims=True)    # stable softmax
                pexp = jnp.exp(sc)
                pexp = pexp * _recip(jnp.sum(pexp, axis=-1, keepdims=True),
                                     approx_recip)
                heads.append(_dot(pexp.astype(cdt), vh))         # (S, hd) f32
            acc_ref[r0:r0 + S, :] = jnp.concatenate(heads, axis=-1)

        # Output projection over merged heads (contraction K=D) + residual.
        attn = _dot(acc_ref[...].astype(cdt), wo_ref[...]) + bo_ref[...]
        res = x + attn
        res_ref[...] = res
        # LayerNorm 2 result cached (in compute dtype) for the MLP hidden chunks.
        xn2_ref[...] = _layernorm(res, ln2w_ref[...], ln2b_ref[...], eps).astype(cdt)
        # Repurpose the merged-heads scratch as the FFN f32 accumulator.
        acc_ref[...] = jnp.zeros_like(acc_ref)

    # ---- MLP hidden-chunk step (every j): Linear -> GELU -> Linear(partial) ----
    hdn = _dot(xn2_ref[...], w1_ref[...]) + b1_ref[...]          # (rows, hk) f32
    hdn = _gelu_exact(hdn, approx_recip)
    acc_ref[...] += _dot(hdn.astype(cdt), w2_ref[...])           # (rows, D) f32

    # dropout p=0.0 -> identity
    @pl.when(j == pl.num_programs(1) - 1)
    def _finalize():
        out_ref[...] = (acc_ref[...] + b2_ref[...] + res_ref[...]).astype(out_ref.dtype)


# --------------------------------- host wrapper ---------------------------------

def _tpu_vmem_limit_bytes():
    """Generation-aware VMEM budget (leave headroom below physical)."""
    default = 32 * 1024 * 1024
    try:
        info = pltpu.get_tpu_info()
        cap = int(getattr(info, "vmem_capacity_bytes", 0) or 0)
        if cap >= 96 * 1024 * 1024:          # v5e / v6e: 128 MiB physical
            return 100 * 1024 * 1024
        if cap >= 48 * 1024 * 1024:          # v7x: 64 MiB physical
            return (cap // 8) * 7            # ~56 MiB
    except Exception:
        pass
    return default


def _tensorcores_per_chip():
    try:
        kind = jax.devices()[0].device_kind.lower()
        if "v7" in kind:                     # v7x: 2 TensorCores per chip
            return 2
    except Exception:
        pass
    return 1                                 # v5e / v6e: 1 TensorCore


def _pick_batch_block(batch, seq_len, *, min_steps=1, target_rows=1024):
    """Largest divisor of `batch` keeping rows <= target_rows, rows % 8 == 0 and
    at least `min_steps` grid steps (min_steps=2 only pays off on v7x's 2 TCs)."""
    best = 1
    for bt in range(1, batch + 1):
        if batch % bt:
            continue
        if batch // bt < min_steps:
            continue
        rows = bt * seq_len
        if rows > target_rows and bt > 1:
            continue
        if rows % 8 and bt != batch:
            continue
        best = bt
    return best


def _pick_hidden_chunk(hidden, target=512):
    """Hidden-chunk size: full hidden if small, else a multiple of 128 dividing it."""
    if hidden <= target:
        return hidden
    c = (target // 128) * 128
    while c >= 128:
        if hidden % c == 0:
            return c
        c -= 128
    return hidden


def pre_norm_attention_block(x, params, *, num_heads, eps=1e-5,
                             compute_dtype=jnp.bfloat16,
                             batch_block=None, hidden_chunk=None):
    """Pallas forward for PreNormAttentionBlock.  x: (B, S, D) float32."""
    B, S, D = x.shape
    assert D % num_heads == 0, "embed_dim must be divisible by num_heads"
    hd = D // num_heads
    hidden = params["W1"].shape[1]
    cdt = compute_dtype
    f32 = jnp.float32

    min_steps = 2 if _tensorcores_per_chip() >= 2 else 1
    bt = batch_block if batch_block is not None else _pick_batch_block(
        B, S, min_steps=min_steps)
    assert B % bt == 0, "batch_block must divide batch"
    rows = bt * S
    if rows % 8 and rows != B * S:
        # TODO(synk): pad S to a multiple of 8 instead of falling back to one full block.
        bt, rows = B, B * S

    hk = hidden_chunk if hidden_chunk is not None else _pick_hidden_chunk(hidden)
    assert hidden % hk == 0, "hidden_chunk must divide hidden_dim"
    n_h = hidden // hk

    # Matmul weights in the compute dtype (bf16 halves HBM->VMEM DMA + residency);
    # biases / LN params stay f32, lane-dense (1, N), applied after f32 accumulation.
    wq = params["W_q"].astype(cdt)
    wk = params["W_k"].astype(cdt)
    wv = params["W_v"].astype(cdt)
    wo = params["W_o"].astype(cdt)
    w1 = params["W1"].astype(cdt)
    w2 = params["W2"].astype(cdt)
    bq = params["B_q"].reshape(1, D).astype(f32)
    bk = params["B_k"].reshape(1, D).astype(f32)
    bv = params["B_v"].reshape(1, D).astype(f32)
    bo = params["B_o"].reshape(1, D).astype(f32)
    b1 = params["b1"].reshape(1, hidden).astype(f32)
    b2 = params["b2"].reshape(1, D).astype(f32)
    ln1w = params["ln1_w"].reshape(1, D).astype(f32)
    ln1b = params["ln1_b"].reshape(1, D).astype(f32)
    ln2w = params["ln2_w"].reshape(1, D).astype(f32)
    ln2b = params["ln2_b"].reshape(1, D).astype(f32)

    # Flatten (B, S, D) -> (B*S, D): D stays on the lane axis.
    x2 = x.reshape(B * S, D).astype(f32)

    args = (x2, ln1w, ln1b, wq, bq, wk, bk, wv, bv, wo, bo,
            ln2w, ln2b, w1, b1, w2, b2)

    kernel = functools.partial(
        _block_kernel, num_heads=num_heads, head_size=hd, seq_len=S,
        batch_block=bt, eps=eps, compute_dtype=cdt,
        approx_recip=(cdt != jnp.float32))

    def call(single_buffer_weights):
        def const_spec(shape):
            kw = dict(pipeline_mode=pl.Buffered(1)) if single_buffer_weights else {}
            return pl.BlockSpec(shape, lambda i, j: (0, 0), **kw)

        def hchunk_spec(shape, idx):
            # Streams over j when n_h > 1 (keep double-buffering to hide the DMA);
            # grid-invariant (single-buffer) when the hidden dim fits one chunk.
            kw = (dict(pipeline_mode=pl.Buffered(1))
                  if (single_buffer_weights and n_h == 1) else {})
            return pl.BlockSpec(shape, idx, **kw)

        in_specs = [pl.BlockSpec((rows, D), lambda i, j: (i, 0))]
        for a in (ln1w, ln1b, wq, bq, wk, bk, wv, bv, wo, bo, ln2w, ln2b):
            in_specs.append(const_spec(a.shape))
        in_specs += [hchunk_spec((D, hk), lambda i, j: (0, j)),   # W1 hidden chunk
                     hchunk_spec((1, hk), lambda i, j: (0, j)),   # b1 hidden chunk
                     hchunk_spec((hk, D), lambda i, j: (j, 0)),   # W2 hidden chunk
                     const_spec(b2.shape)]

        return pl.pallas_call(
            kernel,
            out_shape=jax.ShapeDtypeStruct((B * S, D), f32),
            grid=(B // bt, n_h),
            in_specs=in_specs,
            out_specs=pl.BlockSpec((rows, D), lambda i, j: (i, 0)),
            scratch_shapes=[pltpu.VMEM((rows, D), f32),   # merged heads, then FFN accumulator
                            pltpu.VMEM((rows, D), f32),   # attention residual
                            pltpu.VMEM((rows, D), cdt)],  # LayerNorm-2 output (MLP input)
            compiler_params=pltpu.CompilerParams(
                dimension_semantics=("parallel", "arbitrary"),
                vmem_limit_bytes=_tpu_vmem_limit_bytes()),
        )(*args)

    try:
        out2 = call(True)
    except Exception:
        # Conservative fallback if this jax/libtpu build rejects pipeline_mode=Buffered(1);
        # semantics identical, weights just get default double-buffering.
        out2 = call(False)

    return out2.reshape(B, S, D)


# ------------------------------- pure-JAX reference -------------------------------

def reference(x, params, num_heads, eps=1e-5):
    """Pure-JAX replica of the PyTorch forward (mask=None, dropout=0)."""
    def ln(v, w, b):
        m = jnp.mean(v, axis=-1, keepdims=True)
        var = jnp.mean((v - m) ** 2, axis=-1, keepdims=True)
        return (v - m) / jnp.sqrt(var + eps) * w + b

    B, S, D = x.shape
    hd = D // num_heads
    xn1 = ln(x, params["ln1_w"], params["ln1_b"])
    Q = xn1 @ params["W_q"] + params["B_q"]
    K = xn1 @ params["W_k"] + params["B_k"]
    V = xn1 @ params["W_v"] + params["B_v"]

    def split(t):
        return t.reshape(B, S, num_heads, hd).transpose(0, 2, 1, 3)

    Qh, Kh, Vh = split(Q), split(K), split(V)
    sc = jnp.einsum("bhqd,bhkd->bhqk", Qh, Kh) / np.sqrt(hd)
    p = jax.nn.softmax(sc, axis=-1)
    o = jnp.einsum("bhqk,bhkd->bhqd", p, Vh)
    merged = o.transpose(0, 2, 1, 3).reshape(B, S, D)
    attn = merged @ params["W_o"] + params["B_o"]
    result = x + attn
    xn2 = ln(result, params["ln2_w"], params["ln2_b"])
    h = jax.nn.gelu(xn2 @ params["W1"] + params["b1"], approximate=False)
    ffn = h @ params["W2"] + params["b2"]
    return ffn + result


if __name__ == "__main__":
    # Small shapes consistent with the module.
    B, S = 2, 8
    embed_dim, hidden_dim, num_heads = 32, 64, 4

    key = jax.random.PRNGKey(0)
    keys = jax.random.split(key, 9)

    params = {
        "ln1_w": jnp.ones((embed_dim,), jnp.float32),
        "ln1_b": jnp.zeros((embed_dim,), jnp.float32),
        "ln2_w": jnp.ones((embed_dim,), jnp.float32),
        "ln2_b": jnp.zeros((embed_dim,), jnp.float32),
        "W_q": 0.05 * jax.random.normal(keys[0], (embed_dim, embed_dim), jnp.float32),
        "W_k": 0.05 * jax.random.normal(keys[1], (embed_dim, embed_dim), jnp.float32),
        "W_v": 0.05 * jax.random.normal(keys[2], (embed_dim, embed_dim), jnp.float32),
        "W_o": 0.05 * jax.random.normal(keys[3], (embed_dim, embed_dim), jnp.float32),
        "B_q": jnp.zeros((embed_dim,), jnp.float32),
        "B_k": jnp.zeros((embed_dim,), jnp.float32),
        "B_v": jnp.zeros((embed_dim,), jnp.float32),
        "B_o": jnp.zeros((embed_dim,), jnp.float32),
        "W1": 0.05 * jax.random.normal(keys[4], (embed_dim, hidden_dim), jnp.float32),
        "b1": 0.01 * jax.random.normal(keys[5], (hidden_dim,), jnp.float32),
        "W2": 0.05 * jax.random.normal(keys[6], (hidden_dim, embed_dim), jnp.float32),
        "b2": 0.01 * jax.random.normal(keys[7], (embed_dim,), jnp.float32),
    }

    x = jax.random.normal(keys[8], (B, S, embed_dim), jnp.float32)

    ref = reference(x, params, num_heads)

    # bf16 MXU path (default compute dtype, approx reciprocal on EUP)
    out_bf16 = jax.block_until_ready(
        pre_norm_attention_block(x, params, num_heads=num_heads))
    assert out_bf16.shape == (B, S, embed_dim)
    np.testing.assert_allclose(np.asarray(out_bf16), np.asarray(ref),
                               rtol=2e-2, atol=2e-2)

    # f32 path (exact reciprocal; tight check against the PyTorch-equivalent reference)
    out_f32 = jax.block_until_ready(
        pre_norm_attention_block(x, params, num_heads=num_heads,
                                 compute_dtype=jnp.float32))
    np.testing.assert_allclose(np.asarray(out_f32), np.asarray(ref),
                               rtol=2e-3, atol=2e-3)

    # also exercise an explicit multi-step "parallel" grid (v7x-style tiling)
    out_2step = jax.block_until_ready(
        pre_norm_attention_block(x, params, num_heads=num_heads, batch_block=1))
    np.testing.assert_allclose(np.asarray(out_2step), np.asarray(ref),
                               rtol=2e-2, atol=2e-2)

    print("KERNEL_OK")
</pallas_src>

<mosaic_0001>
module attributes {stable_mosaic.version = 11 : i64} {
  func.func @_block_kernel(%arg0: i32, %arg1: i32, %arg2: memref<16x32xf32, #tpu.memory_space<vmem>>, %arg3: memref<1x32xf32, #tpu.memory_space<vmem>>, %arg4: memref<1x32xf32, #tpu.memory_space<vmem>>, %arg5: memref<32x32xbf16, #tpu.memory_space<vmem>>, %arg6: memref<1x32xf32, #tpu.memory_space<vmem>>, %arg7: memref<32x32xbf16, #tpu.memory_space<vmem>>, %arg8: memref<1x32xf32, #tpu.memory_space<vmem>>, %arg9: memref<32x32xbf16, #tpu.memory_space<vmem>>, %arg10: memref<1x32xf32, #tpu.memory_space<vmem>>, %arg11: memref<32x32xbf16, #tpu.memory_space<vmem>>, %arg12: memref<1x32xf32, #tpu.memory_space<vmem>>, %arg13: memref<1x32xf32, #tpu.memory_space<vmem>>, %arg14: memref<1x32xf32, #tpu.memory_space<vmem>>, %arg15: memref<32x64xbf16, #tpu.memory_space<vmem>>, %arg16: memref<1x64xf32, #tpu.memory_space<vmem>>, %arg17: memref<64x32xbf16, #tpu.memory_space<vmem>>, %arg18: memref<1x32xf32, #tpu.memory_space<vmem>>, %arg19: memref<16x32xf32, #tpu.memory_space<vmem>>, %arg20: memref<16x32xf32, #tpu.memory_space<vmem>>, %arg21: memref<16x32xf32, #tpu.memory_space<vmem>>, %arg22: memref<16x32xbf16, #tpu.memory_space<vmem>>) attributes {dimension_semantics = [#tpu.dimension_semantics<parallel>, #tpu.dimension_semantics<arbitrary>], iteration_bounds = array<i64: 1, 1>, scalar_prefetch = 0 : i64, scratch_operands = 3 : i64, tpu.core_type = #tpu.core_type<tc>, window_params = [{transform_indices = @transform_0, window_bounds = array<i64: 16, 32>}, {pipeline_mode = #tpu.pipeline_mode<synchronous>, transform_indices = @transform_1, window_bounds = array<i64: 1, 32>}, {pipeline_mode = #tpu.pipeline_mode<synchronous>, transform_indices = @transform_2, window_bounds = array<i64: 1, 32>}, {pipeline_mode = #tpu.pipeline_mode<synchronous>, transform_indices = @transform_3, window_bounds = array<i64: 32, 32>}, {pipeline_mode = #tpu.pipeline_mode<synchronous>, transform_indices = @transform_4, window_bounds = array<i64: 1, 32>}, {pipeline_mode = #tpu.pipeline_mode<synchronous>, transform_indices = @transform_5, window_bounds = array<i64: 32, 32>}, {pipeline_mode = #tpu.pipeline_mode<synchronous>, transform_indices = @transform_6, window_bounds = array<i64: 1, 32>}, {pipeline_mode = #tpu.pipeline_mode<synchronous>, transform_indices = @transform_7, window_bounds = array<i64: 32, 32>}, {pipeline_mode = #tpu.pipeline_mode<synchronous>, transform_indices = @transform_8, window_bounds = array<i64: 1, 32>}, {pipeline_mode = #tpu.pipeline_mode<synchronous>, transform_indices = @transform_9, window_bounds = array<i64: 32, 32>}, {pipeline_mode = #tpu.pipeline_mode<synchronous>, transform_indices = @transform_10, window_bounds = array<i64: 1, 32>}, {pipeline_mode = #tpu.pipeline_mode<synchronous>, transform_indices = @transform_11, window_bounds = array<i64: 1, 32>}, {pipeline_mode = #tpu.pipeline_mode<synchronous>, transform_indices = @transform_12, window_bounds = array<i64: 1, 32>}, {pipeline_mode = #tpu.pipeline_mode<synchronous>, transform_indices = @transform_13, window_bounds = array<i64: 32, 64>}, {pipeline_mode = #tpu.pipeline_mode<synchronous>, transform_indices = @transform_14, window_bounds = array<i64: 1, 64>}, {pipeline_mode = #tpu.pipeline_mode<synchronous>, transform_indices = @transform_15, window_bounds = array<i64: 64, 32>}, {pipeline_mode = #tpu.pipeline_mode<synchronous>, transform_indices = @transform_16, window_bounds = array<i64: 1, 32>}, {transform_indices = @transform_17, window_bounds = array<i64: 16, 32>}]} {
    %c0_i32 = arith.constant 0 : i32
    %0 = arith.cmpi eq, %arg1, %c0_i32 : i32
    %1 = arith.extui %0 : i1 to i32
    %c0_i32_0 = arith.constant 0 : i32
    %2 = arith.cmpi ne, %1, %c0_i32_0 : i32
    scf.if %2 {
      %c0_30 = arith.constant 0 : index
      %c0_31 = arith.constant 0 : index
      %58 = vector.load %arg2[%c0_30, %c0_31] : memref<16x32xf32, #tpu.memory_space<vmem>>, vector<16x32xf32>
      %c0_32 = arith.constant 0 : index
      %c0_33 = arith.constant 0 : index
      %59 = vector.load %arg3[%c0_32, %c0_33] : memref<1x32xf32, #tpu.memory_space<vmem>>, vector<1x32xf32>
      %c0_34 = arith.constant 0 : index
      %c0_35 = arith.constant 0 : index
      %60 = vector.load %arg4[%c0_34, %c0_35] : memref<1x32xf32, #tpu.memory_space<vmem>>, vector<1x32xf32>
      %cst_36 = arith.constant dense<0.000000e+00> : vector<16xf32>
      %61 = vector.multi_reduction <add>, %58, %cst_36 [1] : vector<16x32xf32> to vector<16xf32>
      %62 = vector.shape_cast %61 : vector<16xf32> to vector<16x1xf32>
      %cst_37 = arith.constant 3.200000e+01 : f32
      %63 = vector.broadcast %cst_37 : f32 to vector<16x1xf32>
      %64 = arith.divf %62, %63 : vector<16x1xf32>
      %65 = vector.broadcast %64 : vector<16x1xf32> to vector<16x32xf32>
      %66 = arith.subf %58, %65 : vector<16x32xf32>
      %67 = arith.mulf %66, %66 : vector<16x32xf32>
      %cst_38 = arith.constant dense<0.000000e+00> : vector<16xf32>
      %68 = vector.multi_reduction <add>, %67, %cst_38 [1] : vector<16x32xf32> to vector<16xf32>
      %69 = vector.shape_cast %68 : vector<16xf32> to vector<16x1xf32>
      %cst_39 = arith.constant 3.200000e+01 : f32
      %70 = vector.broadcast %cst_39 : f32 to vector<16x1xf32>
      %71 = arith.divf %69, %70 : vector<16x1xf32>
      %72 = vector.broadcast %64 : vector<16x1xf32> to vector<16x32xf32>
      %73 = arith.subf %58, %72 : vector<16x32xf32>
      %cst_40 = arith.constant 9.99999974E-6 : f32
      %74 = vector.broadcast %cst_40 : f32 to vector<16x1xf32>
      %75 = arith.addf %71, %74 : vector<16x1xf32>
      %76 = math.rsqrt %75 : vector<16x1xf32>
      %77 = vector.broadcast %76 : vector<16x1xf32> to vector<16x32xf32>
      %78 = arith.mulf %73, %77 : vector<16x32xf32>
      %79 = vector.broadcast %59 : vector<1x32xf32> to vector<16x32xf32>
      %80 = arith.mulf %78, %79 : vector<16x32xf32>
      %81 = vector.broadcast %60 : vector<1x32xf32> to vector<16x32xf32>
      %82 = arith.addf %80, %81 : vector<16x32xf32>
      %83 = arith.truncf %82 : vector<16x32xf32> to vector<16x32xbf16>
      %c0_41 = arith.constant 0 : index
      %c0_42 = arith.constant 0 : index
      %84 = vector.load %arg5[%c0_41, %c0_42] : memref<32x32xbf16, #tpu.memory_space<vmem>>, vector<32x32xbf16>
      %cst_43 = arith.constant dense<0.000000e+00> : vector<16x32xf32>
      %85 = tpu.matmul %83, %84, %cst_43 {dimension_numbers = #tpu.dot_dimension_numbers<[1], [0], [0], [1], [0, 0, 1, 1], [], []>} : vector<16x32xbf16>, vector<32x32xbf16>, vector<16x32xf32> -> vector<16x32xf32>
      %c0_44 = arith.constant 0 : index
      %c0_45 = arith.constant 0 : index
      %86 = vector.load %arg6[%c0_44, %c0_45] : memref<1x32xf32, #tpu.memory_space<vmem>>, vector<1x32xf32>
      %87 = vector.broadcast %86 : vector<1x32xf32> to vector<16x32xf32>
      %88 = arith.addf %85, %87 : vector<16x32xf32>
      %c0_46 = arith.constant 0 : index
      %c0_47 = arith.constant 0 : index
      %89 = vector.load %arg7[%c0_46, %c0_47] : memref<32x32xbf16, #tpu.memory_space<vmem>>, vector<32x32xbf16>
      %cst_48 = arith.constant dense<0.000000e+00> : vector<16x32xf32>
      %90 = tpu.matmul %83, %89, %cst_48 {dimension_numbers = #tpu.dot_dimension_numbers<[1], [0], [0], [1], [0, 0, 1, 1], [], []>} : vector<16x32xbf16>, vector<32x32xbf16>, vector<16x32xf32> -> vector<16x32xf32>
      %c0_49 = arith.constant 0 : index
      %c0_50 = arith.constant 0 : index
      %91 = vector.load %arg8[%c0_49, %c0_50] : memref<1x32xf32, #tpu.memory_space<vmem>>, vector<1x32xf32>
      %92 = vector.broadcast %91 : vector<1x32xf32> to vector<16x32xf32>
      %93 = arith.addf %90, %92 : vector<16x32xf32>
      %c0_51 = arith.constant 0 : index
      %c0_52 = arith.constant 0 : index
      %94 = vector.load %arg9[%c0_51, %c0_52] : memref<32x32xbf16, #tpu.memory_space<vmem>>, vector<32x32xbf16>
      %cst_53 = arith.constant dense<0.000000e+00> : vector<16x32xf32>
      %95 = tpu.matmul %83, %94, %cst_53 {dimension_numbers = #tpu.dot_dimension_numbers<[1], [0], [0], [1], [0, 0, 1, 1], [], []>} : vector<16x32xbf16>, vector<32x32xbf16>, vector<16x32xf32> -> vector<16x32xf32>
      %c0_54 = arith.constant 0 : index
      %c0_55 = arith.constant 0 : index
      %96 = vector.load %arg10[%c0_54, %c0_55] : memref<1x32xf32, #tpu.memory_space<vmem>>, vector<1x32xf32>
      %97 = vector.broadcast %96 : vector<1x32xf32> to vector<16x32xf32>
      %98 = arith.addf %95, %97 : vector<16x32xf32>
      %cst_56 = arith.constant 0.353553385 : f32
      %99 = vector.broadcast %cst_56 : f32 to vector<16x32xf32>
      %100 = arith.mulf %88, %99 : vector<16x32xf32>
      %101 = arith.truncf %100 : vector<16x32xf32> to vector<16x32xbf16>
      %102 = arith.truncf %93 : vector<16x32xf32> to vector<16x32xbf16>
      %103 = arith.truncf %98 : vector<16x32xf32> to vector<16x32xbf16>
      %104 = vector.extract_strided_slice %101 {offsets = [0, 0], sizes = [8, 8], strides = [1, 1]} : vector<16x32xbf16> to vector<8x8xbf16>
      %105 = vector.extract_strided_slice %102 {offsets = [0, 0], sizes = [8, 8], strides = [1, 1]} : vector<16x32xbf16> to vector<8x8xbf16>
      %106 = vector.extract_strided_slice %103 {offsets = [0, 0], sizes = [8, 8], strides = [1, 1]} : vector<16x32xbf16> to vector<8x8xbf16>
      %cst_57 = arith.constant dense<0.000000e+00> : vector<8x8xf32>
      %107 = tpu.matmul %104, %105, %cst_57 {dimension_numbers = #tpu.dot_dimension_numbers<[1], [1], [0], [0], [0, 0, 1, 0], [], []>} : vector<8x8xbf16>, vector<8x8xbf16>, vector<8x8xf32> -> vector<8x8xf32>
      %cst_58 = arith.constant dense<0xFF800000> : vector<8xf32>
      %108 = vector.multi_reduction <maximumf>, %107, %cst_58 [1] : vector<8x8xf32> to vector<8xf32>
      %109 = vector.shape_cast %108 : vector<8xf32> to vector<8x1xf32>
      %110 = vector.broadcast %109 : vector<8x1xf32> to vector<8x8xf32>
      %111 = arith.subf %107, %110 : vector<8x8xf32>
      %112 = math.exp %111 : vector<8x8xf32>
      %cst_59 = arith.constant dense<0.000000e+00> : vector<8xf32>
      %113 = vector.multi_reduction <add>, %112, %cst_59 [1] : vector<8x8xf32> to vector<8xf32>
      %114 = vector.shape_cast %113 : vector<8xf32> to vector<8x1xf32>
      %115 = tpu.reciprocal %114 {approx = true} : vector<8x1xf32> -> vector<8x1xf32>
      %116 = vector.broadcast %115 : vector<8x1xf32> to vector<8x8xf32>
      %117 = arith.mulf %112, %116 : vector<8x8xf32>
      %118 = arith.truncf %117 : vector<8x8xf32> to vector<8x8xbf16>
      %cst_60 = arith.constant dense<0.000000e+00> : vector<8x8xf32>
      %119 = tpu.matmul %118, %106, %cst_60 {dimension_numbers = #tpu.dot_dimension_numbers<[1], [0], [0], [1], [0, 0, 1, 1], [], []>} : vector<8x8xbf16>, vector<8x8xbf16>, vector<8x8xf32> -> vector<8x8xf32>
      %120 = vector.extract_strided_slice %101 {offsets = [0, 8], sizes = [8, 8], strides = [1, 1]} : vector<16x32xbf16> to vector<8x8xbf16>
      %121 = vector.extract_strided_slice %102 {offsets = [0, 8], sizes = [8, 8], strides = [1, 1]} : vector<16x32xbf16> to vector<8x8xbf16>
      %122 = vector.extract_strided_slice %103 {offsets = [0, 8], sizes = [8, 8], strides = [1, 1]} : vector<16x32xbf16> to vector<8x8xbf16>
      %cst_61 = arith.constant dense<0.000000e+00> : vector<8x8xf32>
      %123 = tpu.matmul %120, %121, %cst_61 {dimension_numbers = #tpu.dot_dimension_numbers<[1], [1], [0], [0], [0, 0, 1, 0], [], []>} : vector<8x8xbf16>, vector<8x8xbf16>, vector<8x8xf32> -> vector<8x8xf32>
      %cst_62 = arith.constant dense<0xFF800000> : vector<8xf32>
      %124 = vector.multi_reduction <maximumf>, %123, %cst_62 [1] : vector<8x8xf32> to vector<8xf32>
      %125 = vector.shape_cast %124 : vector<8xf32> to vector<8x1xf32>
      %126 = vector.broadcast %125 : vector<8x1xf32> to vector<8x8xf32>
      %127 = arith.subf %123, %126 : vector<8x8xf32>
      %128 = math.exp %127 : vector<8x8xf32>
      %cst_63 = arith.constant dense<0.000000e+00> : vector<8xf32>
      %129 = vector.multi_reduction <add>, %128, %cst_63 [1] : vector<8x8xf32> to vector<8xf32>
      %130 = vector.shape_cast %129 : vector<8xf32> to vector<8x1xf32>
      %131 = tpu.reciprocal %130 {approx = true} : vector<8x1xf32> -> vector<8x1xf32>
      %132 = vector.broadcast %131 : vector<8x1xf32> to vector<8x8xf32>
      %133 = arith.mulf %128, %132 : vector<8x8xf32>
      %134 = arith.truncf %133 : vector<8x8xf32> to vector<8x8xbf16>
      %cst_64 = arith.constant dense<0.000000e+00> : vector<8x8xf32>
      %135 = tpu.matmul %134, %122, %cst_64 {dimension_numbers = #tpu.dot_dimension_numbers<[1], [0], [0], [1], [0, 0, 1, 1], [], []>} : vector<8x8xbf16>, vector<8x8xbf16>, vector<8x8xf32> -> vector<8x8xf32>
      %136 = vector.extract_strided_slice %101 {offsets = [0, 16], sizes = [8, 8], strides = [1, 1]} : vector<16x32xbf16> to vector<8x8xbf16>
      %137 = vector.extract_strided_slice %102 {offsets = [0, 16], sizes = [8, 8], strides = [1, 1]} : vector<16x32xbf16> to vector<8x8xbf16>
      %138 = vector.extract_strided_slice %103 {offsets = [0, 16], sizes = [8, 8], strides = [1, 1]} : vector<16x32xbf16> to vector<8x8xbf16>
      %cst_65 = arith.constant dense<0.000000e+00> : vector<8x8xf32>
      %139 = tpu.matmul %136, %137, %cst_65 {dimension_numbers = #tpu.dot_dimension_numbers<[1], [1], [0], [0], [0, 0, 1, 0], [], []>} : vector<8x8xbf16>, vector<8x8xbf16>, vector<8x8xf32> -> vector<8x8xf32>
      %cst_66 = arith.constant dense<0xFF800000> : vector<8xf32>
      %140 = vector.multi_reduction <maximumf>, %139, %cst_66 [1] : vector<8x8xf32> to vector<8xf32>
      %141 = vector.shape_cast %140 : vector<8xf32> to vector<8x1xf32>
      %142 = vector.broadcast %141 : vector<8x1xf32> to vector<8x8xf32>
      %143 = arith.subf %139, %142 : vector<8x8xf32>
      %144 = math.exp %143 : vector<8x8xf32>
      %cst_67 = arith.constant dense<0.000000e+00> : vector<8xf32>
      %145 = vector.multi_reduction <add>, %144, %cst_67 [1] : vector<8x8xf32> to vector<8xf32>
      %146 = vector.shape_cast %145 : vector<8xf32> to vector<8x1xf32>
      %147 = tpu.reciprocal %146 {approx = true} : vector<8x1xf32> -> vector<8x1xf32>
      %148 = vector.broadcast %147 : vector<8x1xf32> to vector<8x8xf32>
      %149 = arith.mulf %144, %148 : vector<8x8xf32>
      %150 = arith.truncf %149 : vector<8x8xf32> to vector<8x8xbf16>
      %cst_68 = arith.constant dense<0.000000e+00> : vector<8x8xf32>
      %151 = tpu.matmul %150, %138, %cst_68 {dimension_numbers = #tpu.dot_dimension_numbers<[1], [0], [0], [1], [0, 0, 1, 1], [], []>} : vector<8x8xbf16>, vector<8x8xbf16>, vector<8x8xf32> -> vector<8x8xf32>
      %152 = vector.extract_strided_slice %101 {offsets = [0, 24], sizes = [8, 8], strides = [1, 1]} : vector<16x32xbf16> to vector<8x8xbf16>
      %153 = vector.extract_strided_slice %102 {offsets = [0, 24], sizes = [8, 8], strides = [1, 1]} : vector<16x32xbf16> to vector<8x8xbf16>
      %154 = vector.extract_strided_slice %103 {offsets = [0, 24], sizes = [8, 8], strides = [1, 1]} : vector<16x32xbf16> to vector<8x8xbf16>
      %cst_69 = arith.constant dense<0.000000e+00> : vector<8x8xf32>
      %155 = tpu.matmul %152, %153, %cst_69 {dimension_numbers = #tpu.dot_dimension_numbers<[1], [1], [0], [0], [0, 0, 1, 0], [], []>} : vector<8x8xbf16>, vector<8x8xbf16>, vector<8x8xf32> -> vector<8x8xf32>
      %cst_70 = arith.constant dense<0xFF800000> : vector<8xf32>
      %156 = vector.multi_reduction <maximumf>, %155, %cst_70 [1] : vector<8x8xf32> to vector<8xf32>
      %157 = vector.shape_cast %156 : vector<8xf32> to vector<8x1xf32>
      %158 = vector.broadcast %157 : vector<8x1xf32> to vector<8x8xf32>
      %159 = arith.subf %155, %158 : vector<8x8xf32>
      %160 = math.exp %159 : vector<8x8xf32>
      %cst_71 = arith.constant dense<0.000000e+00> : vector<8xf32>
      %161 = vector.multi_reduction <add>, %160, %cst_71 [1] : vector<8x8xf32> to vector<8xf32>
      %162 = vector.shape_cast %161 : vector<8xf32> to vector<8x1xf32>
      %163 = tpu.reciprocal %162 {approx = true} : vector<8x1xf32> -> vector<8x1xf32>
      %164 = vector.broadcast %163 : vector<8x1xf32> to vector<8x8xf32>
      %165 = arith.mulf %160, %164 : vector<8x8xf32>
      %166 = arith.truncf %165 : vector<8x8xf32> to vector<8x8xbf16>
      %cst_72 = arith.constant dense<0.000000e+00> : vector<8x8xf32>
      %167 = tpu.matmul %166, %154, %cst_72 {dimension_numbers = #tpu.dot_dimension_numbers<[1], [0], [0], [1], [0, 0, 1, 1], [], []>} : vector<8x8xbf16>, vector<8x8xbf16>, vector<8x8xf32> -> vector<8x8xf32>
      %168 = tpu.concatenate %119, %135, %151, %167 in 1 : vector<8x8xf32>, vector<8x8xf32>, vector<8x8xf32>, vector<8x8xf32> -> vector<8x32xf32>
      %c0_73 = arith.constant 0 : index
      %c0_74 = arith.constant 0 : index
      %169 = vector.load %arg20[%c0_73, %c0_74] : memref<16x32xf32, #tpu.memory_space<vmem>>, vector<8x32xf32>
      tpu.vector_store %arg20[%c0_73, %c0_74], %168 {strides = array<i32>} : memref<16x32xf32, #tpu.memory_space<vmem>>, vector<8x32xf32>,
      %170 = vector.extract_strided_slice %101 {offsets = [8, 0], sizes = [8, 8], strides = [1, 1]} : vector<16x32xbf16> to vector<8x8xbf16>
      %171 = vector.extract_strided_slice %102 {offsets = [8, 0], sizes = [8, 8], strides = [1, 1]} : vector<16x32xbf16> to vector<8x8xbf16>
      %172 = vector.extract_strided_slice %103 {offsets = [8, 0], sizes = [8, 8], strides = [1, 1]} : vector<16x32xbf16> to vector<8x8xbf16>
      %cst_75 = arith.constant dense<0.000000e+00> : vector<8x8xf32>
      %173 = tpu.matmul %170, %171, %cst_75 {dimension_numbers = #tpu.dot_dimension_numbers<[1], [1], [0], [0], [0, 0, 1, 0], [], []>} : vector<8x8xbf16>, vector<8x8xbf16>, vector<8x8xf32> -> vector<8x8xf32>
      %cst_76 = arith.constant dense<0xFF800000> : vector<8xf32>
      %174 = vector.multi_reduction <maximumf>, %173, %cst_76 [1] : vector<8x8xf32> to vector<8xf32>
      %175 = vector.shape_cast %174 : vector<8xf32> to vector<8x1xf32>
      %176 = vector.broadcast %175 : vector<8x1xf32> to vector<8x8xf32>
      %177 = arith.subf %173, %176 : vector<8x8xf32>
      %178 = math.exp %177 : vector<8x8xf32>
      %cst_77 = arith.constant dense<0.000000e+00> : vector<8xf32>
      %179 = vector.multi_reduction <add>, %178, %cst_77 [1] : vector<8x8xf32> to vector<8xf32>
      %180 = vector.shape_cast %179 : vector<8xf32> to vector<8x1xf32>
      %181 = tpu.reciprocal %180 {approx = true} : vector<8x1xf32> -> vector<8x1xf32>
      %182 = vector.broadcast %181 : vector<8x1xf32> to vector<8x8xf32>
      %183 = arith.mulf %178, %182 : vector<8x8xf32>
      %184 = arith.truncf %183 : vector<8x8xf32> to vector<8x8xbf16>
      %cst_78 = arith.constant dense<0.000000e+00> : vector<8x8xf32>
      %185 = tpu.matmul %184, %172, %cst_78 {dimension_numbers = #tpu.dot_dimension_numbers<[1], [0], [0], [1], [0, 0, 1, 1], [], []>} : vector<8x8xbf16>, vector<8x8xbf16>, vector<8x8xf32> -> vector<8x8xf32>
      %186 = vector.extract_strided_slice %101 {offsets = [8, 8], sizes = [8, 8], strides = [1, 1]} : vector<16x32xbf16> to vector<8x8xbf16>
      %187 = vector.extract_strided_slice %102 {offsets = [8, 8], sizes = [8, 8], strides = [1, 1]} : vector<16x32xbf16> to vector<8x8xbf16>
      %188 = vector.extract_strided_slice %103 {offsets = [8, 8], sizes = [8, 8], strides = [1, 1]} : vector<16x32xbf16> to vector<8x8xbf16>
      %cst_79 = arith.constant dense<0.000000e+00> : vector<8x8xf32>
      %189 = tpu.matmul %186, %187, %cst_79 {dimension_numbers = #tpu.dot_dimension_numbers<[1], [1], [0], [0], [0, 0, 1, 0], [], []>} : vector<8x8xbf16>, vector<8x8xbf16>, vector<8x8xf32> -> vector<8x8xf32>
      %cst_80 = arith.constant dense<0xFF800000> : vector<8xf32>
      %190 = vector.multi_reduction <maximumf>, %189, %cst_80 [1] : vector<8x8xf32> to vector<8xf32>
      %191 = vector.shape_cast %190 : vector<8xf32> to vector<8x1xf32>
      %192 = vector.broadcast %191 : vector<8x1xf32> to vector<8x8xf32>
      %193 = arith.subf %189, %192 : vector<8x8xf32>
      %194 = math.exp %193 : vector<8x8xf32>
      %cst_81 = arith.constant dense<0.000000e+00> : vector<8xf32>
      %195 = vector.multi_reduction <add>, %194, %cst_81 [1] : vector<8x8xf32> to vector<8xf32>
      %196 = vector.shape_cast %195 : vector<8xf32> to vector<8x1xf32>
      %197 = tpu.reciprocal %196 {approx = true} : vector<8x1xf32> -> vector<8x1xf32>
      %198 = vector.broadcast %197 : vector<8x1xf32> to vector<8x8xf32>
      %199 = arith.mulf %194, %198 : vector<8x8xf32>
      %200 = arith.truncf %199 : vector<8x8xf32> to vector<8x8xbf16>
      %cst_82 = arith.constant dense<0.000000e+00> : vector<8x8xf32>
      %201 = tpu.matmul %200, %188, %cst_82 {dimension_numbers = #tpu.dot_dimension_numbers<[1], [0], [0], [1], [0, 0, 1, 1], [], []>} : vector<8x8xbf16>, vector<8x8xbf16>, vector<8x8xf32> -> vector<8x8xf32>
      %202 = vector.extract_strided_slice %101 {offsets = [8, 16], sizes = [8, 8], strides = [1, 1]} : vector<16x32xbf16> to vector<8x8xbf16>
      %203 = vector.extract_strided_slice %102 {offsets = [8, 16], sizes = [8, 8], strides = [1, 1]} : vector<16x32xbf16> to vector<8x8xbf16>
      %204 = vector.extract_strided_slice %103 {offsets = [8, 16], sizes = [8, 8], strides = [1, 1]} : vector<16x32xbf16> to vector<8x8xbf16>
      %cst_83 = arith.constant dense<0.000000e+00> : vector<8x8xf32>
      %205 = tpu.matmul %202, %203, %cst_83 {dimension_numbers = #tpu.dot_dimension_numbers<[1], [1], [0], [0], [0, 0, 1, 0], [], []>} : vector<8x8xbf16>, vector<8x8xbf16>, vector<8x8xf32> -> vector<8x8xf32>
      %cst_84 = arith.constant dense<0xFF800000> : vector<8xf32>
      %206 = vector.multi_reduction <maximumf>, %205, %cst_84 [1] : vector<8x8xf32> to vector<8xf32>
      %207 = vector.shape_cast %206 : vector<8xf32> to vector<8x1xf32>
      %208 = vector.broadcast %207 : vector<8x1xf32> to vector<8x8xf32>
      %209 = arith.subf %205, %208 : vector<8x8xf32>
      %210 = math.exp %209 : vector<8x8xf32>
      %cst_85 = arith.constant dense<0.000000e+00> : vector<8xf32>
      %211 = vector.multi_reduction <add>, %210, %cst_85 [1] : vector<8x8xf32> to vector<8xf32>
      %212 = vector.shape_cast %211 : vector<8xf32> to vector<8x1xf32>
      %213 = tpu.reciprocal %212 {approx = true} : vector<8x1xf32> -> vector<8x1xf32>
      %214 = vector.broadcast %213 : vector<8x1xf32> to vector<8x8xf32>
      %215 = arith.mulf %210, %214 : vector<8x8xf32>
      %216 = arith.truncf %215 : vector<8x8xf32> to vector<8x8xbf16>
      %cst_86 = arith.constant dense<0.000000e+00> : vector<8x8xf32>
      %217 = tpu.matmul %216, %204, %cst_86 {dimension_numbers = #tpu.dot_dimension_numbers<[1], [0], [0], [1], [0, 0, 1, 1], [], []>} : vector<8x8xbf16>, vector<8x8xbf16>, vector<8x8xf32> -> vector<8x8xf32>
      %218 = vector.extract_strided_slice %101 {offsets = [8, 24], sizes = [8, 8], strides = [1, 1]} : vector<16x32xbf16> to vector<8x8xbf16>
      %219 = vector.extract_strided_slice %102 {offsets = [8, 24], sizes = [8, 8], strides = [1, 1]} : vector<16x32xbf16> to vector<8x8xbf16>
      %220 = vector.extract_strided_slice %103 {offsets = [8, 24], sizes = [8, 8], strides = [1, 1]} : vector<16x32xbf16> to vector<8x8xbf16>
      %cst_87 = arith.constant dense<0.000000e+00> : vector<8x8xf32>
      %221 = tpu.matmul %218, %219, %cst_87 {dimension_numbers = #tpu.dot_dimension_numbers<[1], [1], [0], [0], [0, 0, 1, 0], [], []>} : vector<8x8xbf16>, vector<8x8xbf16>, vector<8x8xf32> -> vector<8x8xf32>
      %cst_88 = arith.constant dense<0xFF800000> : vector<8xf32>
      %222 = vector.multi_reduction <maximumf>, %221, %cst_88 [1] : vector<8x8xf32> to vector<8xf32>
      %223 = vector.shape_cast %222 : vector<8xf32> to vector<8x1xf32>
      %224 = vector.broadcast %223 : vector<8x1xf32> to vector<8x8xf32>
      %225 = arith.subf %221, %224 : vector<8x8xf32>
      %226 = math.exp %225 : vector<8x8xf32>
      %cst_89 = arith.constant dense<0.000000e+00> : vector<8xf32>
      %227 = vector.multi_reduction <add>, %226, %cst_89 [1] : vector<8x8xf32> to vector<8xf32>
      %228 = vector.shape_cast %227 : vector<8xf32> to vector<8x1xf32>
      %229 = tpu.reciprocal %228 {approx = true} : vector<8x1xf32> -> vector<8x1xf32>
      %230 = vector.broadcast %229 : vector<8x1xf32> to vector<8x8xf32>
      %231 = arith.mulf %226, %230 : vector<8x8xf32>
      %232 = arith.truncf %231 : vector<8x8xf32> to vector<8x8xbf16>
      %cst_90 = arith.constant dense<0.000000e+00> : vector<8x8xf32>
      %233 = tpu.matmul %232, %220, %cst_90 {dimension_numbers = #tpu.dot_dimension_numbers<[1], [0], [0], [1], [0, 0, 1, 1], [], []>} : vector<8x8xbf16>, vector<8x8xbf16>, vector<8x8xf32> -> vector<8x8xf32>
      %234 = tpu.concatenate %185, %201, %217, %233 in 1 : vector<8x8xf32>, vector<8x8xf32>, vector<8x8xf32>, vector<8x8xf32> -> vector<8x32xf32>
      %c8 = arith.constant 8 : index
      %c0_91 = arith.constant 0 : index
      %235 = vector.load %arg20[%c8, %c0_91] : memref<16x32xf32, #tpu.memory_space<vmem>>, vector<8x32xf32>
      tpu.vector_store %arg20[%c8, %c0_91], %234 {strides = array<i32>} : memref<16x32xf32, #tpu.memory_space<vmem>>, vector<8x32xf32>,
      %c0_92 = arith.constant 0 : index
      %c0_93 = arith.constant 0 : index
      %236 = vector.load %arg20[%c0_92, %c0_93] : memref<16x32xf32, #tpu.memory_space<vmem>>, vector<16x32xf32>
      %237 = arith.truncf %236 : vector<16x32xf32> to vector<16x32xbf16>
      %c0_94 = arith.constant 0 : index
      %c0_95 = arith.constant 0 : index
      %238 = vector.load %arg11[%c0_94, %c0_95] : memref<32x32xbf16, #tpu.memory_space<vmem>>, vector<32x32xbf16>
      %cst_96 = arith.constant dense<0.000000e+00> : vector<16x32xf32>
      %239 = tpu.matmul %237, %238, %cst_96 {dimension_numbers = #tpu.dot_dimension_numbers<[1], [0], [0], [1], [0, 0, 1, 1], [], []>} : vector<16x32xbf16>, vector<32x32xbf16>, vector<16x32xf32> -> vector<16x32xf32>
      %c0_97 = arith.constant 0 : index
      %c0_98 = arith.constant 0 : index
      %240 = vector.load %arg12[%c0_97, %c0_98] : memref<1x32xf32, #tpu.memory_space<vmem>>, vector<1x32xf32>
      %241 = vector.broadcast %240 : vector<1x32xf32> to vector<16x32xf32>
      %242 = arith.addf %239, %241 : vector<16x32xf32>
      %243 = arith.addf %58, %242 : vector<16x32xf32>
      %c0_99 = arith.constant 0 : index
      %c0_100 = arith.constant 0 : index
      %244 = vector.load %arg21[%c0_99, %c0_100] : memref<16x32xf32, #tpu.memory_space<vmem>>, vector<16x32xf32>
      tpu.vector_store %arg21[%c0_99, %c0_100], %243 {strides = array<i32>} : memref<16x32xf32, #tpu.memory_space<vmem>>, vector<16x32xf32>,
      %c0_101 = arith.constant 0 : index
      %c0_102 = arith.constant 0 : index
      %245 = vector.load %arg13[%c0_101, %c0_102] : memref<1x32xf32, #tpu.memory_space<vmem>>, vector<1x32xf32>
      %c0_103 = arith.constant 0 : index
      %c0_104 = arith.constant 0 : index
      %246 = vector.load %arg14[%c0_103, %c0_104] : memref<1x32xf32, #tpu.memory_space<vmem>>, vector<1x32xf32>
      %cst_105 = arith.constant dense<0.000000e+00> : vector<16xf32>
      %247 = vector.multi_reduction <add>, %243, %cst_105 [1] : vector<16x32xf32> to vector<16xf32>
      %248 = vector.shape_cast %247 : vector<16xf32> to vector<16x1xf32>
      %cst_106 = arith.constant 3.200000e+01 : f32
      %249 = vector.broadcast %cst_106 : f32 to vector<16x1xf32>
      %250 = arith.divf %248, %249 : vector<16x1xf32>
      %251 = vector.broadcast %250 : vector<16x1xf32> to vector<16x32xf32>
      %252 = arith.subf %243, %251 : vector<16x32xf32>
      %253 = arith.mulf %252, %252 : vector<16x32xf32>
      %cst_107 = arith.constant dense<0.000000e+00> : vector<16xf32>
      %254 = vector.multi_reduction <add>, %253, %cst_107 [1] : vector<16x32xf32> to vector<16xf32>
      %255 = vector.shape_cast %254 : vector<16xf32> to vector<16x1xf32>
      %cst_108 = arith.constant 3.200000e+01 : f32
      %256 = vector.broadcast %cst_108 : f32 to vector<16x1xf32>
      %257 = arith.divf %255, %256 : vector<16x1xf32>
      %258 = vector.broadcast %250 : vector<16x1xf32> to vector<16x32xf32>
      %259 = arith.subf %243, %258 : vector<16x32xf32>
      %cst_109 = arith.constant 9.99999974E-6 : f32
      %260 = vector.broadcast %cst_109 : f32 to vector<16x1xf32>
      %261 = arith.addf %257, %260 : vector<16x1xf32>
      %262 = math.rsqrt %261 : vector<16x1xf32>
      %263 = vector.broadcast %262 : vector<16x1xf32> to vector<16x32xf32>
      %264 = arith.mulf %259, %263 : vector<16x32xf32>
      %265 = vector.broadcast %245 : vector<1x32xf32> to vector<16x32xf32>
      %266 = arith.mulf %264, %265 : vector<16x32xf32>
      %267 = vector.broadcast %246 : vector<1x32xf32> to vector<16x32xf32>
      %268 = arith.addf %266, %267 : vector<16x32xf32>
      %269 = arith.truncf %268 : vector<16x32xf32> to vector<16x32xbf16>
      %c0_110 = arith.constant 0 : index
      %c0_111 = arith.constant 0 : index
      %270 = vector.load %arg22[%c0_110, %c0_111] : memref<16x32xbf16, #tpu.memory_space<vmem>>, vector<16x32xbf16>
      tpu.vector_store %arg22[%c0_110, %c0_111], %269 {strides = array<i32>} : memref<16x32xbf16, #tpu.memory_space<vmem>>, vector<16x32xbf16>,
      %cst_112 = arith.constant 0.000000e+00 : f32
      %271 = vector.broadcast %cst_112 : f32 to vector<16x32xf32>
      %c0_113 = arith.constant 0 : index
      %c0_114 = arith.constant 0 : index
      %272 = vector.load %arg20[%c0_113, %c0_114] : memref<16x32xf32, #tpu.memory_space<vmem>>, vector<16x32xf32>
      tpu.vector_store %arg20[%c0_113, %c0_114], %271 {strides = array<i32>} : memref<16x32xf32, #tpu.memory_space<vmem>>, vector<16x32xf32>,
    } else {
    }
    %c0 = arith.constant 0 : index
    %c0_1 = arith.constant 0 : index
    %3 = vector.load %arg22[%c0, %c0_1] : memref<16x32xbf16, #tpu.memory_space<vmem>>, vector<16x32xbf16>
    %c0_2 = arith.constant 0 : index
    %c0_3 = arith.constant 0 : index
    %4 = vector.load %arg15[%c0_2, %c0_3] : memref<32x64xbf16, #tpu.memory_space<vmem>>, vector<32x64xbf16>
    %cst = arith.constant dense<0.000000e+00> : vector<16x64xf32>
    %5 = tpu.matmul %3, %4, %cst {dimension_numbers = #tpu.dot_dimension_numbers<[1], [0], [0], [1], [0, 0, 1, 1], [], []>} : vector<16x32xbf16>, vector<32x64xbf16>, vector<16x64xf32> -> vector<16x64xf32>
    %c0_4 = arith.constant 0 : index
    %c0_5 = arith.constant 0 : index
    %6 = vector.load %arg16[%c0_4, %c0_5] : memref<1x64xf32, #tpu.memory_space<vmem>>, vector<1x64xf32>
    %7 = vector.broadcast %6 : vector<1x64xf32> to vector<16x64xf32>
    %8 = arith.addf %5, %7 : vector<16x64xf32>
    %cst_6 = arith.constant 5.000000e-01 : f32
    %9 = vector.broadcast %cst_6 : f32 to vector<16x64xf32>
    %10 = arith.mulf %9, %8 : vector<16x64xf32>
    %cst_7 = arith.constant 0.707106769 : f32
    %11 = vector.broadcast %cst_7 : f32 to vector<16x64xf32>
    %12 = arith.mulf %8, %11 : vector<16x64xf32>
    %cst_8 = arith.constant 0.000000e+00 : f32
    %13 = vector.broadcast %cst_8 : f32 to vector<16x64xf32>
    %14 = arith.cmpf oge, %12, %13 : vector<16x64xf32>
    %cst_9 = arith.constant 1.000000e+00 : f32
    %cst_10 = arith.constant -1.000000e+00 : f32
    %15 = vector.broadcast %cst_9 : f32 to vector<16x64xf32>
    %16 = vector.broadcast %cst_10 : f32 to vector<16x64xf32>
    %17 = arith.select %14, %15, %16 : vector<16x64xi1>, vector<16x64xf32>
    %18 = math.absf %12 : vector<16x64xf32>
    %cst_11 = arith.constant 0.327591091 : f32
    %19 = vector.broadcast %cst_11 : f32 to vector<16x64xf32>
    %20 = arith.mulf %19, %18 : vector<16x64xf32>
    %cst_12 = arith.constant 1.000000e+00 : f32
    %21 = vector.broadcast %cst_12 : f32 to vector<16x64xf32>
    %22 = arith.addf %21, %20 : vector<16x64xf32>
    %23 = tpu.reciprocal %22 {approx = true} : vector<16x64xf32> -> vector<16x64xf32>
    %cst_13 = arith.constant 1.06140542 : f32
    %24 = vector.broadcast %cst_13 : f32 to vector<16x64xf32>
    %25 = arith.mulf %24, %23 : vector<16x64xf32>
    %cst_14 = arith.constant -1.45315206 : f32
    %26 = vector.broadcast %cst_14 : f32 to vector<16x64xf32>
    %27 = arith.addf %25, %26 : vector<16x64xf32>
    %28 = arith.mulf %27, %23 : vector<16x64xf32>
    %cst_15 = arith.constant 1.42141378 : f32
    %29 = vector.broadcast %cst_15 : f32 to vector<16x64xf32>
    %30 = arith.addf %28, %29 : vector<16x64xf32>
    %31 = arith.mulf %30, %23 : vector<16x64xf32>
    %cst_16 = arith.constant -0.284496725 : f32
    %32 = vector.broadcast %cst_16 : f32 to vector<16x64xf32>
    %33 = arith.addf %31, %32 : vector<16x64xf32>
    %34 = arith.mulf %33, %23 : vector<16x64xf32>
    %cst_17 = arith.constant 0.254829586 : f32
    %35 = vector.broadcast %cst_17 : f32 to vector<16x64xf32>
    %36 = arith.addf %34, %35 : vector<16x64xf32>
    %37 = arith.mulf %36, %23 : vector<16x64xf32>
    %cst_18 = arith.constant 0.000000e+00 : f32
    %38 = vector.broadcast %cst_18 : f32 to vector<16x64xf32>
    %39 = arith.subf %38, %18 : vector<16x64xf32>
    %40 = arith.mulf %39, %18 : vector<16x64xf32>
    %41 = math.exp %40 : vector<16x64xf32>
    %42 = arith.mulf %37, %41 : vector<16x64xf32>
    %cst_19 = arith.constant 1.000000e+00 : f32
    %43 = vector.broadcast %cst_19 : f32 to vector<16x64xf32>
    %44 = arith.subf %43, %42 : vector<16x64xf32>
    %45 = arith.mulf %17, %44 : vector<16x64xf32>
    %cst_20 = arith.constant 1.000000e+00 : f32
    %46 = vector.broadcast %cst_20 : f32 to vector<16x64xf32>
    %47 = arith.addf %46, %45 : vector<16x64xf32>
    %48 = arith.mulf %10, %47 : vector<16x64xf32>
    %c0_21 = arith.constant 0 : index
    %c0_22 = arith.constant 0 : index
    %49 = vector.load %arg20[%c0_21, %c0_22] : memref<16x32xf32, #tpu.memory_space<vmem>>, vector<16x32xf32>
    %50 = arith.truncf %48 : vector<16x64xf32> to vector<16x64xbf16>
    %c0_23 = arith.constant 0 : index
    %c0_24 = arith.constant 0 : index
    %51 = vector.load %arg17[%c0_23, %c0_24] : memref<64x32xbf16, #tpu.memory_space<vmem>>, vector<64x32xbf16>
    %cst_25 = arith.constant dense<0.000000e+00> : vector<16x32xf32>
    %52 = tpu.matmul %50, %51, %cst_25 {dimension_numbers = #tpu.dot_dimension_numbers<[1], [0], [0], [1], [0, 0, 1, 1], [], []>} : vector<16x64xbf16>, vector<64x32xbf16>, vector<16x32xf32> -> vector<16x32xf32>
    %53 = arith.addf %49, %52 : vector<16x32xf32>
    %c0_26 = arith.constant 0 : index
    %c0_27 = arith.constant 0 : index
    %54 = vector.load %arg20[%c0_26, %c0_27] : memref<16x32xf32, #tpu.memory_space<vmem>>, vector<16x32xf32>
    tpu.vector_store %arg20[%c0_26, %c0_27], %53 {strides = array<i32>} : memref<16x32xf32, #tpu.memory_space<vmem>>, vector<16x32xf32>,
    %c0_i32_28 = arith.constant 0 : i32
    %55 = arith.cmpi eq, %arg1, %c0_i32_28 : i32
    %56 = arith.extui %55 : i1 to i32
    %c0_i32_29 = arith.constant 0 : i32
    %57 = arith.cmpi ne, %56, %c0_i32_29 : i32
    scf.if %57 {
      %c0_30 = arith.constant 0 : index
      %c0_31 = arith.constant 0 : index
      %58 = vector.load %arg20[%c0_30, %c0_31] : memref<16x32xf32, #tpu.memory_space<vmem>>, vector<16x32xf32>
      %c0_32 = arith.constant 0 : index
      %c0_33 = arith.constant 0 : index
      %59 = vector.load %arg18[%c0_32, %c0_33] : memref<1x32xf32, #tpu.memory_space<vmem>>, vector<1x32xf32>
      %60 = vector.broadcast %59 : vector<1x32xf32> to vector<16x32xf32>
      %61 = arith.addf %58, %60 : vector<16x32xf32>
      %c0_34 = arith.constant 0 : index
      %c0_35 = arith.constant 0 : index
      %62 = vector.load %arg21[%c0_34, %c0_35] : memref<16x32xf32, #tpu.memory_space<vmem>>, vector<16x32xf32>
      %63 = arith.addf %61, %62 : vector<16x32xf32>
      %c0_36 = arith.constant 0 : index
      %c0_37 = arith.constant 0 : index
      %64 = vector.load %arg19[%c0_36, %c0_37] : memref<16x32xf32, #tpu.memory_space<vmem>>, vector<16x32xf32>
      tpu.vector_store %arg19[%c0_36, %c0_37], %63 {strides = array<i32>} : memref<16x32xf32, #tpu.memory_space<vmem>>, vector<16x32xf32>,
    } else {
    }
    return
  }
  func.func @transform_0(%arg0: i32, %arg1: i32) -> (i32, i32) {
    %c0_i32 = arith.constant 0 : i32
    %c0_i32_0 = arith.constant 0 : i32
    return %arg0, %c0_i32 : i32, i32
  }
  func.func @transform_1(%arg0: i32, %arg1: i32) -> (i32, i32) {
    %c0_i32 = arith.constant 0 : i32
    %c0_i32_0 = arith.constant 0 : i32
    %c0_i32_1 = arith.constant 0 : i32
    return %c0_i32, %c0_i32_0 : i32, i32
  }
  func.func @transform_2(%arg0: i32, %arg1: i32) -> (i32, i32) {
    %c0_i32 = arith.constant 0 : i32
    %c0_i32_0 = arith.constant 0 : i32
    %c0_i32_1 = arith.constant 0 : i32
    return %c0_i32, %c0_i32_0 : i32, i32
  }
  func.func @transform_3(%arg0: i32, %arg1: i32) -> (i32, i32) {
    %c0_i32 = arith.constant 0 : i32
    %c0_i32_0 = arith.constant 0 : i32
    %c0_i32_1 = arith.constant 0 : i32
    return %c0_i32, %c0_i32_0 : i32, i32
  }
  func.func @transform_4(%arg0: i32, %arg1: i32) -> (i32, i32) {
    %c0_i32 = arith.constant 0 : i32
    %c0_i32_0 = arith.constant 0 : i32
    %c0_i32_1 = arith.constant 0 : i32
    return %c0_i32, %c0_i32_0 : i32, i32
  }
  func.func @transform_5(%arg0: i32, %arg1: i32) -> (i32, i32) {
    %c0_i32 = arith.constant 0 : i32
    %c0_i32_0 = arith.constant 0 : i32
    %c0_i32_1 = arith.constant 0 : i32
    return %c0_i32, %c0_i32_0 : i32, i32
  }
  func.func @transform_6(%arg0: i32, %arg1: i32) -> (i32, i32) {
    %c0_i32 = arith.constant 0 : i32
    %c0_i32_0 = arith.constant 0 : i32
    %c0_i32_1 = arith.constant 0 : i32
    return %c0_i32, %c0_i32_0 : i32, i32
  }
  func.func @transform_7(%arg0: i32, %arg1: i32) -> (i32, i32) {
    %c0_i32 = arith.constant 0 : i32
    %c0_i32_0 = arith.constant 0 : i32
    %c0_i32_1 = arith.constant 0 : i32
    return %c0_i32, %c0_i32_0 : i32, i32
  }
  func.func @transform_8(%arg0: i32, %arg1: i32) -> (i32, i32) {
    %c0_i32 = arith.constant 0 : i32
    %c0_i32_0 = arith.constant 0 : i32
    %c0_i32_1 = arith.constant 0 : i32
    return %c0_i32, %c0_i32_0 : i32, i32
  }
  func.func @transform_9(%arg0: i32, %arg1: i32) -> (i32, i32) {
    %c0_i32 = arith.constant 0 : i32
    %c0_i32_0 = arith.constant 0 : i32
    %c0_i32_1 = arith.constant 0 : i32
    return %c0_i32, %c0_i32_0 : i32, i32
  }
  func.func @transform_10(%arg0: i32, %arg1: i32) -> (i32, i32) {
    %c0_i32 = arith.constant 0 : i32
    %c0_i32_0 = arith.constant 0 : i32
    %c0_i32_1 = arith.constant 0 : i32
    return %c0_i32, %c0_i32_0 : i32, i32
  }
  func.func @transform_11(%arg0: i32, %arg1: i32) -> (i32, i32) {
    %c0_i32 = arith.constant 0 : i32
    %c0_i32_0 = arith.constant 0 : i32
    %c0_i32_1 = arith.constant 0 : i32
    return %c0_i32, %c0_i32_0 : i32, i32
  }
  func.func @transform_12(%arg0: i32, %arg1: i32) -> (i32, i32) {
    %c0_i32 = arith.constant 0 : i32
    %c0_i32_0 = arith.constant 0 : i32
    %c0_i32_1 = arith.constant 0 : i32
    return %c0_i32, %c0_i32_0 : i32, i32
  }
  func.func @transform_13(%arg0: i32, %arg1: i32) -> (i32, i32) {
    %c0_i32 = arith.constant 0 : i32
    %c0_i32_0 = arith.constant 0 : i32
    return %c0_i32, %arg1 : i32, i32
  }
  func.func @transform_14(%arg0: i32, %arg1: i32) -> (i32, i32) {
    %c0_i32 = arith.constant 0 : i32
    %c0_i32_0 = arith.constant 0 : i32
    return %c0_i32, %arg1 : i32, i32
  }
  func.func @transform_15(%arg0: i32, %arg1: i32) -> (i32, i32) {
    %c0_i32 = arith.constant 0 : i32
    %c0_i32_0 = arith.constant 0 : i32
    return %arg1, %c0_i32 : i32, i32
  }
  func.func @transform_16(%arg0: i32, %arg1: i32) -> (i32, i32) {
    %c0_i32 = arith.constant 0 : i32
    %c0_i32_0 = arith.constant 0 : i32
    %c0_i32_1 = arith.constant 0 : i32
    return %c0_i32, %c0_i32_0 : i32, i32
  }
  func.func @transform_17(%arg0: i32, %arg1: i32) -> (i32, i32) {
    %c0_i32 = arith.constant 0 : i32
    %c0_i32_0 = arith.constant 0 : i32
    return %arg0, %c0_i32 : i32, i32
  }
}

module attributes {stable_mosaic.version = 11 : i64} {
  func.func @_block_kernel(%arg0: i32, %arg1: i32, %arg2: memref<16x32xf32, #tpu.memory_space<vmem>>, %arg3: memref<1x32xf32, #tpu.memory_space<vmem>>, %arg4: memref<1x32xf32, #tpu.memory_space<vmem>>, %arg5: memref<32x32xbf16, #tpu.memory_space<vmem>>, %arg6: memref<1x32xf32, #tpu.memory_space<vmem>>, %arg7: memref<32x32xbf16, #tpu.memory_space<vmem>>, %arg8: memref<1x32xf32, #tpu.memory_space<vmem>>, %arg9: memref<32x32xbf16, #tpu.memory_space<vmem>>, %arg10: memref<1x32xf32, #tpu.memory_space<vmem>>, %arg11: memref<32x32xbf16, #tpu.memory_space<vmem>>, %arg12: memref<1x32xf32, #tpu.memory_space<vmem>>, %arg13: memref<1x32xf32, #tpu.memory_space<vmem>>, %arg14: memref<1x32xf32, #tpu.memory_space<vmem>>, %arg15: memref<32x64xbf16, #tpu.memory_space<vmem>>, %arg16: memref<1x64xf32, #tpu.memory_space<vmem>>, %arg17: memref<64x32xbf16, #tpu.memory_space<vmem>>, %arg18: memref<1x32xf32, #tpu.memory_space<vmem>>, %arg19: memref<16x32xf32, #tpu.memory_space<vmem>>, %arg20: memref<16x32xf32, #tpu.memory_space<vmem>>, %arg21: memref<16x32xf32, #tpu.memory_space<vmem>>, %arg22: memref<16x32xbf16, #tpu.memory_space<vmem>>) attributes {dimension_semantics = [#tpu.dimension_semantics<parallel>, #tpu.dimension_semantics<arbitrary>], iteration_bounds = array<i64: 1, 1>, scalar_prefetch = 0 : i64, scratch_operands = 3 : i64, tpu.core_type = #tpu.core_type<tc>, window_params = [{transform_indices = @transform_0, window_bounds = array<i64: 16, 32>}, {pipeline_mode = #tpu.pipeline_mode<synchronous>, transform_indices = @transform_1, window_bounds = array<i64: 1, 32>}, {pipeline_mode = #tpu.pipeline_mode<synchronous>, transform_indices = @transform_2, window_bounds = array<i64: 1, 32>}, {pipeline_mode = #tpu.pipeline_mode<synchronous>, transform_indices = @transform_3, window_bounds = array<i64: 32, 32>}, {pipeline_mode = #tpu.pipeline_mode<synchronous>, transform_indices = @transform_4, window_bounds = array<i64: 1, 32>}, {pipeline_mode = #tpu.pipeline_mode<synchronous>, transform_indices = @transform_5, window_bounds = array<i64: 32, 32>}, {pipeline_mode = #tpu.pipeline_mode<synchronous>, transform_indices = @transform_6, window_bounds = array<i64: 1, 32>}, {pipeline_mode = #tpu.pipeline_mode<synchronous>, transform_indices = @transform_7, window_bounds = array<i64: 32, 32>}, {pipeline_mode = #tpu.pipeline_mode<synchronous>, transform_indices = @transform_8, window_bounds = array<i64: 1, 32>}, {pipeline_mode = #tpu.pipeline_mode<synchronous>, transform_indices = @transform_9, window_bounds = array<i64: 32, 32>}, {pipeline_mode = #tpu.pipeline_mode<synchronous>, transform_indices = @transform_10, window_bounds = array<i64: 1, 32>}, {pipeline_mode = #tpu.pipeline_mode<synchronous>, transform_indices = @transform_11, window_bounds = array<i64: 1, 32>}, {pipeline_mode = #tpu.pipeline_mode<synchronous>, transform_indices = @transform_12, window_bounds = array<i64: 1, 32>}, {transform_indices = @transform_13, window_bounds = array<i64: 32, 64>}, {transform_indices = @transform_14, window_bounds = array<i64: 1, 64>}, {transform_indices = @transform_15, window_bounds = array<i64: 64, 32>}, {pipeline_mode = #tpu.pipeline_mode<synchronous>, transform_indices = @transform_16, window_bounds = array<i64: 1, 32>}, {transform_indices = @transform_17, window_bounds = array<i64: 16, 32>}]} {
    %c0_i32 = arith.constant 0 : i32
    %0 = arith.cmpi eq, %arg1, %c0_i32 : i32
    %1 = arith.extui %0 : i1 to i32
    %c0_i32_0 = arith.constant 0 : i32
    %2 = arith.cmpi ne, %1, %c0_i32_0 : i32
    scf.if %2 {
      %c0_30 = arith.constant 0 : index
      %c0_31 = arith.constant 0 : index
      %58 = vector.load %arg2[%c0_30, %c0_31] : memref<16x32xf32, #tpu.memory_space<vmem>>, vector<16x32xf32>
      %c0_32 = arith.constant 0 : index
      %c0_33 = arith.constant 0 : index
      %59 = vector.load %arg3[%c0_32, %c0_33] : memref<1x32xf32, #tpu.memory_space<vmem>>, vector<1x32xf32>
      %c0_34 = arith.constant 0 : index
      %c0_35 = arith.constant 0 : index
      %60 = vector.load %arg4[%c0_34, %c0_35] : memref<1x32xf32, #tpu.memory_space<vmem>>, vector<1x32xf32>
      %cst_36 = arith.constant dense<0.000000e+00> : vector<16xf32>
      %61 = vector.multi_reduction <add>, %58, %cst_36 [1] : vector<16x32xf32> to vector<16xf32>
      %62 = vector.shape_cast %61 : vector<16xf32> to vector<16x1xf32>
      %cst_37 = arith.constant 3.200000e+01 : f32
      %63 = vector.broadcast %cst_37 : f32 to vector<16x1xf32>
      %64 = arith.divf %62, %63 : vector<16x1xf32>
      %65 = vector.broadcast %64 : vector<16x1xf32> to vector<16x32xf32>
      %66 = arith.subf %58, %65 : vector<16x32xf32>
      %67 = arith.mulf %66, %66 : vector<16x32xf32>
      %cst_38 = arith.constant dense<0.000000e+00> : vector<16xf32>
      %68 = vector.multi_reduction <add>, %67, %cst_38 [1] : vector<16x32xf32> to vector<16xf32>
      %69 = vector.shape_cast %68 : vector<16xf32> to vector<16x1xf32>
      %cst_39 = arith.constant 3.200000e+01 : f32
      %70 = vector.broadcast %cst_39 : f32 to vector<16x1xf32>
      %71 = arith.divf %69, %70 : vector<16x1xf32>
      %72 = vector.broadcast %64 : vector<16x1xf32> to vector<16x32xf32>
      %73 = arith.subf %58, %72 : vector<16x32xf32>
      %cst_40 = arith.constant 9.99999974E-6 : f32
      %74 = vector.broadcast %cst_40 : f32 to vector<16x1xf32>
      %75 = arith.addf %71, %74 : vector<16x1xf32>
      %76 = math.rsqrt %75 : vector<16x1xf32>
      %77 = vector.broadcast %76 : vector<16x1xf32> to vector<16x32xf32>
      %78 = arith.mulf %73, %77 : vector<16x32xf32>
      %79 = vector.broadcast %59 : vector<1x32xf32> to vector<16x32xf32>
      %80 = arith.mulf %78, %79 : vector<16x32xf32>
      %81 = vector.broadcast %60 : vector<1x32xf32> to vector<16x32xf32>
      %82 = arith.addf %80, %81 : vector<16x32xf32>
      %83 = arith.truncf %82 : vector<16x32xf32> to vector<16x32xbf16>
      %c0_41 = arith.constant 0 : index
      %c0_42 = arith.constant 0 : index
      %84 = vector.load %arg5[%c0_41, %c0_42] : memref<32x32xbf16, #tpu.memory_space<vmem>>, vector<32x32xbf16>
      %cst_43 = arith.constant dense<0.000000e+00> : vector<16x32xf32>
      %85 = tpu.matmul %83, %84, %cst_43 {dimension_numbers = #tpu.dot_dimension_numbers<[1], [0], [0], [1], [0, 0, 1, 1], [], []>} : vector<16x32xbf16>, vector<32x32xbf16>, vector<16x32xf32> -> vector<16x32xf32>
      %c0_44 = arith.constant 0 : index
      %c0_45 = arith.constant 0 : index
      %86 = vector.load %arg6[%c0_44, %c0_45] : memref<1x32xf32, #tpu.memory_space<vmem>>, vector<1x32xf32>
      %87 = vector.broadcast %86 : vector<1x32xf32> to vector<16x32xf32>
      %88 = arith.addf %85, %87 : vector<16x32xf32>
      %c0_46 = arith.constant 0 : index
      %c0_47 = arith.constant 0 : index
      %89 = vector.load %arg7[%c0_46, %c0_47] : memref<32x32xbf16, #tpu.memory_space<vmem>>, vector<32x32xbf16>
      %cst_48 = arith.constant dense<0.000000e+00> : vector<16x32xf32>
      %90 = tpu.matmul %83, %89, %cst_48 {dimension_numbers = #tpu.dot_dimension_numbers<[1], [0], [0], [1], [0, 0, 1, 1], [], []>} : vector<16x32xbf16>, vector<32x32xbf16>, vector<16x32xf32> -> vector<16x32xf32>
      %c0_49 = arith.constant 0 : index
      %c0_50 = arith.constant 0 : index
      %91 = vector.load %arg8[%c0_49, %c0_50] : memref<1x32xf32, #tpu.memory_space<vmem>>, vector<1x32xf32>
      %92 = vector.broadcast %91 : vector<1x32xf32> to vector<16x32xf32>
      %93 = arith.addf %90, %92 : vector<16x32xf32>
      %c0_51 = arith.constant 0 : index
      %c0_52 = arith.constant 0 : index
      %94 = vector.load %arg9[%c0_51, %c0_52] : memref<32x32xbf16, #tpu.memory_space<vmem>>, vector<32x32xbf16>
      %cst_53 = arith.constant dense<0.000000e+00> : vector<16x32xf32>
      %95 = tpu.matmul %83, %94, %cst_53 {dimension_numbers = #tpu.dot_dimension_numbers<[1], [0], [0], [1], [0, 0, 1, 1], [], []>} : vector<16x32xbf16>, vector<32x32xbf16>, vector<16x32xf32> -> vector<16x32xf32>
      %c0_54 = arith.constant 0 : index
      %c0_55 = arith.constant 0 : index
      %96 = vector.load %arg10[%c0_54, %c0_55] : memref<1x32xf32, #tpu.memory_space<vmem>>, vector<1x32xf32>
      %97 = vector.broadcast %96 : vector<1x32xf32> to vector<16x32xf32>
      %98 = arith.addf %95, %97 : vector<16x32xf32>
      %cst_56 = arith.constant 0.353553385 : f32
      %99 = vector.broadcast %cst_56 : f32 to vector<16x32xf32>
      %100 = arith.mulf %88, %99 : vector<16x32xf32>
      %101 = arith.truncf %100 : vector<16x32xf32> to vector<16x32xbf16>
      %102 = arith.truncf %93 : vector<16x32xf32> to vector<16x32xbf16>
      %103 = arith.truncf %98 : vector<16x32xf32> to vector<16x32xbf16>
      %104 = vector.extract_strided_slice %101 {offsets = [0, 0], sizes = [8, 8], strides = [1, 1]} : vector<16x32xbf16> to vector<8x8xbf16>
      %105 = vector.extract_strided_slice %102 {offsets = [0, 0], sizes = [8, 8], strides = [1, 1]} : vector<16x32xbf16> to vector<8x8xbf16>
      %106 = vector.extract_strided_slice %103 {offsets = [0, 0], sizes = [8, 8], strides = [1, 1]} : vector<16x32xbf16> to vector<8x8xbf16>
      %cst_57 = arith.constant dense<0.000000e+00> : vector<8x8xf32>
      %107 = tpu.matmul %104, %105, %cst_57 {dimension_numbers = #tpu.dot_dimension_numbers<[1], [1], [0], [0], [0, 0, 1, 0], [], []>} : vector<8x8xbf16>, vector<8x8xbf16>, vector<8x8xf32> -> vector<8x8xf32>
      %cst_58 = arith.constant dense<0xFF800000> : vector<8xf32>
      %108 = vector.multi_reduction <maximumf>, %107, %cst_58 [1] : vector<8x8xf32> to vector<8xf32>
      %109 = vector.shape_cast %108 : vector<8xf32> to vector<8x1xf32>
      %110 = vector.broadcast %109 : vector<8x1xf32> to vector<8x8xf32>
      %111 = arith.subf %107, %110 : vector<8x8xf32>
      %112 = math.exp %111 : vector<8x8xf32>
      %cst_59 = arith.constant dense<0.000000e+00> : vector<8xf32>
      %113 = vector.multi_reduction <add>, %112, %cst_59 [1] : vector<8x8xf32> to vector<8xf32>
      %114 = vector.shape_cast %113 : vector<8xf32> to vector<8x1xf32>
      %115 = tpu.reciprocal %114 {approx = true} : vector<8x1xf32> -> vector<8x1xf32>
      %116 = vector.broadcast %115 : vector<8x1xf32> to vector<8x8xf32>
      %117 = arith.mulf %112, %116 : vector<8x8xf32>
      %118 = arith.truncf %117 : vector<8x8xf32> to vector<8x8xbf16>
      %cst_60 = arith.constant dense<0.000000e+00> : vector<8x8xf32>
      %119 = tpu.matmul %118, %106, %cst_60 {dimension_numbers = #tpu.dot_dimension_numbers<[1], [0], [0], [1], [0, 0, 1, 1], [], []>} : vector<8x8xbf16>, vector<8x8xbf16>, vector<8x8xf32> -> vector<8x8xf32>
      %120 = vector.extract_strided_slice %101 {offsets = [0, 8], sizes = [8, 8], strides = [1, 1]} : vector<16x32xbf16> to vector<8x8xbf16>
      %121 = vector.extract_strided_slice %102 {offsets = [0, 8], sizes = [8, 8], strides = [1, 1]} : vector<16x32xbf16> to vector<8x8xbf16>
      %122 = vector.extract_strided_slice %103 {offsets = [0, 8], sizes = [8, 8], strides = [1, 1]} : vector<16x32xbf16> to vector<8x8xbf16>
      %cst_61 = arith.constant dense<0.000000e+00> : vector<8x8xf32>
      %123 = tpu.matmul %120, %121, %cst_61 {dimension_numbers = #tpu.dot_dimension_numbers<[1], [1], [0], [0], [0, 0, 1, 0], [], []>} : vector<8x8xbf16>, vector<8x8xbf16>, vector<8x8xf32> -> vector<8x8xf32>
      %cst_62 = arith.constant dense<0xFF800000> : vector<8xf32>
      %124 = vector.multi_reduction <maximumf>, %123, %cst_62 [1] : vector<8x8xf32> to vector<8xf32>
      %125 = vector.shape_cast %124 : vector<8xf32> to vector<8x1xf32>
      %126 = vector.broadcast %125 : vector<8x1xf32> to vector<8x8xf32>
      %127 = arith.subf %123, %126 : vector<8x8xf32>
      %128 = math.exp %127 : vector<8x8xf32>
      %cst_63 = arith.constant dense<0.000000e+00> : vector<8xf32>
      %129 = vector.multi_reduction <add>, %128, %cst_63 [1] : vector<8x8xf32> to vector<8xf32>
      %130 = vector.shape_cast %129 : vector<8xf32> to vector<8x1xf32>
      %131 = tpu.reciprocal %130 {approx = true} : vector<8x1xf32> -> vector<8x1xf32>
      %132 = vector.broadcast %131 : vector<8x1xf32> to vector<8x8xf32>
      %133 = arith.mulf %128, %132 : vector<8x8xf32>
      %134 = arith.truncf %133 : vector<8x8xf32> to vector<8x8xbf16>
      %cst_64 = arith.constant dense<0.000000e+00> : vector<8x8xf32>
      %135 = tpu.matmul %134, %122, %cst_64 {dimension_numbers = #tpu.dot_dimension_numbers<[1], [0], [0], [1], [0, 0, 1, 1], [], []>} : vector<8x8xbf16>, vector<8x8xbf16>, vector<8x8xf32> -> vector<8x8xf32>
      %136 = vector.extract_strided_slice %101 {offsets = [0, 16], sizes = [8, 8], strides = [1, 1]} : vector<16x32xbf16> to vector<8x8xbf16>
      %137 = vector.extract_strided_slice %102 {offsets = [0, 16], sizes = [8, 8], strides = [1, 1]} : vector<16x32xbf16> to vector<8x8xbf16>
      %138 = vector.extract_strided_slice %103 {offsets = [0, 16], sizes = [8, 8], strides = [1, 1]} : vector<16x32xbf16> to vector<8x8xbf16>
      %cst_65 = arith.constant dense<0.000000e+00> : vector<8x8xf32>
      %139 = tpu.matmul %136, %137, %cst_65 {dimension_numbers = #tpu.dot_dimension_numbers<[1], [1], [0], [0], [0, 0, 1, 0], [], []>} : vector<8x8xbf16>, vector<8x8xbf16>, vector<8x8xf32> -> vector<8x8xf32>
      %cst_66 = arith.constant dense<0xFF800000> : vector<8xf32>
      %140 = vector.multi_reduction <maximumf>, %139, %cst_66 [1] : vector<8x8xf32> to vector<8xf32>
      %141 = vector.shape_cast %140 : vector<8xf32> to vector<8x1xf32>
      %142 = vector.broadcast %141 : vector<8x1xf32> to vector<8x8xf32>
      %143 = arith.subf %139, %142 : vector<8x8xf32>
      %144 = math.exp %143 : vector<8x8xf32>
      %cst_67 = arith.constant dense<0.000000e+00> : vector<8xf32>
      %145 = vector.multi_reduction <add>, %144, %cst_67 [1] : vector<8x8xf32> to vector<8xf32>
      %146 = vector.shape_cast %145 : vector<8xf32> to vector<8x1xf32>
      %147 = tpu.reciprocal %146 {approx = true} : vector<8x1xf32> -> vector<8x1xf32>
      %148 = vector.broadcast %147 : vector<8x1xf32> to vector<8x8xf32>
      %149 = arith.mulf %144, %148 : vector<8x8xf32>
      %150 = arith.truncf %149 : vector<8x8xf32> to vector<8x8xbf16>
      %cst_68 = arith.constant dense<0.000000e+00> : vector<8x8xf32>
      %151 = tpu.matmul %150, %138, %cst_68 {dimension_numbers = #tpu.dot_dimension_numbers<[1], [0], [0], [1], [0, 0, 1, 1], [], []>} : vector<8x8xbf16>, vector<8x8xbf16>, vector<8x8xf32> -> vector<8x8xf32>
      %152 = vector.extract_strided_slice %101 {offsets = [0, 24], sizes = [8, 8], strides = [1, 1]} : vector<16x32xbf16> to vector<8x8xbf16>
      %153 = vector.extract_strided_slice %102 {offsets = [0, 24], sizes = [8, 8], strides = [1, 1]} : vector<16x32xbf16> to vector<8x8xbf16>
      %154 = vector.extract_strided_slice %103 {offsets = [0, 24], sizes = [8, 8], strides = [1, 1]} : vector<16x32xbf16> to vector<8x8xbf16>
      %cst_69 = arith.constant dense<0.000000e+00> : vector<8x8xf32>
      %155 = tpu.matmul %152, %153, %cst_69 {dimension_numbers = #tpu.dot_dimension_numbers<[1], [1], [0], [0], [0, 0, 1, 0], [], []>} : vector<8x8xbf16>, vector<8x8xbf16>, vector<8x8xf32> -> vector<8x8xf32>
      %cst_70 = arith.constant dense<0xFF800000> : vector<8xf32>
      %156 = vector.multi_reduction <maximumf>, %155, %cst_70 [1] : vector<8x8xf32> to vector<8xf32>
      %157 = vector.shape_cast %156 : vector<8xf32> to vector<8x1xf32>
      %158 = vector.broadcast %157 : vector<8x1xf32> to vector<8x8xf32>
      %159 = arith.subf %155, %158 : vector<8x8xf32>
      %160 = math.exp %159 : vector<8x8xf32>
      %cst_71 = arith.constant dense<0.000000e+00> : vector<8xf32>
      %161 = vector.multi_reduction <add>, %160, %cst_71 [1] : vector<8x8xf32> to vector<8xf32>
      %162 = vector.shape_cast %161 : vector<8xf32> to vector<8x1xf32>
      %163 = tpu.reciprocal %162 {approx = true} : vector<8x1xf32> -> vector<8x1xf32>
      %164 = vector.broadcast %163 : vector<8x1xf32> to vector<8x8xf32>
      %165 = arith.mulf %160, %164 : vector<8x8xf32>
      %166 = arith.truncf %165 : vector<8x8xf32> to vector<8x8xbf16>
      %cst_72 = arith.constant dense<0.000000e+00> : vector<8x8xf32>
      %167 = tpu.matmul %166, %154, %cst_72 {dimension_numbers = #tpu.dot_dimension_numbers<[1], [0], [0], [1], [0, 0, 1, 1], [], []>} : vector<8x8xbf16>, vector<8x8xbf16>, vector<8x8xf32> -> vector<8x8xf32>
      %168 = tpu.concatenate %119, %135, %151, %167 in 1 : vector<8x8xf32>, vector<8x8xf32>, vector<8x8xf32>, vector<8x8xf32> -> vector<8x32xf32>
      %c0_73 = arith.constant 0 : index
      %c0_74 = arith.constant 0 : index
      %169 = vector.load %arg20[%c0_73, %c0_74] : memref<16x32xf32, #tpu.memory_space<vmem>>, vector<8x32xf32>
      tpu.vector_store %arg20[%c0_73, %c0_74], %168 {strides = array<i32>} : memref<16x32xf32, #tpu.memory_space<vmem>>, vector<8x32xf32>,
      %170 = vector.extract_strided_slice %101 {offsets = [8, 0], sizes = [8, 8], strides = [1, 1]} : vector<16x32xbf16> to vector<8x8xbf16>
      %171 = vector.extract_strided_slice %102 {offsets = [8, 0], sizes = [8, 8], strides = [1, 1]} : vector<16x32xbf16> to vector<8x8xbf16>
      %172 = vector.extract_strided_slice %103 {offsets = [8, 0], sizes = [8, 8], strides = [1, 1]} : vector<16x32xbf16> to vector<8x8xbf16>
      %cst_75 = arith.constant dense<0.000000e+00> : vector<8x8xf32>
      %173 = tpu.matmul %170, %171, %cst_75 {dimension_numbers = #tpu.dot_dimension_numbers<[1], [1], [0], [0], [0, 0, 1, 0], [], []>} : vector<8x8xbf16>, vector<8x8xbf16>, vector<8x8xf32> -> vector<8x8xf32>
      %cst_76 = arith.constant dense<0xFF800000> : vector<8xf32>
      %174 = vector.multi_reduction <maximumf>, %173, %cst_76 [1] : vector<8x8xf32> to vector<8xf32>
      %175 = vector.shape_cast %174 : vector<8xf32> to vector<8x1xf32>
      %176 = vector.broadcast %175 : vector<8x1xf32> to vector<8x8xf32>
      %177 = arith.subf %173, %176 : vector<8x8xf32>
      %178 = math.exp %177 : vector<8x8xf32>
      %cst_77 = arith.constant dense<0.000000e+00> : vector<8xf32>
      %179 = vector.multi_reduction <add>, %178, %cst_77 [1] : vector<8x8xf32> to vector<8xf32>
      %180 = vector.shape_cast %179 : vector<8xf32> to vector<8x1xf32>
      %181 = tpu.reciprocal %180 {approx = true} : vector<8x1xf32> -> vector<8x1xf32>
      %182 = vector.broadcast %181 : vector<8x1xf32> to vector<8x8xf32>
      %183 = arith.mulf %178, %182 : vector<8x8xf32>
      %184 = arith.truncf %183 : vector<8x8xf32> to vector<8x8xbf16>
      %cst_78 = arith.constant dense<0.000000e+00> : vector<8x8xf32>
      %185 = tpu.matmul %184, %172, %cst_78 {dimension_numbers = #tpu.dot_dimension_numbers<[1], [0], [0], [1], [0, 0, 1, 1], [], []>} : vector<8x8xbf16>, vector<8x8xbf16>, vector<8x8xf32> -> vector<8x8xf32>
      %186 = vector.extract_strided_slice %101 {offsets = [8, 8], sizes = [8, 8], strides = [1, 1]} : vector<16x32xbf16> to vector<8x8xbf16>
      %187 = vector.extract_strided_slice %102 {offsets = [8, 8], sizes = [8, 8], strides = [1, 1]} : vector<16x32xbf16> to vector<8x8xbf16>
      %188 = vector.extract_strided_slice %103 {offsets = [8, 8], sizes = [8, 8], strides = [1, 1]} : vector<16x32xbf16> to vector<8x8xbf16>
      %cst_79 = arith.constant dense<0.000000e+00> : vector<8x8xf32>
      %189 = tpu.matmul %186, %187, %cst_79 {dimension_numbers = #tpu.dot_dimension_numbers<[1], [1], [0], [0], [0, 0, 1, 0], [], []>} : vector<8x8xbf16>, vector<8x8xbf16>, vector<8x8xf32> -> vector<8x8xf32>
      %cst_80 = arith.constant dense<0xFF800000> : vector<8xf32>
      %190 = vector.multi_reduction <maximumf>, %189, %cst_80 [1] : vector<8x8xf32> to vector<8xf32>
      %191 = vector.shape_cast %190 : vector<8xf32> to vector<8x1xf32>
      %192 = vector.broadcast %191 : vector<8x1xf32> to vector<8x8xf32>
      %193 = arith.subf %189, %192 : vector<8x8xf32>
      %194 = math.exp %193 : vector<8x8xf32>
      %cst_81 = arith.constant dense<0.000000e+00> : vector<8xf32>
      %195 = vector.multi_reduction <add>, %194, %cst_81 [1] : vector<8x8xf32> to vector<8xf32>
      %196 = vector.shape_cast %195 : vector<8xf32> to vector<8x1xf32>
      %197 = tpu.reciprocal %196 {approx = true} : vector<8x1xf32> -> vector<8x1xf32>
      %198 = vector.broadcast %197 : vector<8x1xf32> to vector<8x8xf32>
      %199 = arith.mulf %194, %198 : vector<8x8xf32>
      %200 = arith.truncf %199 : vector<8x8xf32> to vector<8x8xbf16>
      %cst_82 = arith.constant dense<0.000000e+00> : vector<8x8xf32>
      %201 = tpu.matmul %200, %188, %cst_82 {dimension_numbers = #tpu.dot_dimension_numbers<[1], [0], [0], [1], [0, 0, 1, 1], [], []>} : vector<8x8xbf16>, vector<8x8xbf16>, vector<8x8xf32> -> vector<8x8xf32>
      %202 = vector.extract_strided_slice %101 {offsets = [8, 16], sizes = [8, 8], strides = [1, 1]} : vector<16x32xbf16> to vector<8x8xbf16>
      %203 = vector.extract_strided_slice %102 {offsets = [8, 16], sizes = [8, 8], strides = [1, 1]} : vector<16x32xbf16> to vector<8x8xbf16>
      %204 = vector.extract_strided_slice %103 {offsets = [8, 16], sizes = [8, 8], strides = [1, 1]} : vector<16x32xbf16> to vector<8x8xbf16>
      %cst_83 = arith.constant dense<0.000000e+00> : vector<8x8xf32>
      %205 = tpu.matmul %202, %203, %cst_83 {dimension_numbers = #tpu.dot_dimension_numbers<[1], [1], [0], [0], [0, 0, 1, 0], [], []>} : vector<8x8xbf16>, vector<8x8xbf16>, vector<8x8xf32> -> vector<8x8xf32>
      %cst_84 = arith.constant dense<0xFF800000> : vector<8xf32>
      %206 = vector.multi_reduction <maximumf>, %205, %cst_84 [1] : vector<8x8xf32> to vector<8xf32>
      %207 = vector.shape_cast %206 : vector<8xf32> to vector<8x1xf32>
      %208 = vector.broadcast %207 : vector<8x1xf32> to vector<8x8xf32>
      %209 = arith.subf %205, %208 : vector<8x8xf32>
      %210 = math.exp %209 : vector<8x8xf32>
      %cst_85 = arith.constant dense<0.000000e+00> : vector<8xf32>
      %211 = vector.multi_reduction <add>, %210, %cst_85 [1] : vector<8x8xf32> to vector<8xf32>
      %212 = vector.shape_cast %211 : vector<8xf32> to vector<8x1xf32>
      %213 = tpu.reciprocal %212 {approx = true} : vector<8x1xf32> -> vector<8x1xf32>
      %214 = vector.broadcast %213 : vector<8x1xf32> to vector<8x8xf32>
      %215 = arith.mulf %210, %214 : vector<8x8xf32>
      %216 = arith.truncf %215 : vector<8x8xf32> to vector<8x8xbf16>
      %cst_86 = arith.constant dense<0.000000e+00> : vector<8x8xf32>
      %217 = tpu.matmul %216, %204, %cst_86 {dimension_numbers = #tpu.dot_dimension_numbers<[1], [0], [0], [1], [0, 0, 1, 1], [], []>} : vector<8x8xbf16>, vector<8x8xbf16>, vector<8x8xf32> -> vector<8x8xf32>
      %218 = vector.extract_strided_slice %101 {offsets = [8, 24], sizes = [8, 8], strides = [1, 1]} : vector<16x32xbf16> to vector<8x8xbf16>
      %219 = vector.extract_strided_slice %102 {offsets = [8, 24], sizes = [8, 8], strides = [1, 1]} : vector<16x32xbf16> to vector<8x8xbf16>
      %220 = vector.extract_strided_slice %103 {offsets = [8, 24], sizes = [8, 8], strides = [1, 1]} : vector<16x32xbf16> to vector<8x8xbf16>
      %cst_87 = arith.constant dense<0.000000e+00> : vector<8x8xf32>
      %221 = tpu.matmul %218, %219, %cst_87 {dimension_numbers = #tpu.dot_dimension_numbers<[1], [1], [0], [0], [0, 0, 1, 0], [], []>} : vector<8x8xbf16>, vector<8x8xbf16>, vector<8x8xf32> -> vector<8x8xf32>
      %cst_88 = arith.constant dense<0xFF800000> : vector<8xf32>
      %222 = vector.multi_reduction <maximumf>, %221, %cst_88 [1] : vector<8x8xf32> to vector<8xf32>
      %223 = vector.shape_cast %222 : vector<8xf32> to vector<8x1xf32>
      %224 = vector.broadcast %223 : vector<8x1xf32> to vector<8x8xf32>
      %225 = arith.subf %221, %224 : vector<8x8xf32>
      %226 = math.exp %225 : vector<8x8xf32>
      %cst_89 = arith.constant dense<0.000000e+00> : vector<8xf32>
      %227 = vector.multi_reduction <add>, %226, %cst_89 [1] : vector<8x8xf32> to vector<8xf32>
      %228 = vector.shape_cast %227 : vector<8xf32> to vector<8x1xf32>
      %229 = tpu.reciprocal %228 {approx = true} : vector<8x1xf32> -> vector<8x1xf32>
      %230 = vector.broadcast %229 : vector<8x1xf32> to vector<8x8xf32>
      %231 = arith.mulf %226, %230 : vector<8x8xf32>
      %232 = arith.truncf %231 : vector<8x8xf32> to vector<8x8xbf16>
      %cst_90 = arith.constant dense<0.000000e+00> : vector<8x8xf32>
      %233 = tpu.matmul %232, %220, %cst_90 {dimension_numbers = #tpu.dot_dimension_numbers<[1], [0], [0], [1], [0, 0, 1, 1], [], []>} : vector<8x8xbf16>, vector<8x8xbf16>, vector<8x8xf32> -> vector<8x8xf32>
      %234 = tpu.concatenate %185, %201, %217, %233 in 1 : vector<8x8xf32>, vector<8x8xf32>, vector<8x8xf32>, vector<8x8xf32> -> vector<8x32xf32>
      %c8 = arith.constant 8 : index
      %c0_91 = arith.constant 0 : index
      %235 = vector.load %arg20[%c8, %c0_91] : memref<16x32xf32, #tpu.memory_space<vmem>>, vector<8x32xf32>
      tpu.vector_store %arg20[%c8, %c0_91], %234 {strides = array<i32>} : memref<16x32xf32, #tpu.memory_space<vmem>>, vector<8x32xf32>,
      %c0_92 = arith.constant 0 : index
      %c0_93 = arith.constant 0 : index
      %236 = vector.load %arg20[%c0_92, %c0_93] : memref<16x32xf32, #tpu.memory_space<vmem>>, vector<16x32xf32>
      %237 = arith.truncf %236 : vector<16x32xf32> to vector<16x32xbf16>
      %c0_94 = arith.constant 0 : index
      %c0_95 = arith.constant 0 : index
      %238 = vector.load %arg11[%c0_94, %c0_95] : memref<32x32xbf16, #tpu.memory_space<vmem>>, vector<32x32xbf16>
      %cst_96 = arith.constant dense<0.000000e+00> : vector<16x32xf32>
      %239 = tpu.matmul %237, %238, %cst_96 {dimension_numbers = #tpu.dot_dimension_numbers<[1], [0], [0], [1], [0, 0, 1, 1], [], []>} : vector<16x32xbf16>, vector<32x32xbf16>, vector<16x32xf32> -> vector<16x32xf32>
      %c0_97 = arith.constant 0 : index
      %c0_98 = arith.constant 0 : index
      %240 = vector.load %arg12[%c0_97, %c0_98] : memref<1x32xf32, #tpu.memory_space<vmem>>, vector<1x32xf32>
      %241 = vector.broadcast %240 : vector<1x32xf32> to vector<16x32xf32>
      %242 = arith.addf %239, %241 : vector<16x32xf32>
      %243 = arith.addf %58, %242 : vector<16x32xf32>
      %c0_99 = arith.constant 0 : index
      %c0_100 = arith.constant 0 : index
      %244 = vector.load %arg21[%c0_99, %c0_100] : memref<16x32xf32, #tpu.memory_space<vmem>>, vector<16x32xf32>
      tpu.vector_store %arg21[%c0_99, %c0_100], %243 {strides = array<i32>} : memref<16x32xf32, #tpu.memory_space<vmem>>, vector<16x32xf32>,
      %c0_101 = arith.constant 0 : index
      %c0_102 = arith.constant 0 : index
      %245 = vector.load %arg13[%c0_101, %c0_102] : memref<1x32xf32, #tpu.memory_space<vmem>>, vector<1x32xf32>
      %c0_103 = arith.constant 0 : index
      %c0_104 = arith.constant 0 : index
      %246 = vector.load %arg14[%c0_103, %c0_104] : memref<1x32xf32, #tpu.memory_space<vmem>>, vector<1x32xf32>
      %cst_105 = arith.constant dense<0.000000e+00> : vector<16xf32>
      %247 = vector.multi_reduction <add>, %243, %cst_105 [1] : vector<16x32xf32> to vector<16xf32>
      %248 = vector.shape_cast %247 : vector<16xf32> to vector<16x1xf32>
      %cst_106 = arith.constant 3.200000e+01 : f32
      %249 = vector.broadcast %cst_106 : f32 to vector<16x1xf32>
      %250 = arith.divf %248, %249 : vector<16x1xf32>
      %251 = vector.broadcast %250 : vector<16x1xf32> to vector<16x32xf32>
      %252 = arith.subf %243, %251 : vector<16x32xf32>
      %253 = arith.mulf %252, %252 : vector<16x32xf32>
      %cst_107 = arith.constant dense<0.000000e+00> : vector<16xf32>
      %254 = vector.multi_reduction <add>, %253, %cst_107 [1] : vector<16x32xf32> to vector<16xf32>
      %255 = vector.shape_cast %254 : vector<16xf32> to vector<16x1xf32>
      %cst_108 = arith.constant 3.200000e+01 : f32
      %256 = vector.broadcast %cst_108 : f32 to vector<16x1xf32>
      %257 = arith.divf %255, %256 : vector<16x1xf32>
      %258 = vector.broadcast %250 : vector<16x1xf32> to vector<16x32xf32>
      %259 = arith.subf %243, %258 : vector<16x32xf32>
      %cst_109 = arith.constant 9.99999974E-6 : f32
      %260 = vector.broadcast %cst_109 : f32 to vector<16x1xf32>
      %261 = arith.addf %257, %260 : vector<16x1xf32>
      %262 = math.rsqrt %261 : vector<16x1xf32>
      %263 = vector.broadcast %262 : vector<16x1xf32> to vector<16x32xf32>
      %264 = arith.mulf %259, %263 : vector<16x32xf32>
      %265 = vector.broadcast %245 : vector<1x32xf32> to vector<16x32xf32>
      %266 = arith.mulf %264, %265 : vector<16x32xf32>
      %267 = vector.broadcast %246 : vector<1x32xf32> to vector<16x32xf32>
      %268 = arith.addf %266, %267 : vector<16x32xf32>
      %269 = arith.truncf %268 : vector<16x32xf32> to vector<16x32xbf16>
      %c0_110 = arith.constant 0 : index
      %c0_111 = arith.constant 0 : index
      %270 = vector.load %arg22[%c0_110, %c0_111] : memref<16x32xbf16, #tpu.memory_space<vmem>>, vector<16x32xbf16>
      tpu.vector_store %arg22[%c0_110, %c0_111], %269 {strides = array<i32>} : memref<16x32xbf16, #tpu.memory_space<vmem>>, vector<16x32xbf16>,
      %cst_112 = arith.constant 0.000000e+00 : f32
      %271 = vector.broadcast %cst_112 : f32 to vector<16x32xf32>
      %c0_113 = arith.constant 0 : index
      %c0_114 = arith.constant 0 : index
      %272 = vector.load %arg20[%c0_113, %c0_114] : memref<16x32xf32, #tpu.memory_space<vmem>>, vector<16x32xf32>
      tpu.vector_store %arg20[%c0_113, %c0_114], %271 {strides = array<i32>} : memref<16x32xf32, #tpu.memory_space<vmem>>, vector<16x32xf32>,
    } else {
    }
    %c0 = arith.constant 0 : index
    %c0_1 = arith.constant 0 : index
    %3 = vector.load %arg22[%c0, %c0_1] : memref<16x32xbf16, #tpu.memory_space<vmem>>, vector<16x32xbf16>
    %c0_2 = arith.constant 0 : index
    %c0_3 = arith.constant 0 : index
    %4 = vector.load %arg15[%c0_2, %c0_3] : memref<32x64xbf16, #tpu.memory_space<vmem>>, vector<32x64xbf16>
    %cst = arith.constant dense<0.000000e+00> : vector<16x64xf32>
    %5 = tpu.matmul %3, %4, %cst {dimension_numbers = #tpu.dot_dimension_numbers<[1], [0], [0], [1], [0, 0, 1, 1], [], []>} : vector<16x32xbf16>, vector<32x64xbf16>, vector<16x64xf32> -> vector<16x64xf32>
    %c0_4 = arith.constant 0 : index
    %c0_5 = arith.constant 0 : index
    %6 = vector.load %arg16[%c0_4, %c0_5] : memref<1x64xf32, #tpu.memory_space<vmem>>, vector<1x64xf32>
    %7 = vector.broadcast %6 : vector<1x64xf32> to vector<16x64xf32>
    %8 = arith.addf %5, %7 : vector<16x64xf32>
    %cst_6 = arith.constant 5.000000e-01 : f32
    %9 = vector.broadcast %cst_6 : f32 to vector<16x64xf32>
    %10 = arith.mulf %9, %8 : vector<16x64xf32>
    %cst_7 = arith.constant 0.707106769 : f32
    %11 = vector.broadcast %cst_7 : f32 to vector<16x64xf32>
    %12 = arith.mulf %8, %11 : vector<16x64xf32>
    %cst_8 = arith.constant 0.000000e+00 : f32
    %13 = vector.broadcast %cst_8 : f32 to vector<16x64xf32>
    %14 = arith.cmpf oge, %12, %13 : vector<16x64xf32>
    %cst_9 = arith.constant 1.000000e+00 : f32
    %cst_10 = arith.constant -1.000000e+00 : f32
    %15 = vector.broadcast %cst_9 : f32 to vector<16x64xf32>
    %16 = vector.broadcast %cst_10 : f32 to vector<16x64xf32>
    %17 = arith.select %14, %15, %16 : vector<16x64xi1>, vector<16x64xf32>
    %18 = math.absf %12 : vector<16x64xf32>
    %cst_11 = arith.constant 0.327591091 : f32
    %19 = vector.broadcast %cst_11 : f32 to vector<16x64xf32>
    %20 = arith.mulf %19, %18 : vector<16x64xf32>
    %cst_12 = arith.constant 1.000000e+00 : f32
    %21 = vector.broadcast %cst_12 : f32 to vector<16x64xf32>
    %22 = arith.addf %21, %20 : vector<16x64xf32>
    %23 = tpu.reciprocal %22 {approx = true} : vector<16x64xf32> -> vector<16x64xf32>
    %cst_13 = arith.constant 1.06140542 : f32
    %24 = vector.broadcast %cst_13 : f32 to vector<16x64xf32>
    %25 = arith.mulf %24, %23 : vector<16x64xf32>
    %cst_14 = arith.constant -1.45315206 : f32
    %26 = vector.broadcast %cst_14 : f32 to vector<16x64xf32>
    %27 = arith.addf %25, %26 : vector<16x64xf32>
    %28 = arith.mulf %27, %23 : vector<16x64xf32>
    %cst_15 = arith.constant 1.42141378 : f32
    %29 = vector.broadcast %cst_15 : f32 to vector<16x64xf32>
    %30 = arith.addf %28, %29 : vector<16x64xf32>
    %31 = arith.mulf %30, %23 : vector<16x64xf32>
    %cst_16 = arith.constant -0.284496725 : f32
    %32 = vector.broadcast %cst_16 : f32 to vector<16x64xf32>
    %33 = arith.addf %31, %32 : vector<16x64xf32>
    %34 = arith.mulf %33, %23 : vector<16x64xf32>
    %cst_17 = arith.constant 0.254829586 : f32
    %35 = vector.broadcast %cst_17 : f32 to vector<16x64xf32>
    %36 = arith.addf %34, %35 : vector<16x64xf32>
    %37 = arith.mulf %36, %23 : vector<16x64xf32>
    %cst_18 = arith.constant 0.000000e+00 : f32
    %38 = vector.broadcast %cst_18 : f32 to vector<16x64xf32>
    %39 = arith.subf %38, %18 : vector<16x64xf32>
    %40 = arith.mulf %39, %18 : vector<16x64xf32>
    %41 = math.exp %40 : vector<16x64xf32>
    %42 = arith.mulf %37, %41 : vector<16x64xf32>
    %cst_19 = arith.constant 1.000000e+00 : f32
    %43 = vector.broadcast %cst_19 : f32 to vector<16x64xf32>
    %44 = arith.subf %43, %42 : vector<16x64xf32>
    %45 = arith.mulf %17, %44 : vector<16x64xf32>
    %cst_20 = arith.constant 1.000000e+00 : f32
    %46 = vector.broadcast %cst_20 : f32 to vector<16x64xf32>
    %47 = arith.addf %46, %45 : vector<16x64xf32>
    %48 = arith.mulf %10, %47 : vector<16x64xf32>
    %c0_21 = arith.constant 0 : index
    %c0_22 = arith.constant 0 : index
    %49 = vector.load %arg20[%c0_21, %c0_22] : memref<16x32xf32, #tpu.memory_space<vmem>>, vector<16x32xf32>
    %50 = arith.truncf %48 : vector<16x64xf32> to vector<16x64xbf16>
    %c0_23 = arith.constant 0 : index
    %c0_24 = arith.constant 0 : index
    %51 = vector.load %arg17[%c0_23, %c0_24] : memref<64x32xbf16, #tpu.memory_space<vmem>>, vector<64x32xbf16>
    %cst_25 = arith.constant dense<0.000000e+00> : vector<16x32xf32>
    %52 = tpu.matmul %50, %51, %cst_25 {dimension_numbers = #tpu.dot_dimension_numbers<[1], [0], [0], [1], [0, 0, 1, 1], [], []>} : vector<16x64xbf16>, vector<64x32xbf16>, vector<16x32xf32> -> vector<16x32xf32>
    %53 = arith.addf %49, %52 : vector<16x32xf32>
    %c0_26 = arith.constant 0 : index
    %c0_27 = arith.constant 0 : index
    %54 = vector.load %arg20[%c0_26, %c0_27] : memref<16x32xf32, #tpu.memory_space<vmem>>, vector<16x32xf32>
    tpu.vector_store %arg20[%c0_26, %c0_27], %53 {strides = array<i32>} : memref<16x32xf32, #tpu.memory_space<vmem>>, vector<16x32xf32>,
    %c0_i32_28 = arith.constant 0 : i32
    %55 = arith.cmpi eq, %arg1, %c0_i32_28 : i32
    %56 = arith.extui %55 : i1 to i32
    %c0_i32_29 = arith.constant 0 : i32
    %57 = arith.cmpi ne, %56, %c0_i32_29 : i32
    scf.if %57 {
      %c0_30 = arith.constant 0 : index
      %c0_31 = arith.constant 0 : index
      %58 = vector.load %arg20[%c0_30, %c0_31] : memref<16x32xf32, #tpu.memory_space<vmem>>, vector<16x32xf32>
      %c0_32 = arith.constant 0 : index
      %c0_33 = arith.constant 0 : index
      %59 = vector.load %arg18[%c0_32, %c0_33] : memref<1x32xf32, #tpu.memory_space<vmem>>, vector<1x32xf32>
      %60 = vector.broadcast %59 : vector<1x32xf32> to vector<16x32xf32>
      %61 = arith.addf %58, %60 : vector<16x32xf32>
      %c0_34 = arith.constant 0 : index
      %c0_35 = arith.constant 0 : index
      %62 = vector.load %arg21[%c0_34, %c0_35] : memref<16x32xf32, #tpu.memory_space<vmem>>, vector<16x32xf32>
      %63 = arith.addf %61, %62 : vector<16x32xf32>
      %c0_36 = arith.constant 0 : index
      %c0_37 = arith.constant 0 : index
      %64 = vector.load %arg19[%c0_36, %c0_37] : memref<16x32xf32, #tpu.memory_space<vmem>>, vector<16x32xf32>
      tpu.vector_store %arg19[%c0_36, %c0_37], %63 {strides = array<i32>} : memref<16x32xf32, #tpu.memory_space<vmem>>, vector<16x32xf32>,
    } else {
    }
    return
  }
  func.func @transform_0(%arg0: i32, %arg1: i32) -> (i32, i32) {
    %c0_i32 = arith.constant 0 : i32
    %c0_i32_0 = arith.constant 0 : i32
    return %arg0, %c0_i32 : i32, i32
  }
  func.func @transform_1(%arg0: i32, %arg1: i32) -> (i32, i32) {
    %c0_i32 = arith.constant 0 : i32
    %c0_i32_0 = arith.constant 0 : i32
    %c0_i32_1 = arith.constant 0 : i32
    return %c0_i32, %c0_i32_0 : i32, i32
  }
  func.func @transform_2(%arg0: i32, %arg1: i32) -> (i32, i32) {
    %c0_i32 = arith.constant 0 : i32
    %c0_i32_0 = arith.constant 0 : i32
    %c0_i32_1 = arith.constant 0 : i32
    return %c0_i32, %c0_i32_0 : i32, i32
  }
  func.func @transform_3(%arg0: i32, %arg1: i32) -> (i32, i32) {
    %c0_i32 = arith.constant 0 : i32
    %c0_i32_0 = arith.constant 0 : i32
    %c0_i32_1 = arith.constant 0 : i32
    return %c0_i32, %c0_i32_0 : i32, i32
  }
  func.func @transform_4(%arg0: i32, %arg1: i32) -> (i32, i32) {
    %c0_i32 = arith.constant 0 : i32
    %c0_i32_0 = arith.constant 0 : i32
    %c0_i32_1 = arith.constant 0 : i32
    return %c0_i32, %c0_i32_0 : i32, i32
  }
  func.func @transform_5(%arg0: i32, %arg1: i32) -> (i32, i32) {
    %c0_i32 = arith.constant 0 : i32
    %c0_i32_0 = arith.constant 0 : i32
    %c0_i32_1 = arith.constant 0 : i32
    return %c0_i32, %c0_i32_0 : i32, i32
  }
  func.func @transform_6(%arg0: i32, %arg1: i32) -> (i32, i32) {
    %c0_i32 = arith.constant 0 : i32
    %c0_i32_0 = arith.constant 0 : i32
    %c0_i32_1 = arith.constant 0 : i32
    return %c0_i32, %c0_i32_0 : i32, i32
  }
  func.func @transform_7(%arg0: i32, %arg1: i32) -> (i32, i32) {
    %c0_i32 = arith.constant 0 : i32
    %c0_i32_0 = arith.constant 0 : i32
    %c0_i32_1 = arith.constant 0 : i32
    return %c0_i32, %c0_i32_0 : i32, i32
  }
  func.func @transform_8(%arg0: i32, %arg1: i32) -> (i32, i32) {
    %c0_i32 = arith.constant 0 : i32
    %c0_i32_0 = arith.constant 0 : i32
    %c0_i32_1 = arith.constant 0 : i32
    return %c0_i32, %c0_i32_0 : i32, i32
  }
  func.func @transform_9(%arg0: i32, %arg1: i32) -> (i32, i32) {
    %c0_i32 = arith.constant 0 : i32
    %c0_i32_0 = arith.constant 0 : i32
    %c0_i32_1 = arith.constant 0 : i32
    return %c0_i32, %c0_i32_0 : i32, i32
  }
  func.func @transform_10(%arg0: i32, %arg1: i32) -> (i32, i32) {
    %c0_i32 = arith.constant 0 : i32
    %c0_i32_0 = arith.constant 0 : i32
    %c0_i32_1 = arith.constant 0 : i32
    return %c0_i32, %c0_i32_0 : i32, i32
  }
  func.func @transform_11(%arg0: i32, %arg1: i32) -> (i32, i32) {
    %c0_i32 = arith.constant 0 : i32
    %c0_i32_0 = arith.constant 0 : i32
    %c0_i32_1 = arith.constant 0 : i32
    return %c0_i32, %c0_i32_0 : i32, i32
  }
  func.func @transform_12(%arg0: i32, %arg1: i32) -> (i32, i32) {
    %c0_i32 = arith.constant 0 : i32
    %c0_i32_0 = arith.constant 0 : i32
    %c0_i32_1 = arith.constant 0 : i32
    return %c0_i32, %c0_i32_0 : i32, i32
  }
  func.func @transform_13(%arg0: i32, %arg1: i32) -> (i32, i32) {
    %c0_i32 = arith.constant 0 : i32
    %c0_i32_0 = arith.constant 0 : i32
    return %c0_i32, %arg1 : i32, i32
  }
  func.func @transform_14(%arg0: i32, %arg1: i32) -> (i32, i32) {
    %c0_i32 = arith.constant 0 : i32
    %c0_i32_0 = arith.constant 0 : i32
    return %c0_i32, %arg1 : i32, i32
  }
  func.func @transform_15(%arg0: i32, %arg1: i32) -> (i32, i32) {
    %c0_i32 = arith.constant 0 : i32
    %c0_i32_0 = arith.constant 0 : i32
    return %arg1, %c0_i32 : i32, i32
  }
  func.func @transform_16(%arg0: i32, %arg1: i32) -> (i32, i32) {
    %c0_i32 = arith.constant 0 : i32
    %c0_i32_0 = arith.constant 0 : i32
    %c0_i32_1 = arith.constant 0 : i32
    return %c0_i32, %c0_i32_0 : i32, i32
  }
  func.func @transform_17(%arg0: i32, %arg1: i32) -> (i32, i32) {
    %c0_i32 = arith.constant 0 : i32
    %c0_i32_0 = arith.constant 0 : i32
    return %arg0, %c0_i32 : i32, i32
  }
}

</mosaic_0001>

<bundles_post_ra>
// kernel: tpu_custom_call.1
= control target key start
LH: loop header
LB: loop body
LE: loop exit
PB: predicated region body
PF: predicated region fallthrough
CT: control target
= control target key end

     0   :  { %s1723_s0 = inlined_call_operand.vmem [shape: f32[16,32], index: 0, kind: input, shape index: {}]   ;;  %s1724_s1 = inlined_call_operand.hbm [shape: f32[1,32], index: 1, kind: input, shape index: {}]   ;;  %s1725_s2 = inlined_call_operand.vmem [shape: f32[1,32], index: 2, kind: input, shape index: {}]   ;;  %s1726_s3 = inlined_call_operand.vmem [shape: bf16[32,32], index: 3, kind: input, shape index: {}]   ;;  %s1727_s4 = inlined_call_operand.vmem [shape: f32[1,32], index: 4, kind: input, shape index: {}]   ;;  %s1728_s5 = inlined_call_operand.vmem [shape: bf16[32,32], index: 5, kind: input, shape index: {}]   ;;  %s1729_s6 = inlined_call_operand.vmem [shape: f32[1,32], index: 6, kind: input, shape index: {}]   ;;  %s1730_s7 = inlined_call_operand.hbm [shape: bf16[32,32], index: 7, kind: input, shape index: {}]   ;;  %s1731_s8 = inlined_call_operand.vmem [shape: f32[1,32], index: 8, kind: input, shape index: {}]   ;;  %s1732_s9 = inlined_call_operand.hbm [shape: bf16[32,32], index: 9, kind: input, shape index: {}]   ;;  %s1733_s10 = inlined_call_operand.vmem [shape: f32[1,32], index: 10, kind: input, shape index: {}]   ;;  %s1734_s11 = inlined_call_operand.vmem [shape: f32[1,32], index: 11, kind: input, shape index: {}]   ;;  %s1735_s12 = inlined_call_operand.vmem [shape: f32[1,32], index: 12, kind: input, shape index: {}]   ;;  %s1736_s13 = inlined_call_operand.hbm [shape: bf16[32,64], index: 13, kind: input, shape index: {}]   ;;  %s1737_s14 = inlined_call_operand.vmem [shape: f32[1,64], index: 14, kind: input, shape index: {}]   ;;  %s1738_s15 = inlined_call_operand.vmem [shape: bf16[64,32], index: 15, kind: input, shape index: {}]   ;;  %s1739_s16 = inlined_call_operand.vmem [shape: f32[1,32], index: 16, kind: input, shape index: {}]   ;;  %s1740_s17 = inlined_call_operand.hbm [shape: f32[16,32], index: 17, kind: output, shape index: {}]  }
   0x1   :  { %1742 = sst [smem:[#allocation18_spill]] %s1723_s0 }
   0x2   :  { %1743 = sst [smem:[#allocation19_spill]] %s1724_s1 }
   0x3   :  { %1744 = sst [smem:[#allocation20_spill]] %s1740_s17 }
   0x4   :  { %22 = vsyncpa [#allocation6], 0 }
   0x5   :  { %23 = vsyncpa [#allocation9], 0 }
   0x6   :  { %24 = vsyncpa [#allocation12], 0  ;;  %s53_s26 = sshll.u32 %s1730_s7, 4  ;;  %s54_s26 = int_to_ptr.hbm [resolvable:$true] %s53_s26 }
   0x7   :  { %25 = vsyncpa [#allocation7], 0  ;;  %s1394_s27 = smov [#allocation8]   ;;  %s1745_s30 = sld [smem:[#allocation19_spill]] }
   0x8   :  { %s55_s28 = sshll.u32 %s1394_s27, 4  ;;  %s1395_s19 = smov 64   ;;  %s56_s28 = int_to_ptr.vmem [resolvable:$true] %s55_s28 }
   0x9   :  { %s1396_s1 = smov 4   ;;  %s1397_s20 = smov [#allocation5]  }
   0xa   :  { %61 = dma.hbm_to_vmem [thread:$0]  %s54_s26, 256, %s56_s28, [#allocation9], %s1395_s19, %s1395_s19, %s1396_s1  }
   0xb   :  { %s35_s21 = sshll.u32 %s1397_s20, 4  ;;  %s68_s24 = sshll.u32 %s1732_s9, 4  ;;  %s36_s21 = int_to_ptr.vmem [resolvable:$true] %s35_s21  ;;  %s69_s24 = int_to_ptr.hbm [resolvable:$true] %s68_s24 }
   0xc   :  { %s87_s27 = sshll.u32 %s1736_s13, 4  ;;  %s1398_s17 = smov [#allocation10]   ;;  %s88_s27 = int_to_ptr.hbm [resolvable:$true] %s87_s27 }
   0xd   :  { %s33_s18 = sshll.u32 %s1745_s30, 4  ;;  %s70_s29 = sshll.u32 %s1398_s17, 4  ;;  %s34_s18 = int_to_ptr.hbm [resolvable:$true] %s33_s18  ;;  %s71_s29 = int_to_ptr.vmem [resolvable:$true] %s70_s29 }
   0xe   :  { %38 = dma.hbm_to_vmem [thread:$0]  %s34_s18, 16, %s36_s21, [#allocation6]  }
   0xf   :  { %76 = dma.hbm_to_vmem [thread:$0]  %s69_s24, 256, %s71_s29, [#allocation9], %s1395_s19, %s1395_s19, %s1396_s1  }
  0x10   :  { %s1399_s26 = smov [#allocation11]  }
  0x11   :  { %s89_s28 = sshll.u32 %s1399_s26, 4  ;;  %s90_s28 = int_to_ptr.vmem [resolvable:$true] %s89_s28 }
  0x12   :  { %95 = dma.hbm_to_vmem [thread:$0]  %s88_s27, 256, %s90_s28, [#allocation12], %s1395_s19, %s1395_s19, %s1396_s1  }
  0x13   :  { %1386 = dma.done.wait [#allocation6], 16  }
  0x14   :  { %1387 = vsyncadd [#allocation6], 4294967280 }
  0x15   :  { %1388 = dma.done.wait [#allocation9], 512  }
  0x16   :  { %1389 = vsyncadd [#allocation9], 4294966784 }
  0x17   :  { %1390 = dma.done.wait [#allocation12], 256  }
  0x18   :  { %1391 = vsyncadd [#allocation12], 4294967040  ;;  %vm127_vm0 = vcmask 261120   ;;  %s1746_s30 = sld [smem:[#allocation18_spill]]  ;;  %v1400_v4 = vmov 32.0   ;;  %v1175_v21 = vld [vmem:[%s1726_s3 + $0x8] sm:$0xff] }
  0x19   :  { %1216 = vrcp.f32 %v1400_v4  ;;  %v1177_v22 = vld [vmem:[%s1728_s5 + $0x8] sm:$0xff]  ;;  %v1179_v23 = vld [vmem:[#allocation8 + $0x8] sm:$0xff]  ;;  %219 = vmatpush.bf16.msra.mxu0 %v1175_v21  ;;  %v1174_v25 = vld [vmem:[%s1726_s3] sm:$0xff]  ;;  %vm303_vm8 = vcmask 64512   ;;  %vm338_vm9 = vcmask 1043456   ;;  %s1404_s28 = smov 8  }
  0x1a   :  { %253 = vmatpush.bf16.msra.mxu1 %v1177_v22  ;;  %v1176_v26 = vld [vmem:[%s1728_s5] sm:$0xff]  ;;  %287 = vmatpush.bf16.msra.mxu2 %v1179_v23  ;;  %v1178_v28 = vld [vmem:[#allocation8] sm:$0xff]  ;;  %v1206_v46 = vld [vmem:[#allocation5] ss:$0 sm:$0xff]  ;;  %s1405_s9 = smov 16   ;;  %s1406_s0 = smov 24  }
  0x1b   :  { %v1207_v51 = vld [vmem:[%s1725_s2] ss:$0 sm:$0xff]  ;;  %vm545_vm10 = vcmask 130048   ;;  %vm547_vm11 = vcmask 195584   ;;  %s1409_s7 = smov [#allocation13]   ;;  %s1747_s2 = sld [smem:[#allocation20_spill]] }
  0x1c   :  { %v1208_v56 = vld [vmem:[%s1727_s4] ss:$0 sm:$0xff]  ;;  %s1401_s4 = smov 104   ;;  %s1075_s25 = sshll.u32 %s1409_s7, 4  ;;  %s1076_s25 = int_to_ptr.vmem [resolvable:$true] %s1075_s25 }
  0x1d   :  { %220 = vmatpush.bf16.msra.mxu0 %v1174_v25  ;;  %v1209_v57 = vld [vmem:[%s1729_s6] ss:$0 sm:$0xff]  ;;  %s1402_s6 = smov 112  }
  0x1e   :  { %v1516_v0 = vld [vmem:[%s1746_s30] sm:$0xff]  ;;  %v1523_v2 = vld [vmem:[%s1746_s30 + $0x8] sm:$0xff]  ;;  %254 = vmatpush.bf16.msra.mxu1 %v1176_v26  ;;  %288 = vmatpush.bf16.msra.mxu2 %v1178_v28 }
  0x1f   :  { %v128_v1 = vsel %vm127_vm0, %v1516_v0, 0.0  ;;  %v131_v3 = vsel %vm127_vm0, %v1523_v2, 0.0  ;;  %v1217_v5 = vpop.eup %1216 }
  0x20   :  { %129 = vadd.xlane.f32.xlu0 %v128_v1  ;;  %v135_v6 = vmul.f32 32.0, %v1217_v5  ;;  %vm139_vm1 = vweird.f32 %v1217_v5  ;;  %v1564_v1 = vld [vmem:[%s1731_s8] ss:$0 sm:$0xff]  ;;  %s1403_s8 = smov 120  }
  0x21   :  { %s1077_s26 = sshll.u32 %s1747_s2, 4  ;;  %s1078_s26 = int_to_ptr.hbm [resolvable:$true] %s1077_s26 }
  0x22   :  { %v136_v7 = vsub.f32 1.0, %v135_v6 }
  0x24   :  { %v137_v8 = vmul.f32 %v1217_v5, %v136_v7 }
  0x26   :  { %v138_v9 = vadd.f32 %v1217_v5, %v137_v8 }
  0x28   :  { %132 = vadd.xlane.f32.xlu0 %v131_v3  ;;  %v1527_v10 = vsel %vm139_vm1, %v1217_v5, %v138_v9  ;;  %vm895_vm1 = vcmask 257024  }
  0x93   :  { %v130_v11 = vpop.xlane.xlu0 %129 }
  0x94   :  { %v141_v12 = vmul.f32 %v1527_v10, %v130_v11 }
  0x96   :  { %v143_v13 = vsub.f32 %v1516_v0, %v141_v12 }
  0x98   :  { %v145_v14 = vmul.f32 %v143_v13, %v143_v13 }
  0x9a   :  { %v147_v15 = vsel %vm127_vm0, %v145_v14, 0.0 }
  0x9b   :  { %148 = vadd.xlane.f32.xlu1 %v147_v15  ;;  %v133_v16 = vpop.xlane.xlu0 %132 }
  0x9c   :  { %v142_v17 = vmul.f32 %v1527_v10, %v133_v16 }
  0x9e   :  { %v144_v18 = vsub.f32 %v1523_v2, %v142_v17 }
  0xa0   :  { %v146_v19 = vmul.f32 %v144_v18, %v144_v18 }
  0xa2   :  { %v150_v20 = vsel %vm127_vm0, %v146_v19, 0.0 }
  0xa3   :  { %151 = vadd.xlane.f32.xlu1 %v150_v20 }
 0x10e   :  { %v149_v24 = vpop.xlane.xlu1 %148 }
 0x10f   :  { %v153_v27 = vmul.f32 %v149_v24, %v1527_v10 }
 0x111   :  { %v155_v29 = vadd.f32 1e-05, %v153_v27 }
 0x113   :  { %1218 = vrsqrt.f32 %v155_v29  ;;  %vm163_vm3 = vweird.f32 %v155_v29 }
 0x116   :  { %v152_v30 = vpop.xlane.xlu1 %151 }
 0x117   :  { %v154_v31 = vmul.f32 %v152_v30, %v1527_v10 }
 0x119   :  { %v1219_v32 = vpop.eup %1218  ;;  %v156_v33 = vadd.f32 1e-05, %v154_v31 }
 0x11a   :  { %v158_v34 = vmul.f32 %v1219_v32, %v155_v29  ;;  %vm164_vm2 = vweird.f32 %v1219_v32 }
 0x11b   :  { %1220 = vrsqrt.f32 %v156_v33  ;;  %vm165_vm4 = vmor %vm163_vm3, %vm164_vm2  ;;  %vm173_vm6 = vweird.f32 %v156_v33 }
 0x11c   :  { %v159_v35 = vmul.f32 %v1219_v32, %v158_v34 }
 0x11e   :  { %v160_v36 = vmul.f32 0.5, %v159_v35 }
 0x120   :  { %v161_v37 = vsub.f32 1.5, %v160_v36 }
 0x121   :  { %v1221_v38 = vpop.eup %1220 }
 0x122   :  { %v162_v39 = vmul.f32 %v1219_v32, %v161_v37  ;;  %v168_v40 = vmul.f32 %v1221_v38, %v156_v33  ;;  %vm174_vm5 = vweird.f32 %v1221_v38 }
 0x123   :  { %vm175_vm7 = vmor %vm173_vm6, %vm174_vm5  ;;  %vm1032_vm6 = vcmask 523264  }
 0x124   :  { %v169_v41 = vmul.f32 %v1221_v38, %v168_v40  ;;  %v166_v42 = vsel %vm165_vm4, %v1219_v32, %v162_v39 }
 0x125   :  { %v177_v45 = vmul.f32 %v166_v42, %v143_v13 }
 0x126   :  { %v170_v43 = vmul.f32 0.5, %v169_v41 }
 0x127   :  { %v182_v50 = vmul.f32 %v1206_v46, %v177_v45 }
 0x128   :  { %v171_v44 = vsub.f32 1.5, %v170_v43 }
 0x129   :  { %v187_v53 = vadd.f32 %v1207_v51, %v182_v50 }
 0x12a   :  { %v172_v47 = vmul.f32 %v1221_v38, %v171_v44 }
 0x12c   :  { %v176_v48 = vsel %vm175_vm7, %v1221_v38, %v172_v47 }
 0x12d   :  { %v178_v49 = vmul.f32 %v176_v48, %v144_v18 }
 0x12f   :  { %v183_v52 = vmul.f32 %v1206_v46, %v178_v49 }
 0x131   :  { %v188_v54 = vadd.f32 %v1207_v51, %v183_v52 }
 0x133   :  { %v189_v55 = vpack.c.bf16 %v188_v54, %v187_v53 }
 0x135   :  { %1100 = vmatmul.msk.bf16.vlgmr.msra.gmra.mxu0 %vm127_vm0, %v189_v55  ;;  %1109 = vmatmul.msk.bf16.vlgmr.msra.gmra.mxu1 %vm127_vm0, %v189_v55 }
 0x136   :  { %1118 = vmatmul.msk.bf16.vlgmr.msra.gmra.mxu2 %vm127_vm0, %v189_v55 }
 0x1b2   :  { %v222_v58 = vpop.f32.mrf.mxu0  ;;  %v256_v59 = vpop.f32.mrf.mxu1 }
 0x1b3   :  { %v223_v60 = vadd.f32 %v1208_v56, %v222_v58  ;;  %v257_v61 = vadd.f32 %v1209_v57, %v256_v59 }
 0x1b5   :  { %v299_v62 = vpack.c.bf16 %v257_v61, %v257_v61  ;;  %v295_v63 = vmul.f32 0.35355338, %v223_v60 }
 0x1b7   :  { %v361_v3 = vunpack.c.l.b16 %v299_v62  ;;  %v308_v4 = vsel %vm303_vm8, %v299_v62, 0  ;;  %v297_v7 = vpack.c.bf16 %v295_v63, %v295_v63 }
 0x1b8   :  { %317 = vmatpush.bf16.xpose.msra.mxu3 %v308_v4 }
 0x1b9   :  { %v362_v5 = vpack.c.b16 %v361_v3, %v361_v3  ;;  %v290_v6 = vpop.f32.mrf.mxu2  ;;  %v356_v17 = vunpack.c.l.b16 %v297_v7 }
 0x1ba   :  { %v291_v8 = vadd.f32 %v1564_v1, %v290_v6  ;;  %v224_v9 = vpop.f32.mrf.mxu0  ;;  %v258_v11 = vpop.f32.mrf.mxu1 }
 0x1bb   :  { %v225_v12 = vadd.f32 %v1208_v56, %v224_v9  ;;  %v259_v13 = vadd.f32 %v1209_v57, %v258_v11  ;;  %478 = vrot.lane.b32.xlu1 %v362_v5, %s1401_s4  ;;  %422 = vrot.lane.b32.xlu0 %v362_v5, %s1402_s6  ;;  %v357_v23 = vpack.c.b16 %v356_v17, %v356_v17 }
 0x1bc   :  { %v1570_v14 = vpack.c.bf16 %v291_v8, %v291_v8  ;;  %363 = vrot.lane.b32.xlu2 %v362_v5, %s1403_s8 }
 0x1bd   :  { %v296_v15 = vmul.f32 0.35355338, %v225_v12  ;;  %v300_v16 = vpack.c.bf16 %v259_v13, %v259_v13 }
 0x1be   :  { %v340_v18 = vsel %vm338_vm9, %v1570_v14, 0  ;;  %v397_v6 = vunpack.c.l.b16 %v1570_v14 }
 0x1bf   :  { %v298_v19 = vpack.c.bf16 %v296_v15, %v296_v15  ;;  %v606_v20 = vunpack.c.l.b16 %v300_v16  ;;  %349 = vmatpush.bf16.msrb.mxu0 %v340_v18  ;;  %1119 = vmatmul.msk.bf16.vlgmr.msra.gmra.mxu3 %vm303_vm8, %v297_v7  ;;  %v554_v34 = vsel %vm303_vm8, %v300_v16, 0 }
 0x1c0   :  { %v398_v8 = vpack.c.b16 %v397_v6, %v397_v6 }
 0x1c1   :  { %v601_v21 = vunpack.c.l.b16 %v298_v19  ;;  %v607_v22 = vpack.c.b16 %v606_v20, %v606_v20 }
 0x1c3   :  { %723 = vrot.lane.b32.xlu1 %v607_v22, %s1401_s4  ;;  %v602_v24 = vpack.c.b16 %v601_v21, %v601_v21 }
 0x1c4   :  { %358 = vrot.lane.b32.xlu2 %v357_v23, %s1403_s8 }
 0x1c5   :  { %603 = vrot.lane.b32.xlu0 %v602_v24, %s1403_s8 }
 0x1cc   :  { %420 = vrot.lane.b32.xlu2 %v357_v23, %s1402_s6 }
 0x1cd   :  { %665 = vrot.lane.b32.xlu0 %v602_v24, %s1402_s6 }
 0x1d4   :  { %476 = vrot.lane.b32.xlu2 %v357_v23, %s1401_s4 }
 0x1dc   :  { %608 = vrot.lane.b32.xlu2 %v607_v22, %s1403_s8 }
 0x1e4   :  { %667 = vrot.lane.b32.xlu2 %v607_v22, %s1402_s6 }
 0x1ec   :  { %721 = vrot.lane.b32.xlu2 %v602_v24, %s1401_s4 }
 0x216   :  { %v364_v25 = vpop.permute.xlu2 %363 }
 0x217   :  { %v369_v26 = vsel %vm303_vm8, %v364_v25, 0 }
 0x218   :  { %378 = vmatpush.bf16.xpose.msrb.mxu1 %v369_v26 }
 0x21e   :  { %v359_v27 = vpop.permute.xlu2 %358 }
 0x21f   :  { %1121 = vmatmul.msk.bf16.vlgmr.msrb.gmra.mxu1 %vm303_vm8, %v359_v27 }
 0x226   :  { %v421_v28 = vpop.permute.xlu2 %420 }
 0x22d   :  { %v479_v29 = vpop.permute.xlu1 %478  ;;  %v423_v30 = vpop.permute.xlu0 %422 }
 0x22e   :  { %v484_v31 = vsel %vm303_vm8, %v479_v29, 0  ;;  %v477_v32 = vpop.permute.xlu2 %476  ;;  %v428_v33 = vsel %vm303_vm8, %v423_v30, 0 }
 0x22f   :  { %437 = vmatpush.bf16.xpose.msrb.mxu3 %v428_v33  ;;  %493 = vmatpush.bf16.xpose.msra.mxu1 %v484_v31 }
 0x235   :  { %v724_v35 = vpop.permute.xlu1 %723 }
 0x236   :  { %v729_v36 = vsel %vm303_vm8, %v724_v35, 0  ;;  %v609_v37 = vpop.permute.xlu2 %608  ;;  %1123 = vmatmul.msk.bf16.vlgmr.msrb.gmra.mxu3 %vm303_vm8, %v421_v28  ;;  %1125 = vmatmul.msk.bf16.vlgmr.msra.gmra.mxu1 %vm303_vm8, %v477_v32 }
 0x237   :  { %563 = vmatpush.bf16.xpose.msra.mxu3 %v554_v34  ;;  %v614_v38 = vsel %vm303_vm8, %v609_v37, 0  ;;  %v604_v43 = vpop.permute.xlu0 %603 }
 0x238   :  { %623 = vmatpush.bf16.xpose.msrb.mxu1 %v614_v38 }
 0x23e   :  { %v668_v39 = vpop.permute.xlu2 %667 }
 0x23f   :  { %v673_v40 = vsel %vm303_vm8, %v668_v39, 0  ;;  %v666_v45 = vpop.permute.xlu0 %665 }
 0x240   :  { %738 = vmatpush.bf16.xpose.msra.mxu1 %v729_v36  ;;  %682 = vmatpush.bf16.xpose.msrb.mxu3 %v673_v40 }
 0x242   :  { %v319_v41 = vpop.f32.mrf.mxu3 }
 0x243   :  { %v323_v42 = vsel %vm303_vm8, %v319_v41, -inf }
 0x244   :  { %324 = vmax.xlane.f32.xlu0 %v323_v42 }
 0x246   :  { %1127 = vmatmul.msk.bf16.vlgmr.msra.gmra.mxu3 %vm303_vm8, %v298_v19  ;;  %1129 = vmatmul.msk.bf16.vlgmr.msrb.gmra.mxu1 %vm303_vm8, %v604_v43  ;;  %v722_v46 = vpop.permute.xlu2 %721 }
 0x24a   :  { %v321_v44 = vpop.f32.mrf.mxu3 }
 0x256   :  { %1131 = vmatmul.msk.bf16.vlgmr.msrb.gmra.mxu3 %vm303_vm8, %v666_v45  ;;  %1133 = vmatmul.msk.bf16.vlgmr.msra.gmra.mxu1 %vm303_vm8, %v722_v46 }
 0x29c   :  { %v380_v47 = vpop.f32.mrf.mxu1 }
 0x29d   :  { %v384_v48 = vsel %vm303_vm8, %v380_v47, -inf }
 0x29e   :  { %385 = vmax.xlane.f32.xlu1 %v384_v48 }
 0x2a4   :  { %v382_v49 = vpop.f32.mrf.mxu1 }
 0x2b3   :  { %v495_v50 = vpop.f32.mrf.mxu1 }
 0x2b4   :  { %v499_v51 = vsel %vm303_vm8, %v495_v50, -inf }
 0x2b5   :  { %500 = vmax.xlane.f32.xlu2 %v499_v51 }
 0x2b7   :  { %v325_v52 = vpop.xlane.xlu0 %324 }
 0x2b8   :  { %v326_v53 = vsub.f32 %v319_v41, %v325_v52  ;;  %v292_v41 = vpop.f32.mrf.mxu2 }
 0x2b9   :  { %v439_v54 = vpop.f32.mrf.mxu3  ;;  %v293_v43 = vadd.f32 %v1564_v1, %v292_v41 }
 0x2ba   :  { %v327_v55 = vmul.f32 1.442695, %v326_v53  ;;  %v443_v56 = vsel %vm303_vm8, %v439_v54, -inf }
 0x2bb   :  { %v497_v57 = vpop.f32.mrf.mxu1  ;;  %444 = vmax.xlane.f32.xlu1 %v443_v56  ;;  %v302_v45 = vpack.c.bf16 %v293_v43, %v293_v43 }
 0x2bc   :  { %1222 = vpow2.f32 %v327_v55 }
 0x2bd   :  { %v642_v49 = vunpack.c.l.b16 %v302_v45 }
 0x2bf   :  { %v643_v1 = vpack.c.b16 %v642_v49, %v642_v49 }
 0x2c1   :  { %v441_v58 = vpop.f32.mrf.mxu3 }
 0x2c2   :  { %v1223_v59 = vpop.eup %1222 }
 0x2c3   :  { %v625_v60 = vpop.f32.mrf.mxu1  ;;  %v329_v61 = vsel %vm303_vm8, %v1223_v59, 0.0 }
 0x2c4   :  { %330 = vadd.xlane.f32.xlu1 %v329_v61  ;;  %v629_v62 = vsel %vm303_vm8, %v625_v60, -inf }
 0x2c5   :  { %630 = vmax.xlane.f32.xlu0 %v629_v62 }
 0x2c9   :  { %v565_v63 = vpop.f32.mrf.mxu3 }
 0x2ca   :  { %v569_v3 = vsel %vm303_vm8, %v565_v63, -inf }
 0x2cb   :  { %v627_v4 = vpop.f32.mrf.mxu1  ;;  %570 = vmax.xlane.f32.xlu2 %v569_v3 }
 0x2d1   :  { %v567_v5 = vpop.f32.mrf.mxu3 }
 0x2d3   :  { %v1607_v7 = vpop.f32.mrf.mxu1 }
 0x2d4   :  { %v744_v15 = vsel %vm303_vm8, %v1607_v7, -inf }
 0x2d9   :  { %399 = vrot.lane.b32.xlu0 %v398_v8, %s1403_s8  ;;  %v684_v9 = vpop.f32.mrf.mxu3 }
 0x2da   :  { %v688_v11 = vsel %vm303_vm8, %v684_v9, -inf }
 0x2db   :  { %v742_v12 = vpop.f32.mrf.mxu1  ;;  %689 = vmax.xlane.f32.xlu2 %v688_v11 }
 0x2dd   :  { %455 = vrot.lane.b32.xlu1 %v398_v8, %s1402_s6 }
 0x2e1   :  { %v686_v13 = vpop.f32.mrf.mxu3 }
 0x2f3   :  { %511 = vrot.lane.b32.xlu2 %v398_v8, %s1401_s4 }
 0x307   :  { %745 = vmax.xlane.f32.xlu1 %v744_v15 }
 0x311   :  { %v386_v14 = vpop.xlane.xlu1 %385 }
 0x312   :  { %v387_v16 = vsub.f32 %v380_v47, %v386_v14 }
 0x314   :  { %v388_v17 = vmul.f32 1.442695, %v387_v16 }
 0x316   :  { %1224 = vpow2.f32 %v388_v17 }
 0x31c   :  { %v1615_v18 = vpop.eup %1224 }
 0x31d   :  { %v390_v19 = vsel %vm303_vm8, %v1615_v18, 0.0 }
 0x31e   :  { %391 = vadd.xlane.f32.xlu0 %v390_v19 }
 0x328   :  { %v501_v20 = vpop.xlane.xlu2 %500 }
 0x329   :  { %v502_v21 = vsub.f32 %v495_v50, %v501_v20 }
 0x32b   :  { %v503_v22 = vmul.f32 1.442695, %v502_v21 }
 0x32d   :  { %1226 = vpow2.f32 %v503_v22 }
 0x32e   :  { %v445_v23 = vpop.xlane.xlu1 %444 }
 0x32f   :  { %v446_v24 = vsub.f32 %v439_v54, %v445_v23  ;;  %v585_v54 = vsel %vm338_vm9, %v302_v45, 0 }
 0x331   :  { %v447_v25 = vmul.f32 1.442695, %v446_v24 }
 0x333   :  { %v1619_v26 = vpop.eup %1226  ;;  %1228 = vpow2.f32 %v447_v25 }
 0x334   :  { %v505_v27 = vsel %vm303_vm8, %v1619_v26, 0.0 }
 0x335   :  { %506 = vadd.xlane.f32.xlu2 %v505_v27 }
 0x337   :  { %v331_v28 = vpop.xlane.xlu1 %330 }
 0x338   :  { %1230 = vrcp.f32 %v331_v28  ;;  %v631_v29 = vpop.xlane.xlu0 %630 }
 0x339   :  { %v1623_v30 = vpop.eup %1228  ;;  %v632_v31 = vsub.f32 %v625_v60, %v631_v29 }
 0x33a   :  { %v449_v32 = vsel %vm303_vm8, %v1623_v30, 0.0 }
 0x33b   :  { %v633_v33 = vmul.f32 1.442695, %v632_v31  ;;  %450 = vadd.xlane.f32.xlu1 %v449_v32 }
 0x33d   :  { %1232 = vpow2.f32 %v633_v33 }
 0x33e   :  { %v1231_v34 = vpop.eup %1230  ;;  %v571_v35 = vpop.xlane.xlu2 %570 }
 0x33f   :  { %v333_v36 = vmul.f32 %v1231_v34, %v1223_v59  ;;  %v572_v37 = vsub.f32 %v565_v63, %v571_v35 }
 0x341   :  { %v573_v38 = vmul.f32 1.442695, %v572_v37  ;;  %v334_v39 = vpack.c.bf16 %v333_v36, %v333_v36 }
 0x343   :  { %v1627_v40 = vpop.eup %1232  ;;  %1234 = vpow2.f32 %v573_v38  ;;  %1120 = vmatmul.msk.bf16.vlgmr.msrb.gmra.mxu0 %vm303_vm8, %v334_v39 }
 0x344   :  { %v635_v42 = vsel %vm303_vm8, %v1627_v40, 0.0 }
 0x345   :  { %636 = vadd.xlane.f32.xlu0 %v635_v42 }
 0x349   :  { %v1235_v44 = vpop.eup %1234 }
 0x34a   :  { %v575_v46 = vsel %vm303_vm8, %v1235_v44, 0.0 }
 0x34b   :  { %v400_v47 = vpop.permute.xlu0 %399  ;;  %576 = vadd.xlane.f32.xlu2 %v575_v46 }
 0x34c   :  { %v405_v48 = vsel %vm338_vm9, %v400_v47, 0 }
 0x34d   :  { %414 = vmatpush.bf16.msrb.mxu2 %v405_v48 }
 0x34e   :  { %v690_v50 = vpop.xlane.xlu2 %689 }
 0x34f   :  { %v691_v51 = vsub.f32 %v684_v9, %v690_v50  ;;  %v456_v52 = vpop.permute.xlu1 %455 }
 0x350   :  { %v461_v53 = vsel %vm338_vm9, %v456_v52, 0 }
 0x351   :  { %v692_v55 = vmul.f32 1.442695, %v691_v51  ;;  %470 = vmatpush.bf16.msra.mxu0 %v461_v53 }
 0x353   :  { %1236 = vpow2.f32 %v692_v55 }
 0x354   :  { %644 = vrot.lane.b32.xlu1 %v643_v1, %s1403_s8 }
 0x355   :  { %594 = vmatpush.bf16.msrb.mxu0 %v585_v54 }
 0x356   :  { %v512_v56 = vpop.permute.xlu2 %511 }
 0x357   :  { %v517_v57 = vsel %vm338_vm9, %v512_v56, 0 }
 0x358   :  { %526 = vmatpush.bf16.msra.mxu2 %v517_v57 }
 0x359   :  { %v1237_v58 = vpop.eup %1236 }
 0x35a   :  { %v694_v59 = vsel %vm303_vm8, %v1237_v58, 0.0 }
 0x35b   :  { %695 = vadd.xlane.f32.xlu0 %v694_v59 }
 0x363   :  { %700 = vrot.lane.b32.xlu2 %v643_v1, %s1402_s6 }
 0x36f   :  { %756 = vrot.lane.b32.xlu0 %v643_v1, %s1401_s4 }
 0x37a   :  { %v746_v60 = vpop.xlane.xlu1 %745 }
 0x37b   :  { %v747_v61 = vsub.f32 %v1607_v7, %v746_v60 }
 0x37d   :  { %v748_v62 = vmul.f32 1.442695, %v747_v61 }
 0x37f   :  { %1238 = vpow2.f32 %v748_v62  ;;  %v1180_v62 = vld [vmem:[#allocation10] sm:$0xff] }
 0x385   :  { %v1239_v63 = vpop.eup %1238 }
 0x386   :  { %v750_v3 = vsel %vm303_vm8, %v1239_v63, 0.0 }
 0x387   :  { %751 = vadd.xlane.f32.xlu1 %v750_v3  ;;  %v1407_v3 = vmov 0.0  }
 0x391   :  { %v392_v4 = vpop.xlane.xlu0 %391 }
 0x392   :  { %1240 = vrcp.f32 %v392_v4 }
 0x398   :  { %v1241_v5 = vpop.eup %1240 }
 0x399   :  { %v394_v6 = vmul.f32 %v1241_v5, %v1615_v18 }
 0x39b   :  { %v395_v8 = vpack.c.bf16 %v394_v6, %v394_v6 }
 0x39d   :  { %1122 = vmatmul.msk.bf16.vlgmr.msrb.gmra.mxu2 %vm303_vm8, %v395_v8 }
 0x3a8   :  { %v507_v9 = vpop.xlane.xlu2 %506 }
 0x3a9   :  { %1242 = vrcp.f32 %v507_v9 }
 0x3ae   :  { %v451_v11 = vpop.xlane.xlu1 %450 }
 0x3af   :  { %v1243_v12 = vpop.eup %1242  ;;  %1244 = vrcp.f32 %v451_v11 }
 0x3b0   :  { %v509_v7 = vmul.f32 %v1243_v12, %v1619_v26 }
 0x3b2   :  { %v510_v13 = vpack.c.bf16 %v509_v7, %v509_v7  ;;  %v1211_v7 = vld [vmem:[%s1733_s10] ss:$0 sm:$0xff] }
 0x3b4   :  { %1126 = vmatmul.msk.bf16.vlgmr.msra.gmra.mxu2 %vm303_vm8, %v510_v13 }
 0x3b5   :  { %v1245_v15 = vpop.eup %1244 }
 0x3b6   :  { %v453_v14 = vmul.f32 %v1245_v15, %v1623_v30 }
 0x3b8   :  { %v454_v16 = vpack.c.bf16 %v453_v14, %v453_v14  ;;  %v637_v17 = vpop.xlane.xlu0 %636 }
 0x3b9   :  { %1246 = vrcp.f32 %v637_v17 }
 0x3ba   :  { %1124 = vmatmul.msk.bf16.vlgmr.msra.gmra.mxu0 %vm303_vm8, %v454_v16 }
 0x3be   :  { %v577_v18 = vpop.xlane.xlu2 %576 }
 0x3bf   :  { %1248 = vrcp.f32 %v577_v18  ;;  %v1247_v20 = vpop.eup %1246 }
 0x3c0   :  { %v351_v19 = vpop.f32.mrf.mxu0  ;;  %v639_v22 = vmul.f32 %v1247_v20, %v1627_v40 }
 0x3c2   :  { %v640_v30 = vpack.c.bf16 %v639_v22, %v639_v22 }
 0x3c5   :  { %v1249_v21 = vpop.eup %1248 }
 0x3c6   :  { %v579_v23 = vmul.f32 %v1249_v21, %v1235_v44  ;;  %v645_v24 = vpop.permute.xlu1 %644  ;;  %v701_v25 = vpop.permute.xlu2 %700 }
 0x3c7   :  { %v650_v26 = vsel %vm338_vm9, %v645_v24, 0  ;;  %v706_v27 = vsel %vm338_vm9, %v701_v25, 0 }
 0x3c8   :  { %v580_v28 = vpack.c.bf16 %v579_v23, %v579_v23  ;;  %v353_v29 = vpop.f32.mrf.mxu0  ;;  %659 = vmatpush.bf16.msrb.mxu2 %v650_v26  ;;  %715 = vmatpush.bf16.msra.mxu0 %v706_v27 }
 0x3ca   :  { %1128 = vmatmul.msk.bf16.vlgmr.msrb.gmra.mxu0 %vm303_vm8, %v580_v28 }
 0x3cb   :  { %1130 = vmatmul.msk.bf16.vlgmr.msrb.gmra.mxu2 %vm303_vm8, %v640_v30 }
 0x3ce   :  { %v696_v31 = vpop.xlane.xlu0 %695 }
 0x3cf   :  { %1250 = vrcp.f32 %v696_v31 }
 0x3d5   :  { %v1251_v32 = vpop.eup %1250 }
 0x3d6   :  { %v698_v33 = vmul.f32 %v1251_v32, %v1237_v58  ;;  %v1181_v58 = vld [vmem:[#allocation10 + $0x8] sm:$0xff]  ;;  %v1184_v32 = vld [vmem:[#allocation11 + $0x8] sm:$0xff] }
 0x3d7   :  { %825 = vmatpush.bf16.msra.mxu3 %v1181_v58  ;;  %937 = vmatpush.bf16.msrb.mxu0 %v1184_v32 }
 0x3d8   :  { %v699_v34 = vpack.c.bf16 %v698_v33, %v698_v33 }
 0x3da   :  { %1132 = vmatmul.msk.bf16.vlgmr.msra.gmra.mxu0 %vm303_vm8, %v699_v34 }
 0x3db   :  { %826 = vmatpush.bf16.msra.mxu3 %v1180_v62 }
 0x3e1   :  { %v757_v35 = vpop.permute.xlu0 %756 }
 0x3e2   :  { %v762_v36 = vsel %vm338_vm9, %v757_v35, 0  ;;  %v1183_v35 = vld [vmem:[#allocation11] sm:$0xff] }
 0x3e3   :  { %771 = vmatpush.bf16.msra.mxu2 %v762_v36  ;;  %938 = vmatpush.bf16.msrb.mxu0 %v1183_v35 }
 0x3fa   :  { %v752_v37 = vpop.xlane.xlu1 %751 }
 0x3fb   :  { %1252 = vrcp.f32 %v752_v37 }
 0x401   :  { %v1253_v38 = vpop.eup %1252 }
 0x402   :  { %v754_v39 = vmul.f32 %v1253_v38, %v1239_v63 }
 0x404   :  { %v755_v40 = vpack.c.bf16 %v754_v39, %v754_v39 }
 0x406   :  { %1134 = vmatmul.msk.bf16.vlgmr.msra.gmra.mxu2 %vm303_vm8, %v755_v40 }
 0x420   :  { %v416_v41 = vpop.f32.mrf.mxu2 }
 0x421   :  { %533 = vrot.lane.b32.xlu1 %v416_v41, %s1404_s28 }
 0x428   :  { %v418_v42 = vpop.f32.mrf.mxu2 }
 0x437   :  { %v472_v43 = vpop.f32.mrf.mxu0  ;;  %v528_v44 = vpop.f32.mrf.mxu2 }
 0x438   :  { %537 = vrot.lane.b32.xlu0 %v472_v43, %s1405_s9 }
 0x43f   :  { %v474_v45 = vpop.f32.mrf.mxu0  ;;  %v530_v46 = vpop.f32.mrf.mxu2 }
 0x440   :  { %v1212_v45 = vld [vmem:[%s1734_s11] ss:$0 sm:$0xff] }
 0x447   :  { %v596_v47 = vpop.f32.mrf.mxu0 }
 0x44e   :  { %v661_v48 = vpop.f32.mrf.mxu2 }
 0x44f   :  { %778 = vrot.lane.b32.xlu0 %v661_v48, %s1404_s28  ;;  %v598_v49 = vpop.f32.mrf.mxu0 }
 0x456   :  { %v663_v50 = vpop.f32.mrf.mxu2 }
 0x457   :  { %541 = vrot.lane.b32.xlu0 %v528_v44, %s1406_s0  ;;  %v717_v51 = vpop.f32.mrf.mxu0 }
 0x458   :  { %782 = vrot.lane.b32.xlu2 %v717_v51, %s1405_s9 }
 0x45f   :  { %v719_v52 = vpop.f32.mrf.mxu0 }
 0x489   :  { %v773_v53 = vpop.f32.mrf.mxu2 }
 0x48a   :  { %786 = vrot.lane.b32.xlu2 %v773_v53, %s1406_s0 }
 0x491   :  { %v775_v54 = vpop.f32.mrf.mxu2 }
 0x493   :  { %v534_v56 = vpop.permute.xlu1 %533 }
 0x494   :  { %v544_v57 = vsel %vm303_vm8, %v351_v19, %v534_v56 }
 0x4aa   :  { %v538_v55 = vpop.permute.xlu0 %537 }
 0x4ab   :  { %v546_v59 = vsel %vm545_vm10, %v544_v57, %v538_v55 }
 0x4b2   :  { %v783_v4 = vpop.permute.xlu2 %782 }
 0x4c1   :  { %v779_v1 = vpop.permute.xlu0 %778 }
 0x4c2   :  { %v789_v5 = vsel %vm303_vm8, %v596_v47, %v779_v1  ;;  %v1213_v47 = vld [vmem:[%s1735_s12] ss:$0 sm:$0xff] }
 0x4c3   :  { %v790_v6 = vsel %vm545_vm10, %v789_v5, %v783_v4 }
 0x4c9   :  { %v542_v60 = vpop.permute.xlu0 %541 }
 0x4ca   :  { %v548_v61 = vsel %vm547_vm11, %v546_v59, %v542_v60  ;;  %v1214_v60 = vld [vmem:[%s1737_s14] ss:$0 sm:$0xff] }
 0x4cb   :  { %549 = vst.msk [vmem:[#allocation2] sm:$0xff] %vm127_vm0, %v548_v61 }
 0x4d2   :  { %v793_v63 = vld [vmem:[#allocation2] sm:$0xff] }
 0x4d3   :  { %898 = vst.msk [vmem:[#allocation2] sm:$0xff] %vm127_vm0, %v1407_v3 }
 0x4e4   :  { %v787_v8 = vpop.permute.xlu2 %786 }
 0x4e5   :  { %v791_v9 = vsel %vm547_vm11, %v790_v6, %v787_v8  ;;  %v1188_v6 = vld [vmem:[%s1738_s15 + $0x18] sm:$0xff] }
 0x4e6   :  { %792 = vst.msk [vmem:[#allocation2 + $0x8] sm:$0xff] %vm127_vm0, %v791_v9  ;;  %1040 = vmatpush.bf16.msrb.mxu1 %v1188_v6 }
 0x4ed   :  { %v794_v11 = vld [vmem:[#allocation2 + $0x8] sm:$0xff] }
 0x4ee   :  { %899 = vst.msk [vmem:[#allocation2 + $0x8] sm:$0xff] %vm127_vm0, %v1407_v3  ;;  %v795_v12 = vpack.c.bf16 %v794_v11, %v793_v63 }
 0x4f0   :  { %1143 = vmatmul.msk.bf16.vlgmr.msra.gmra.mxu3 %vm127_vm0, %v795_v12  ;;  %v1187_v12 = vld [vmem:[%s1738_s15 + $0x10] sm:$0xff] }
 0x4f1   :  { %1041 = vmatpush.bf16.msrb.mxu1 %v1187_v12 }
 0x573   :  { %v828_v13 = vpop.f32.mrf.mxu3 }
 0x574   :  { %v829_v15 = vadd.f32 %v1211_v7, %v828_v13 }
 0x576   :  { %v833_v14 = vadd.f32 %v829_v15, %v1516_v0  ;;  %v1186_v15 = vld [vmem:[%s1738_s15 + $0x8] sm:$0xff] }
 0x577   :  { %1042 = vmatpush.bf16.msrb.mxu1 %v1186_v15 }
 0x578   :  { %835 = vst.msk [vmem:[#allocation3] sm:$0xff] %vm127_vm0, %v833_v14  ;;  %v839_v16 = vsel %vm127_vm0, %v833_v14, 0.0 }
 0x579   :  { %840 = vadd.xlane.f32.xlu1 %v839_v16 }
 0x57b   :  { %v830_v17 = vpop.f32.mrf.mxu3 }
 0x57c   :  { %v831_v18 = vadd.f32 %v1211_v7, %v830_v17 }
 0x57e   :  { %v834_v19 = vadd.f32 %v831_v18, %v1523_v2 }
 0x580   :  { %836 = vst.msk [vmem:[#allocation3 + $0x8] sm:$0xff] %vm127_vm0, %v834_v19  ;;  %v842_v20 = vsel %vm127_vm0, %v834_v19, 0.0 }
 0x581   :  { %843 = vadd.xlane.f32.xlu0 %v842_v20  ;;  %v1185_v20 = vld [vmem:[%s1738_s15] sm:$0xff] }
 0x582   :  { %1043 = vmatpush.bf16.msrb.mxu1 %v1185_v20 }
 0x5ec   :  { %v841_v21 = vpop.xlane.xlu1 %840 }
 0x5ed   :  { %v845_v22 = vmul.f32 %v841_v21, %v1527_v10 }
 0x5ef   :  { %v847_v23 = vsub.f32 %v833_v14, %v845_v22 }
 0x5f1   :  { %v849_v24 = vmul.f32 %v847_v23, %v847_v23 }
 0x5f3   :  { %v851_v0 = vsel %vm127_vm0, %v849_v24, 0.0 }
 0x5f4   :  { %v844_v25 = vpop.xlane.xlu0 %843  ;;  %852 = vadd.xlane.f32.xlu2 %v851_v0 }
 0x5f5   :  { %v846_v26 = vmul.f32 %v844_v25, %v1527_v10 }
 0x5f7   :  { %v848_v27 = vsub.f32 %v834_v19, %v846_v26 }
 0x5f9   :  { %v850_v28 = vmul.f32 %v848_v27, %v848_v27 }
 0x5fb   :  { %v854_v2 = vsel %vm127_vm0, %v850_v28, 0.0 }
 0x5fc   :  { %855 = vadd.xlane.f32.xlu1 %v854_v2 }
 0x667   :  { %v853_v29 = vpop.xlane.xlu2 %852 }
 0x668   :  { %v857_v30 = vmul.f32 %v853_v29, %v1527_v10 }
 0x66a   :  { %v859_v31 = vadd.f32 1e-05, %v857_v30 }
 0x66c   :  { %1254 = vrsqrt.f32 %v859_v31  ;;  %vm867_vm13 = vweird.f32 %v859_v31 }
 0x66f   :  { %v856_v33 = vpop.xlane.xlu1 %855 }
 0x670   :  { %v858_v34 = vmul.f32 %v856_v33, %v1527_v10 }
 0x672   :  { %v1255_v36 = vpop.eup %1254  ;;  %v860_v37 = vadd.f32 1e-05, %v858_v34 }
 0x673   :  { %v862_v38 = vmul.f32 %v1255_v36, %v859_v31  ;;  %vm868_vm12 = vweird.f32 %v1255_v36 }
 0x674   :  { %1256 = vrsqrt.f32 %v860_v37  ;;  %vm869_vm14 = vmor %vm867_vm13, %vm868_vm12  ;;  %vm877_vm2 = vweird.f32 %v860_v37 }
 0x675   :  { %v863_v39 = vmul.f32 %v1255_v36, %v862_v38 }
 0x677   :  { %v864_v40 = vmul.f32 0.5, %v863_v39 }
 0x679   :  { %v865_v41 = vsub.f32 1.5, %v864_v40 }
 0x67a   :  { %v1257_v42 = vpop.eup %1256 }
 0x67b   :  { %v866_v43 = vmul.f32 %v1255_v36, %v865_v41  ;;  %v872_v44 = vmul.f32 %v1257_v42, %v860_v37  ;;  %vm878_vm15 = vweird.f32 %v1257_v42 }
 0x67c   :  { %vm879_vm3 = vmor %vm877_vm2, %vm878_vm15 }
 0x67d   :  { %v870_v10 = vsel %vm869_vm14, %v1255_v36, %v866_v43  ;;  %v873_v46 = vmul.f32 %v1257_v42, %v872_v44 }
 0x67e   :  { %v881_v48 = vmul.f32 %v870_v10, %v847_v23 }
 0x67f   :  { %v874_v49 = vmul.f32 0.5, %v873_v46 }
 0x680   :  { %v886_v50 = vmul.f32 %v1212_v45, %v881_v48 }
 0x681   :  { %v875_v51 = vsub.f32 1.5, %v874_v49 }
 0x682   :  { %v891_v52 = vadd.f32 %v1213_v47, %v886_v50 }
 0x683   :  { %v876_v53 = vmul.f32 %v1257_v42, %v875_v51 }
 0x684   :  { %v893_v54 = vpack.c.bf16 %v891_v52, %v891_v52 }
 0x685   :  { %v880_v55 = vsel %vm879_vm3, %v1257_v42, %v876_v53 }
 0x686   :  { %896 = vst.msk [vmem:[#allocation4] sm:$0xf] %vm895_vm1, %v893_v54  ;;  %v882_v1 = vmul.f32 %v880_v55, %v848_v27 }
 0x688   :  { %v887_v56 = vmul.f32 %v1212_v45, %v882_v1  ;;  %v1408_v45 = vmov -1.0  }
 0x68a   :  { %v892_v57 = vadd.f32 %v1213_v47, %v887_v56 }
 0x68c   :  { %v894_v58 = vpack.c.bf16 %v892_v57, %v892_v57  ;;  %v997_v57 = vld [vmem:[#allocation2] sm:$0xff] }
 0x68e   :  { %897 = vst.msk [vmem:[#allocation4 + $0x4] sm:$0xf] %vm895_vm1, %v894_v58 }
 0x695   :  { %v1182_v59 = vld [vmem:[#allocation4] sm:$0xff] }
 0x696   :  { %1156 = vmatmul.msk.bf16.vlgmr.msrb.gmra.mxu0 %vm127_vm0, %v1182_v59 }
 0x713   :  { %v940_v61 = vpop.f32.mrf.mxu0 }
 0x714   :  { %v1696_v62 = vadd.f32 %v1214_v60, %v940_v61  ;;  %v1215_v61 = vld [vmem:[%s1739_s16] ss:$0 sm:$0xff]  ;;  %s1410_s16 = smov 128  }
 0x716   :  { %v947_v63 = vmul.f32 0.70710677, %v1696_v62  ;;  %v945_v52 = vmul.f32 0.5, %v1696_v62 }
 0x718   :  { %v953_v3 = vand.u32 2147483647, %v947_v63  ;;  %vm949_vm4 = vcmp.ge.f32.partialorder %v947_v63, 0.0 }
 0x719   :  { %v951_v10 = vsel %vm949_vm4, 1.0, %v1408_v45 }
 0x71a   :  { %v955_v4 = vmul.f32 0.3275911, %v953_v3  ;;  %v979_v16 = vsub.f32 0.0, %v953_v3 }
 0x71b   :  { %v942_v5 = vpop.f32.mrf.mxu0 }
 0x71c   :  { %v957_v8 = vadd.f32 1.0, %v955_v4  ;;  %v943_v9 = vadd.f32 %v1214_v60, %v942_v5  ;;  %v981_v21 = vmul.f32 %v979_v16, %v953_v3  ;;  %v998_v60 = vld [vmem:[#allocation2 + $0x8] sm:$0xff]  ;;  %v1065_v5 = vld [vmem:[#allocation3] sm:$0xff] }
 0x71e   :  { %1258 = vrcp.f32 %v957_v8  ;;  %v948_v11 = vmul.f32 0.70710677, %v943_v9  ;;  %v983_v0 = vmul.f32 1.442695, %v981_v21  ;;  %v946_v53 = vmul.f32 0.5, %v943_v9 }
 0x720   :  { %v954_v7 = vand.u32 2147483647, %v948_v11  ;;  %vm950_vm5 = vcmp.ge.f32.partialorder %v948_v11, 0.0  ;;  %v1066_v11 = vld [vmem:[#allocation3 + $0x8] sm:$0xff] }
 0x721   :  { %v952_v49 = vsel %vm950_vm5, 1.0, %v1408_v45 }
 0x722   :  { %v956_v13 = vmul.f32 0.3275911, %v954_v7  ;;  %v980_v25 = vsub.f32 0.0, %v954_v7 }
 0x724   :  { %v1259_v14 = vpop.eup %1258  ;;  %v958_v17 = vadd.f32 1.0, %v956_v13  ;;  %v982_v29 = vmul.f32 %v980_v25, %v954_v7 }
 0x725   :  { %v961_v18 = vmul.f32 1.0614054, %v1259_v14 }
 0x726   :  { %1260 = vrcp.f32 %v958_v17  ;;  %v985_v34 = vmul.f32 1.442695, %v982_v29 }
 0x727   :  { %v963_v19 = vadd.f32 -1.4531521, %v961_v18  ;;  %1262 = vpow2.f32 %v983_v0 }
 0x728   :  { %1264 = vpow2.f32 %v985_v34 }
 0x729   :  { %v965_v22 = vmul.f32 %v1259_v14, %v963_v19 }
 0x72b   :  { %v967_v23 = vadd.f32 1.4214138, %v965_v22 }
 0x72c   :  { %v1261_v24 = vpop.eup %1260 }
 0x72d   :  { %v969_v26 = vmul.f32 %v1259_v14, %v967_v23  ;;  %v962_v27 = vmul.f32 1.0614054, %v1261_v24  ;;  %v1263_v37 = vpop.eup %1262 }
 0x72e   :  { %v1265_v44 = vpop.eup %1264 }
 0x72f   :  { %v971_v28 = vadd.f32 -0.28449672, %v969_v26  ;;  %v964_v2 = vadd.f32 -1.4531521, %v962_v27 }
 0x731   :  { %v973_v30 = vmul.f32 %v1259_v14, %v971_v28  ;;  %v966_v31 = vmul.f32 %v1261_v24, %v964_v2 }
 0x733   :  { %v975_v32 = vadd.f32 0.2548296, %v973_v30  ;;  %v968_v33 = vadd.f32 1.4214138, %v966_v31 }
 0x735   :  { %v977_v35 = vmul.f32 %v1259_v14, %v975_v32  ;;  %v970_v36 = vmul.f32 %v1261_v24, %v968_v33 }
 0x737   :  { %v987_v38 = vmul.f32 %v1263_v37, %v977_v35  ;;  %v972_v39 = vadd.f32 -0.28449672, %v970_v36 }
 0x739   :  { %v974_v40 = vmul.f32 %v1261_v24, %v972_v39  ;;  %v989_v41 = vsub.f32 1.0, %v987_v38 }
 0x73b   :  { %v976_v42 = vadd.f32 0.2548296, %v974_v40  ;;  %v991_v46 = vmul.f32 %v989_v41, %v951_v10 }
 0x73d   :  { %v978_v43 = vmul.f32 %v1261_v24, %v976_v42  ;;  %v993_v50 = vadd.f32 1.0, %v991_v46 }
 0x73f   :  { %v988_v47 = vmul.f32 %v1265_v44, %v978_v43  ;;  %v995_v55 = vmul.f32 %v993_v50, %v945_v52 }
 0x741   :  { %v990_v48 = vsub.f32 1.0, %v988_v47 }
 0x743   :  { %v992_v51 = vmul.f32 %v990_v48, %v952_v49 }
 0x745   :  { %v994_v54 = vadd.f32 1.0, %v992_v51 }
 0x747   :  { %v996_v1 = vmul.f32 %v994_v54, %v946_v53 }
 0x749   :  { %v999_v56 = vpack.c.bf16 %v996_v1, %v995_v55 }
 0x74b   :  { %1173 = vmatmul.msk.bf16.vlgmr.msrb.gmra.mxu1 %vm1032_vm6, %v999_v56 }
 0x7c8   :  { %v1045_v58 = vpop.f32.mrf.mxu1 }
 0x7c9   :  { %v1050_v59 = vadd.f32 %v1045_v58, %v997_v57 }
 0x7cb   :  { %1052 = vst.msk [vmem:[#allocation2] sm:$0xff] %vm127_vm0, %v1050_v59 }
 0x7d0   :  { %v1047_v63 = vpop.f32.mrf.mxu1 }
 0x7d1   :  { %v1051_v3 = vadd.f32 %v1047_v63, %v998_v60 }
 0x7d2   :  { %v1057_v62 = vld [vmem:[#allocation2] sm:$0xff] }
 0x7d3   :  { %1053 = vst.msk [vmem:[#allocation2 + $0x8] sm:$0xff] %vm127_vm0, %v1051_v3  ;;  %v1063_v4 = vadd.f32 %v1215_v61, %v1057_v62 }
 0x7d5   :  { %v1067_v6 = vadd.f32 %v1065_v5, %v1063_v4 }
 0x7d7   :  { %1069 = vst.msk [vmem:[#allocation13] sm:$0xff] %vm127_vm0, %v1067_v6 }
 0x7da   :  { %v1058_v8 = vld [vmem:[#allocation2 + $0x8] sm:$0xff] }
 0x7db   :  { %v1064_v9 = vadd.f32 %v1215_v61, %v1058_v8 }
 0x7dd   :  { %v1068_v12 = vadd.f32 %v1066_v11, %v1064_v9 }
 0x7df   :  { %1070 = vst.msk [vmem:[#allocation13 + $0x8] sm:$0xff] %vm127_vm0, %v1068_v12 }
 0x7e0   :  { %1083 = dma.vmem_to_hbm [thread:$0]  %s1076_s25, 256, %s1078_s26, [#allocation7], %s1410_s16, %s1410_s16, %s1404_s28  }
 0x7e1   :  { %1392 = dma.done.wait [#allocation7], 256  }
 0x7e2   :  { %1393 = vsyncadd [#allocation7], 4294967040 }
 0x7e3   :  { %1088 = vsyncpa [#allocation6], 1 }
 0x7e4   :  { %1089 = vsyncpa [#allocation9], 1 }
 0x7e5   :  { %1090 = vsyncpa [#allocation12], 1 }
 0x7e6   :  { %1091 = vsyncpa [#allocation7], 1 }

// kernel: tpu_custom_call.1
= control target key start
LH: loop header
LB: loop body
LE: loop exit
PB: predicated region body
PF: predicated region fallthrough
CT: control target
= control target key end

     0   :  { %s1723_s0 = inlined_call_operand.vmem [shape: f32[16,32], index: 0, kind: input, shape index: {}]   ;;  %s1724_s1 = inlined_call_operand.hbm [shape: f32[1,32], index: 1, kind: input, shape index: {}]   ;;  %s1725_s2 = inlined_call_operand.vmem [shape: f32[1,32], index: 2, kind: input, shape index: {}]   ;;  %s1726_s3 = inlined_call_operand.vmem [shape: bf16[32,32], index: 3, kind: input, shape index: {}]   ;;  %s1727_s4 = inlined_call_operand.vmem [shape: f32[1,32], index: 4, kind: input, shape index: {}]   ;;  %s1728_s5 = inlined_call_operand.vmem [shape: bf16[32,32], index: 5, kind: input, shape index: {}]   ;;  %s1729_s6 = inlined_call_operand.vmem [shape: f32[1,32], index: 6, kind: input, shape index: {}]   ;;  %s1730_s7 = inlined_call_operand.hbm [shape: bf16[32,32], index: 7, kind: input, shape index: {}]   ;;  %s1731_s8 = inlined_call_operand.vmem [shape: f32[1,32], index: 8, kind: input, shape index: {}]   ;;  %s1732_s9 = inlined_call_operand.hbm [shape: bf16[32,32], index: 9, kind: input, shape index: {}]   ;;  %s1733_s10 = inlined_call_operand.vmem [shape: f32[1,32], index: 10, kind: input, shape index: {}]   ;;  %s1734_s11 = inlined_call_operand.vmem [shape: f32[1,32], index: 11, kind: input, shape index: {}]   ;;  %s1735_s12 = inlined_call_operand.vmem [shape: f32[1,32], index: 12, kind: input, shape index: {}]   ;;  %s1736_s13 = inlined_call_operand.hbm [shape: bf16[32,64], index: 13, kind: input, shape index: {}]   ;;  %s1737_s14 = inlined_call_operand.vmem [shape: f32[1,64], index: 14, kind: input, shape index: {}]   ;;  %s1738_s15 = inlined_call_operand.vmem [shape: bf16[64,32], index: 15, kind: input, shape index: {}]   ;;  %s1739_s16 = inlined_call_operand.vmem [shape: f32[1,32], index: 16, kind: input, shape index: {}]   ;;  %s1740_s17 = inlined_call_operand.hbm [shape: f32[16,32], index: 17, kind: output, shape index: {}]  }
   0x1   :  { %1742 = sst [smem:[#allocation18_spill]] %s1723_s0 }
   0x2   :  { %1743 = sst [smem:[#allocation19_spill]] %s1724_s1 }
   0x3   :  { %1744 = sst [smem:[#allocation20_spill]] %s1740_s17 }
   0x4   :  { %22 = vsyncpa [#allocation6], 0 }
   0x5   :  { %23 = vsyncpa [#allocation9], 0 }
   0x6   :  { %24 = vsyncpa [#allocation12], 0  ;;  %s53_s26 = sshll.u32 %s1730_s7, 4  ;;  %s54_s26 = int_to_ptr.hbm [resolvable:$true] %s53_s26 }
   0x7   :  { %25 = vsyncpa [#allocation7], 0  ;;  %s1394_s27 = smov [#allocation8]   ;;  %s1745_s30 = sld [smem:[#allocation19_spill]] }
   0x8   :  { %s55_s28 = sshll.u32 %s1394_s27, 4  ;;  %s1395_s19 = smov 64   ;;  %s56_s28 = int_to_ptr.vmem [resolvable:$true] %s55_s28 }
   0x9   :  { %s1396_s1 = smov 4   ;;  %s1397_s20 = smov [#allocation5]  }
   0xa   :  { %61 = dma.hbm_to_vmem [thread:$0]  %s54_s26, 256, %s56_s28, [#allocation9], %s1395_s19, %s1395_s19, %s1396_s1  }
   0xb   :  { %s35_s21 = sshll.u32 %s1397_s20, 4  ;;  %s68_s24 = sshll.u32 %s1732_s9, 4  ;;  %s36_s21 = int_to_ptr.vmem [resolvable:$true] %s35_s21  ;;  %s69_s24 = int_to_ptr.hbm [resolvable:$true] %s68_s24 }
   0xc   :  { %s87_s27 = sshll.u32 %s1736_s13, 4  ;;  %s1398_s17 = smov [#allocation10]   ;;  %s88_s27 = int_to_ptr.hbm [resolvable:$true] %s87_s27 }
   0xd   :  { %s33_s18 = sshll.u32 %s1745_s30, 4  ;;  %s70_s29 = sshll.u32 %s1398_s17, 4  ;;  %s34_s18 = int_to_ptr.hbm [resolvable:$true] %s33_s18  ;;  %s71_s29 = int_to_ptr.vmem [resolvable:$true] %s70_s29 }
   0xe   :  { %38 = dma.hbm_to_vmem [thread:$0]  %s34_s18, 16, %s36_s21, [#allocation6]  }
   0xf   :  { %76 = dma.hbm_to_vmem [thread:$0]  %s69_s24, 256, %s71_s29, [#allocation9], %s1395_s19, %s1395_s19, %s1396_s1  }
  0x10   :  { %s1399_s26 = smov [#allocation11]  }
  0x11   :  { %s89_s28 = sshll.u32 %s1399_s26, 4  ;;  %s90_s28 = int_to_ptr.vmem [resolvable:$true] %s89_s28 }
  0x12   :  { %95 = dma.hbm_to_vmem [thread:$0]  %s88_s27, 256, %s90_s28, [#allocation12], %s1395_s19, %s1395_s19, %s1396_s1  }
  0x13   :  { %1386 = dma.done.wait [#allocation6], 16  }
  0x14   :  { %1387 = vsyncadd [#allocation6], 4294967280 }
  0x15   :  { %1388 = dma.done.wait [#allocation9], 512  }
  0x16   :  { %1389 = vsyncadd [#allocation9], 4294966784 }
  0x17   :  { %1390 = dma.done.wait [#allocation12], 256  }
  0x18   :  { %1391 = vsyncadd [#allocation12], 4294967040  ;;  %vm127_vm0 = vcmask 261120   ;;  %s1746_s30 = sld [smem:[#allocation18_spill]]  ;;  %v1400_v4 = vmov 32.0   ;;  %v1175_v21 = vld [vmem:[%s1726_s3 + $0x8] sm:$0xff] }
  0x19   :  { %1216 = vrcp.f32 %v1400_v4  ;;  %v1177_v22 = vld [vmem:[%s1728_s5 + $0x8] sm:$0xff]  ;;  %v1179_v23 = vld [vmem:[#allocation8 + $0x8] sm:$0xff]  ;;  %219 = vmatpush.bf16.msra.mxu0 %v1175_v21  ;;  %v1174_v25 = vld [vmem:[%s1726_s3] sm:$0xff]  ;;  %vm303_vm8 = vcmask 64512   ;;  %vm338_vm9 = vcmask 1043456   ;;  %s1404_s28 = smov 8  }
  0x1a   :  { %253 = vmatpush.bf16.msra.mxu1 %v1177_v22  ;;  %v1176_v26 = vld [vmem:[%s1728_s5] sm:$0xff]  ;;  %287 = vmatpush.bf16.msra.mxu2 %v1179_v23  ;;  %v1178_v28 = vld [vmem:[#allocation8] sm:$0xff]  ;;  %v1206_v46 = vld [vmem:[#allocation5] ss:$0 sm:$0xff]  ;;  %s1405_s9 = smov 16   ;;  %s1406_s0 = smov 24  }
  0x1b   :  { %v1207_v51 = vld [vmem:[%s1725_s2] ss:$0 sm:$0xff]  ;;  %vm545_vm10 = vcmask 130048   ;;  %vm547_vm11 = vcmask 195584   ;;  %s1409_s7 = smov [#allocation13]   ;;  %s1747_s2 = sld [smem:[#allocation20_spill]] }
  0x1c   :  { %v1208_v56 = vld [vmem:[%s1727_s4] ss:$0 sm:$0xff]  ;;  %s1401_s4 = smov 104   ;;  %s1075_s25 = sshll.u32 %s1409_s7, 4  ;;  %s1076_s25 = int_to_ptr.vmem [resolvable:$true] %s1075_s25 }
  0x1d   :  { %220 = vmatpush.bf16.msra.mxu0 %v1174_v25  ;;  %v1209_v57 = vld [vmem:[%s1729_s6] ss:$0 sm:$0xff]  ;;  %s1402_s6 = smov 112  }
  0x1e   :  { %v1516_v0 = vld [vmem:[%s1746_s30] sm:$0xff]  ;;  %v1523_v2 = vld [vmem:[%s1746_s30 + $0x8] sm:$0xff]  ;;  %254 = vmatpush.bf16.msra.mxu1 %v1176_v26  ;;  %288 = vmatpush.bf16.msra.mxu2 %v1178_v28 }
  0x1f   :  { %v128_v1 = vsel %vm127_vm0, %v1516_v0, 0.0  ;;  %v131_v3 = vsel %vm127_vm0, %v1523_v2, 0.0  ;;  %v1217_v5 = vpop.eup %1216 }
  0x20   :  { %129 = vadd.xlane.f32.xlu0 %v128_v1  ;;  %v135_v6 = vmul.f32 32.0, %v1217_v5  ;;  %vm139_vm1 = vweird.f32 %v1217_v5  ;;  %v1564_v1 = vld [vmem:[%s1731_s8] ss:$0 sm:$0xff]  ;;  %s1403_s8 = smov 120  }
  0x21   :  { %s1077_s26 = sshll.u32 %s1747_s2, 4  ;;  %s1078_s26 = int_to_ptr.hbm [resolvable:$true] %s1077_s26 }
  0x22   :  { %v136_v7 = vsub.f32 1.0, %v135_v6 }
  0x24   :  { %v137_v8 = vmul.f32 %v1217_v5, %v136_v7 }
  0x26   :  { %v138_v9 = vadd.f32 %v1217_v5, %v137_v8 }
  0x28   :  { %132 = vadd.xlane.f32.xlu0 %v131_v3  ;;  %v1527_v10 = vsel %vm139_vm1, %v1217_v5, %v138_v9  ;;  %vm895_vm1 = vcmask 257024  }
  0x93   :  { %v130_v11 = vpop.xlane.xlu0 %129 }
  0x94   :  { %v141_v12 = vmul.f32 %v1527_v10, %v130_v11 }
  0x96   :  { %v143_v13 = vsub.f32 %v1516_v0, %v141_v12 }
  0x98   :  { %v145_v14 = vmul.f32 %v143_v13, %v143_v13 }
  0x9a   :  { %v147_v15 = vsel %vm127_vm0, %v145_v14, 0.0 }
  0x9b   :  { %148 = vadd.xlane.f32.xlu1 %v147_v15  ;;  %v133_v16 = vpop.xlane.xlu0 %132 }
  0x9c   :  { %v142_v17 = vmul.f32 %v1527_v10, %v133_v16 }
  0x9e   :  { %v144_v18 = vsub.f32 %v1523_v2, %v142_v17 }
  0xa0   :  { %v146_v19 = vmul.f32 %v144_v18, %v144_v18 }
  0xa2   :  { %v150_v20 = vsel %vm127_vm0, %v146_v19, 0.0 }
  0xa3   :  { %151 = vadd.xlane.f32.xlu1 %v150_v20 }
 0x10e   :  { %v149_v24 = vpop.xlane.xlu1 %148 }
 0x10f   :  { %v153_v27 = vmul.f32 %v149_v24, %v1527_v10 }
 0x111   :  { %v155_v29 = vadd.f32 1e-05, %v153_v27 }
 0x113   :  { %1218 = vrsqrt.f32 %v155_v29  ;;  %vm163_vm3 = vweird.f32 %v155_v29 }
 0x116   :  { %v152_v30 = vpop.xlane.xlu1 %151 }
 0x117   :  { %v154_v31 = vmul.f32 %v152_v30, %v1527_v10 }
 0x119   :  { %v1219_v32 = vpop.eup %1218  ;;  %v156_v33 = vadd.f32 1e-05, %v154_v31 }
 0x11a   :  { %v158_v34 = vmul.f32 %v1219_v32, %v155_v29  ;;  %vm164_vm2 = vweird.f32 %v1219_v32 }
 0x11b   :  { %1220 = vrsqrt.f32 %v156_v33  ;;  %vm165_vm4 = vmor %vm163_vm3, %vm164_vm2  ;;  %vm173_vm6 = vweird.f32 %v156_v33 }
 0x11c   :  { %v159_v35 = vmul.f32 %v1219_v32, %v158_v34 }
 0x11e   :  { %v160_v36 = vmul.f32 0.5, %v159_v35 }
 0x120   :  { %v161_v37 = vsub.f32 1.5, %v160_v36 }
 0x121   :  { %v1221_v38 = vpop.eup %1220 }
 0x122   :  { %v162_v39 = vmul.f32 %v1219_v32, %v161_v37  ;;  %v168_v40 = vmul.f32 %v1221_v38, %v156_v33  ;;  %vm174_vm5 = vweird.f32 %v1221_v38 }
 0x123   :  { %vm175_vm7 = vmor %vm173_vm6, %vm174_vm5  ;;  %vm1032_vm6 = vcmask 523264  }
 0x124   :  { %v169_v41 = vmul.f32 %v1221_v38, %v168_v40  ;;  %v166_v42 = vsel %vm165_vm4, %v1219_v32, %v162_v39 }
 0x125   :  { %v177_v45 = vmul.f32 %v166_v42, %v143_v13 }
 0x126   :  { %v170_v43 = vmul.f32 0.5, %v169_v41 }
 0x127   :  { %v182_v50 = vmul.f32 %v1206_v46, %v177_v45 }
 0x128   :  { %v171_v44 = vsub.f32 1.5, %v170_v43 }
 0x129   :  { %v187_v53 = vadd.f32 %v1207_v51, %v182_v50 }
 0x12a   :  { %v172_v47 = vmul.f32 %v1221_v38, %v171_v44 }
 0x12c   :  { %v176_v48 = vsel %vm175_vm7, %v1221_v38, %v172_v47 }
 0x12d   :  { %v178_v49 = vmul.f32 %v176_v48, %v144_v18 }
 0x12f   :  { %v183_v52 = vmul.f32 %v1206_v46, %v178_v49 }
 0x131   :  { %v188_v54 = vadd.f32 %v1207_v51, %v183_v52 }
 0x133   :  { %v189_v55 = vpack.c.bf16 %v188_v54, %v187_v53 }
 0x135   :  { %1100 = vmatmul.msk.bf16.vlgmr.msra.gmra.mxu0 %vm127_vm0, %v189_v55  ;;  %1109 = vmatmul.msk.bf16.vlgmr.msra.gmra.mxu1 %vm127_vm0, %v189_v55 }
 0x136   :  { %1118 = vmatmul.msk.bf16.vlgmr.msra.gmra.mxu2 %vm127_vm0, %v189_v55 }
 0x1b2   :  { %v222_v58 = vpop.f32.mrf.mxu0  ;;  %v256_v59 = vpop.f32.mrf.mxu1 }
 0x1b3   :  { %v223_v60 = vadd.f32 %v1208_v56, %v222_v58  ;;  %v257_v61 = vadd.f32 %v1209_v57, %v256_v59 }
 0x1b5   :  { %v299_v62 = vpack.c.bf16 %v257_v61, %v257_v61  ;;  %v295_v63 = vmul.f32 0.35355338, %v223_v60 }
 0x1b7   :  { %v361_v3 = vunpack.c.l.b16 %v299_v62  ;;  %v308_v4 = vsel %vm303_vm8, %v299_v62, 0  ;;  %v297_v7 = vpack.c.bf16 %v295_v63, %v295_v63 }
 0x1b8   :  { %317 = vmatpush.bf16.xpose.msra.mxu3 %v308_v4 }
 0x1b9   :  { %v362_v5 = vpack.c.b16 %v361_v3, %v361_v3  ;;  %v290_v6 = vpop.f32.mrf.mxu2  ;;  %v356_v17 = vunpack.c.l.b16 %v297_v7 }
 0x1ba   :  { %v291_v8 = vadd.f32 %v1564_v1, %v290_v6  ;;  %v224_v9 = vpop.f32.mrf.mxu0  ;;  %v258_v11 = vpop.f32.mrf.mxu1 }
 0x1bb   :  { %v225_v12 = vadd.f32 %v1208_v56, %v224_v9  ;;  %v259_v13 = vadd.f32 %v1209_v57, %v258_v11  ;;  %478 = vrot.lane.b32.xlu1 %v362_v5, %s1401_s4  ;;  %422 = vrot.lane.b32.xlu0 %v362_v5, %s1402_s6  ;;  %v357_v23 = vpack.c.b16 %v356_v17, %v356_v17 }
 0x1bc   :  { %v1570_v14 = vpack.c.bf16 %v291_v8, %v291_v8  ;;  %363 = vrot.lane.b32.xlu2 %v362_v5, %s1403_s8 }
 0x1bd   :  { %v296_v15 = vmul.f32 0.35355338, %v225_v12  ;;  %v300_v16 = vpack.c.bf16 %v259_v13, %v259_v13 }
 0x1be   :  { %v340_v18 = vsel %vm338_vm9, %v1570_v14, 0  ;;  %v397_v6 = vunpack.c.l.b16 %v1570_v14 }
 0x1bf   :  { %v298_v19 = vpack.c.bf16 %v296_v15, %v296_v15  ;;  %v606_v20 = vunpack.c.l.b16 %v300_v16  ;;  %349 = vmatpush.bf16.msrb.mxu0 %v340_v18  ;;  %1119 = vmatmul.msk.bf16.vlgmr.msra.gmra.mxu3 %vm303_vm8, %v297_v7  ;;  %v554_v34 = vsel %vm303_vm8, %v300_v16, 0 }
 0x1c0   :  { %v398_v8 = vpack.c.b16 %v397_v6, %v397_v6 }
 0x1c1   :  { %v601_v21 = vunpack.c.l.b16 %v298_v19  ;;  %v607_v22 = vpack.c.b16 %v606_v20, %v606_v20 }
 0x1c3   :  { %723 = vrot.lane.b32.xlu1 %v607_v22, %s1401_s4  ;;  %v602_v24 = vpack.c.b16 %v601_v21, %v601_v21 }
 0x1c4   :  { %358 = vrot.lane.b32.xlu2 %v357_v23, %s1403_s8 }
 0x1c5   :  { %603 = vrot.lane.b32.xlu0 %v602_v24, %s1403_s8 }
 0x1cc   :  { %420 = vrot.lane.b32.xlu2 %v357_v23, %s1402_s6 }
 0x1cd   :  { %665 = vrot.lane.b32.xlu0 %v602_v24, %s1402_s6 }
 0x1d4   :  { %476 = vrot.lane.b32.xlu2 %v357_v23, %s1401_s4 }
 0x1dc   :  { %608 = vrot.lane.b32.xlu2 %v607_v22, %s1403_s8 }
 0x1e4   :  { %667 = vrot.lane.b32.xlu2 %v607_v22, %s1402_s6 }
 0x1ec   :  { %721 = vrot.lane.b32.xlu2 %v602_v24, %s1401_s4 }
 0x216   :  { %v364_v25 = vpop.permute.xlu2 %363 }
 0x217   :  { %v369_v26 = vsel %vm303_vm8, %v364_v25, 0 }
 0x218   :  { %378 = vmatpush.bf16.xpose.msrb.mxu1 %v369_v26 }
 0x21e   :  { %v359_v27 = vpop.permute.xlu2 %358 }
 0x21f   :  { %1121 = vmatmul.msk.bf16.vlgmr.msrb.gmra.mxu1 %vm303_vm8, %v359_v27 }
 0x226   :  { %v421_v28 = vpop.permute.xlu2 %420 }
 0x22d   :  { %v479_v29 = vpop.permute.xlu1 %478  ;;  %v423_v30 = vpop.permute.xlu0 %422 }
 0x22e   :  { %v484_v31 = vsel %vm303_vm8, %v479_v29, 0  ;;  %v477_v32 = vpop.permute.xlu2 %476  ;;  %v428_v33 = vsel %vm303_vm8, %v423_v30, 0 }
 0x22f   :  { %437 = vmatpush.bf16.xpose.msrb.mxu3 %v428_v33  ;;  %493 = vmatpush.bf16.xpose.msra.mxu1 %v484_v31 }
 0x235   :  { %v724_v35 = vpop.permute.xlu1 %723 }
 0x236   :  { %v729_v36 = vsel %vm303_vm8, %v724_v35, 0  ;;  %v609_v37 = vpop.permute.xlu2 %608  ;;  %1123 = vmatmul.msk.bf16.vlgmr.msrb.gmra.mxu3 %vm303_vm8, %v421_v28  ;;  %1125 = vmatmul.msk.bf16.vlgmr.msra.gmra.mxu1 %vm303_vm8, %v477_v32 }
 0x237   :  { %563 = vmatpush.bf16.xpose.msra.mxu3 %v554_v34  ;;  %v614_v38 = vsel %vm303_vm8, %v609_v37, 0  ;;  %v604_v43 = vpop.permute.xlu0 %603 }
 0x238   :  { %623 = vmatpush.bf16.xpose.msrb.mxu1 %v614_v38 }
 0x23e   :  { %v668_v39 = vpop.permute.xlu2 %667 }
 0x23f   :  { %v673_v40 = vsel %vm303_vm8, %v668_v39, 0  ;;  %v666_v45 = vpop.permute.xlu0 %665 }
 0x240   :  { %738 = vmatpush.bf16.xpose.msra.mxu1 %v729_v36  ;;  %682 = vmatpush.bf16.xpose.msrb.mxu3 %v673_v40 }
 0x242   :  { %v319_v41 = vpop.f32.mrf.mxu3 }
 0x243   :  { %v323_v42 = vsel %vm303_vm8, %v319_v41, -inf }
 0x244   :  { %324 = vmax.xlane.f32.xlu0 %v323_v42 }
 0x246   :  { %1127 = vmatmul.msk.bf16.vlgmr.msra.gmra.mxu3 %vm303_vm8, %v298_v19  ;;  %1129 = vmatmul.msk.bf16.vlgmr.msrb.gmra.mxu1 %vm303_vm8, %v604_v43  ;;  %v722_v46 = vpop.permute.xlu2 %721 }
 0x24a   :  { %v321_v44 = vpop.f32.mrf.mxu3 }
 0x256   :  { %1131 = vmatmul.msk.bf16.vlgmr.msrb.gmra.mxu3 %vm303_vm8, %v666_v45  ;;  %1133 = vmatmul.msk.bf16.vlgmr.msra.gmra.mxu1 %vm303_vm8, %v722_v46 }
 0x29c   :  { %v380_v47 = vpop.f32.mrf.mxu1 }
 0x29d   :  { %v384_v48 = vsel %vm303_vm8, %v380_v47, -inf }
 0x29e   :  { %385 = vmax.xlane.f32.xlu1 %v384_v48 }
 0x2a4   :  { %v382_v49 = vpop.f32.mrf.mxu1 }
 0x2b3   :  { %v495_v50 = vpop.f32.mrf.mxu1 }
 0x2b4   :  { %v499_v51 = vsel %vm303_vm8, %v495_v50, -inf }
 0x2b5   :  { %500 = vmax.xlane.f32.xlu2 %v499_v51 }
 0x2b7   :  { %v325_v52 = vpop.xlane.xlu0 %324 }
 0x2b8   :  { %v326_v53 = vsub.f32 %v319_v41, %v325_v52  ;;  %v292_v41 = vpop.f32.mrf.mxu2 }
 0x2b9   :  { %v439_v54 = vpop.f32.mrf.mxu3  ;;  %v293_v43 = vadd.f32 %v1564_v1, %v292_v41 }
 0x2ba   :  { %v327_v55 = vmul.f32 1.442695, %v326_v53  ;;  %v443_v56 = vsel %vm303_vm8, %v439_v54, -inf }
 0x2bb   :  { %v497_v57 = vpop.f32.mrf.mxu1  ;;  %444 = vmax.xlane.f32.xlu1 %v443_v56  ;;  %v302_v45 = vpack.c.bf16 %v293_v43, %v293_v43 }
 0x2bc   :  { %1222 = vpow2.f32 %v327_v55 }
 0x2bd   :  { %v642_v49 = vunpack.c.l.b16 %v302_v45 }
 0x2bf   :  { %v643_v1 = vpack.c.b16 %v642_v49, %v642_v49 }
 0x2c1   :  { %v441_v58 = vpop.f32.mrf.mxu3 }
 0x2c2   :  { %v1223_v59 = vpop.eup %1222 }
 0x2c3   :  { %v625_v60 = vpop.f32.mrf.mxu1  ;;  %v329_v61 = vsel %vm303_vm8, %v1223_v59, 0.0 }
 0x2c4   :  { %330 = vadd.xlane.f32.xlu1 %v329_v61  ;;  %v629_v62 = vsel %vm303_vm8, %v625_v60, -inf }
 0x2c5   :  { %630 = vmax.xlane.f32.xlu0 %v629_v62 }
 0x2c9   :  { %v565_v63 = vpop.f32.mrf.mxu3 }
 0x2ca   :  { %v569_v3 = vsel %vm303_vm8, %v565_v63, -inf }
 0x2cb   :  { %v627_v4 = vpop.f32.mrf.mxu1  ;;  %570 = vmax.xlane.f32.xlu2 %v569_v3 }
 0x2d1   :  { %v567_v5 = vpop.f32.mrf.mxu3 }
 0x2d3   :  { %v1607_v7 = vpop.f32.mrf.mxu1 }
 0x2d4   :  { %v744_v15 = vsel %vm303_vm8, %v1607_v7, -inf }
 0x2d9   :  { %399 = vrot.lane.b32.xlu0 %v398_v8, %s1403_s8  ;;  %v684_v9 = vpop.f32.mrf.mxu3 }
 0x2da   :  { %v688_v11 = vsel %vm303_vm8, %v684_v9, -inf }
 0x2db   :  { %v742_v12 = vpop.f32.mrf.mxu1  ;;  %689 = vmax.xlane.f32.xlu2 %v688_v11 }
 0x2dd   :  { %455 = vrot.lane.b32.xlu1 %v398_v8, %s1402_s6 }
 0x2e1   :  { %v686_v13 = vpop.f32.mrf.mxu3 }
 0x2f3   :  { %511 = vrot.lane.b32.xlu2 %v398_v8, %s1401_s4 }
 0x307   :  { %745 = vmax.xlane.f32.xlu1 %v744_v15 }
 0x311   :  { %v386_v14 = vpop.xlane.xlu1 %385 }
 0x312   :  { %v387_v16 = vsub.f32 %v380_v47, %v386_v14 }
 0x314   :  { %v388_v17 = vmul.f32 1.442695, %v387_v16 }
 0x316   :  { %1224 = vpow2.f32 %v388_v17 }
 0x31c   :  { %v1615_v18 = vpop.eup %1224 }
 0x31d   :  { %v390_v19 = vsel %vm303_vm8, %v1615_v18, 0.0 }
 0x31e   :  { %391 = vadd.xlane.f32.xlu0 %v390_v19 }
 0x328   :  { %v501_v20 = vpop.xlane.xlu2 %500 }
 0x329   :  { %v502_v21 = vsub.f32 %v495_v50, %v501_v20 }
 0x32b   :  { %v503_v22 = vmul.f32 1.442695, %v502_v21 }
 0x32d   :  { %1226 = vpow2.f32 %v503_v22 }
 0x32e   :  { %v445_v23 = vpop.xlane.xlu1 %444 }
 0x32f   :  { %v446_v24 = vsub.f32 %v439_v54, %v445_v23  ;;  %v585_v54 = vsel %vm338_vm9, %v302_v45, 0 }
 0x331   :  { %v447_v25 = vmul.f32 1.442695, %v446_v24 }
 0x333   :  { %v1619_v26 = vpop.eup %1226  ;;  %1228 = vpow2.f32 %v447_v25 }
 0x334   :  { %v505_v27 = vsel %vm303_vm8, %v1619_v26, 0.0 }
 0x335   :  { %506 = vadd.xlane.f32.xlu2 %v505_v27 }
 0x337   :  { %v331_v28 = vpop.xlane.xlu1 %330 }
 0x338   :  { %1230 = vrcp.f32 %v331_v28  ;;  %v631_v29 = vpop.xlane.xlu0 %630 }
 0x339   :  { %v1623_v30 = vpop.eup %1228  ;;  %v632_v31 = vsub.f32 %v625_v60, %v631_v29 }
 0x33a   :  { %v449_v32 = vsel %vm303_vm8, %v1623_v30, 0.0 }
 0x33b   :  { %v633_v33 = vmul.f32 1.442695, %v632_v31  ;;  %450 = vadd.xlane.f32.xlu1 %v449_v32 }
 0x33d   :  { %1232 = vpow2.f32 %v633_v33 }
 0x33e   :  { %v1231_v34 = vpop.eup %1230  ;;  %v571_v35 = vpop.xlane.xlu2 %570 }
 0x33f   :  { %v333_v36 = vmul.f32 %v1231_v34, %v1223_v59  ;;  %v572_v37 = vsub.f32 %v565_v63, %v571_v35 }
 0x341   :  { %v573_v38 = vmul.f32 1.442695, %v572_v37  ;;  %v334_v39 = vpack.c.bf16 %v333_v36, %v333_v36 }
 0x343   :  { %v1627_v40 = vpop.eup %1232  ;;  %1234 = vpow2.f32 %v573_v38  ;;  %1120 = vmatmul.msk.bf16.vlgmr.msrb.gmra.mxu0 %vm303_vm8, %v334_v39 }
 0x344   :  { %v635_v42 = vsel %vm303_vm8, %v1627_v40, 0.0 }
 0x345   :  { %636 = vadd.xlane.f32.xlu0 %v635_v42 }
 0x349   :  { %v1235_v44 = vpop.eup %1234 }
 0x34a   :  { %v575_v46 = vsel %vm303_vm8, %v1235_v44, 0.0 }
 0x34b   :  { %v400_v47 = vpop.permute.xlu0 %399  ;;  %576 = vadd.xlane.f32.xlu2 %v575_v46 }
 0x34c   :  { %v405_v48 = vsel %vm338_vm9, %v400_v47, 0 }
 0x34d   :  { %414 = vmatpush.bf16.msrb.mxu2 %v405_v48 }
 0x34e   :  { %v690_v50 = vpop.xlane.xlu2 %689 }
 0x34f   :  { %v691_v51 = vsub.f32 %v684_v9, %v690_v50  ;;  %v456_v52 = vpop.permute.xlu1 %455 }
 0x350   :  { %v461_v53 = vsel %vm338_vm9, %v456_v52, 0 }
 0x351   :  { %v692_v55 = vmul.f32 1.442695, %v691_v51  ;;  %470 = vmatpush.bf16.msra.mxu0 %v461_v53 }
 0x353   :  { %1236 = vpow2.f32 %v692_v55 }
 0x354   :  { %644 = vrot.lane.b32.xlu1 %v643_v1, %s1403_s8 }
 0x355   :  { %594 = vmatpush.bf16.msrb.mxu0 %v585_v54 }
 0x356   :  { %v512_v56 = vpop.permute.xlu2 %511 }
 0x357   :  { %v517_v57 = vsel %vm338_vm9, %v512_v56, 0 }
 0x358   :  { %526 = vmatpush.bf16.msra.mxu2 %v517_v57 }
 0x359   :  { %v1237_v58 = vpop.eup %1236 }
 0x35a   :  { %v694_v59 = vsel %vm303_vm8, %v1237_v58, 0.0 }
 0x35b   :  { %695 = vadd.xlane.f32.xlu0 %v694_v59 }
 0x363   :  { %700 = vrot.lane.b32.xlu2 %v643_v1, %s1402_s6 }
 0x36f   :  { %756 = vrot.lane.b32.xlu0 %v643_v1, %s1401_s4 }
 0x37a   :  { %v746_v60 = vpop.xlane.xlu1 %745 }
 0x37b   :  { %v747_v61 = vsub.f32 %v1607_v7, %v746_v60 }
 0x37d   :  { %v748_v62 = vmul.f32 1.442695, %v747_v61 }
 0x37f   :  { %1238 = vpow2.f32 %v748_v62  ;;  %v1180_v62 = vld [vmem:[#allocation10] sm:$0xff] }
 0x385   :  { %v1239_v63 = vpop.eup %1238 }
 0x386   :  { %v750_v3 = vsel %vm303_vm8, %v1239_v63, 0.0 }
 0x387   :  { %751 = vadd.xlane.f32.xlu1 %v750_v3  ;;  %v1407_v3 = vmov 0.0  }
 0x391   :  { %v392_v4 = vpop.xlane.xlu0 %391 }
 0x392   :  { %1240 = vrcp.f32 %v392_v4 }
 0x398   :  { %v1241_v5 = vpop.eup %1240 }
 0x399   :  { %v394_v6 = vmul.f32 %v1241_v5, %v1615_v18 }
 0x39b   :  { %v395_v8 = vpack.c.bf16 %v394_v6, %v394_v6 }
 0x39d   :  { %1122 = vmatmul.msk.bf16.vlgmr.msrb.gmra.mxu2 %vm303_vm8, %v395_v8 }
 0x3a8   :  { %v507_v9 = vpop.xlane.xlu2 %506 }
 0x3a9   :  { %1242 = vrcp.f32 %v507_v9 }
 0x3ae   :  { %v451_v11 = vpop.xlane.xlu1 %450 }
 0x3af   :  { %v1243_v12 = vpop.eup %1242  ;;  %1244 = vrcp.f32 %v451_v11 }
 0x3b0   :  { %v509_v7 = vmul.f32 %v1243_v12, %v1619_v26 }
 0x3b2   :  { %v510_v13 = vpack.c.bf16 %v509_v7, %v509_v7  ;;  %v1211_v7 = vld [vmem:[%s1733_s10] ss:$0 sm:$0xff] }
 0x3b4   :  { %1126 = vmatmul.msk.bf16.vlgmr.msra.gmra.mxu2 %vm303_vm8, %v510_v13 }
 0x3b5   :  { %v1245_v15 = vpop.eup %1244 }
 0x3b6   :  { %v453_v14 = vmul.f32 %v1245_v15, %v1623_v30 }
 0x3b8   :  { %v454_v16 = vpack.c.bf16 %v453_v14, %v453_v14  ;;  %v637_v17 = vpop.xlane.xlu0 %636 }
 0x3b9   :  { %1246 = vrcp.f32 %v637_v17 }
 0x3ba   :  { %1124 = vmatmul.msk.bf16.vlgmr.msra.gmra.mxu0 %vm303_vm8, %v454_v16 }
 0x3be   :  { %v577_v18 = vpop.xlane.xlu2 %576 }
 0x3bf   :  { %1248 = vrcp.f32 %v577_v18  ;;  %v1247_v20 = vpop.eup %1246 }
 0x3c0   :  { %v351_v19 = vpop.f32.mrf.mxu0  ;;  %v639_v22 = vmul.f32 %v1247_v20, %v1627_v40 }
 0x3c2   :  { %v640_v30 = vpack.c.bf16 %v639_v22, %v639_v22 }
 0x3c5   :  { %v1249_v21 = vpop.eup %1248 }
 0x3c6   :  { %v579_v23 = vmul.f32 %v1249_v21, %v1235_v44  ;;  %v645_v24 = vpop.permute.xlu1 %644  ;;  %v701_v25 = vpop.permute.xlu2 %700 }
 0x3c7   :  { %v650_v26 = vsel %vm338_vm9, %v645_v24, 0  ;;  %v706_v27 = vsel %vm338_vm9, %v701_v25, 0 }
 0x3c8   :  { %v580_v28 = vpack.c.bf16 %v579_v23, %v579_v23  ;;  %v353_v29 = vpop.f32.mrf.mxu0  ;;  %659 = vmatpush.bf16.msrb.mxu2 %v650_v26  ;;  %715 = vmatpush.bf16.msra.mxu0 %v706_v27 }
 0x3ca   :  { %1128 = vmatmul.msk.bf16.vlgmr.msrb.gmra.mxu0 %vm303_vm8, %v580_v28 }
 0x3cb   :  { %1130 = vmatmul.msk.bf16.vlgmr.msrb.gmra.mxu2 %vm303_vm8, %v640_v30 }
 0x3ce   :  { %v696_v31 = vpop.xlane.xlu0 %695 }
 0x3cf   :  { %1250 = vrcp.f32 %v696_v31 }
 0x3d5   :  { %v1251_v32 = vpop.eup %1250 }
 0x3d6   :  { %v698_v33 = vmul.f32 %v1251_v32, %v1237_v58  ;;  %v1181_v58 = vld [vmem:[#allocation10 + $0x8] sm:$0xff]  ;;  %v1184_v32 = vld [vmem:[#allocation11 + $0x8] sm:$0xff] }
 0x3d7   :  { %825 = vmatpush.bf16.msra.mxu3 %v1181_v58  ;;  %937 = vmatpush.bf16.msrb.mxu0 %v1184_v32 }
 0x3d8   :  { %v699_v34 = vpack.c.bf16 %v698_v33, %v698_v33 }
 0x3da   :  { %1132 = vmatmul.msk.bf16.vlgmr.msra.gmra.mxu0 %vm303_vm8, %v699_v34 }
 0x3db   :  { %826 = vmatpush.bf16.msra.mxu3 %v1180_v62 }
 0x3e1   :  { %v757_v35 = vpop.permute.xlu0 %756 }
 0x3e2   :  { %v762_v36 = vsel %vm338_vm9, %v757_v35, 0  ;;  %v1183_v35 = vld [vmem:[#allocation11] sm:$0xff] }
 0x3e3   :  { %771 = vmatpush.bf16.msra.mxu2 %v762_v36  ;;  %938 = vmatpush.bf16.msrb.mxu0 %v1183_v35 }
 0x3fa   :  { %v752_v37 = vpop.xlane.xlu1 %751 }
 0x3fb   :  { %1252 = vrcp.f32 %v752_v37 }
 0x401   :  { %v1253_v38 = vpop.eup %1252 }
 0x402   :  { %v754_v39 = vmul.f32 %v1253_v38, %v1239_v63 }
 0x404   :  { %v755_v40 = vpack.c.bf16 %v754_v39, %v754_v39 }
 0x406   :  { %1134 = vmatmul.msk.bf16.vlgmr.msra.gmra.mxu2 %vm303_vm8, %v755_v40 }
 0x420   :  { %v416_v41 = vpop.f32.mrf.mxu2 }
 0x421   :  { %533 = vrot.lane.b32.xlu1 %v416_v41, %s1404_s28 }
 0x428   :  { %v418_v42 = vpop.f32.mrf.mxu2 }
 0x437   :  { %v472_v43 = vpop.f32.mrf.mxu0  ;;  %v528_v44 = vpop.f32.mrf.mxu2 }
 0x438   :  { %537 = vrot.lane.b32.xlu0 %v472_v43, %s1405_s9 }
 0x43f   :  { %v474_v45 = vpop.f32.mrf.mxu0  ;;  %v530_v46 = vpop.f32.mrf.mxu2 }
 0x440   :  { %v1212_v45 = vld [vmem:[%s1734_s11] ss:$0 sm:$0xff] }
 0x447   :  { %v596_v47 = vpop.f32.mrf.mxu0 }
 0x44e   :  { %v661_v48 = vpop.f32.mrf.mxu2 }
 0x44f   :  { %778 = vrot.lane.b32.xlu0 %v661_v48, %s1404_s28  ;;  %v598_v49 = vpop.f32.mrf.mxu0 }
 0x456   :  { %v663_v50 = vpop.f32.mrf.mxu2 }
 0x457   :  { %541 = vrot.lane.b32.xlu0 %v528_v44, %s1406_s0  ;;  %v717_v51 = vpop.f32.mrf.mxu0 }
 0x458   :  { %782 = vrot.lane.b32.xlu2 %v717_v51, %s1405_s9 }
 0x45f   :  { %v719_v52 = vpop.f32.mrf.mxu0 }
 0x489   :  { %v773_v53 = vpop.f32.mrf.mxu2 }
 0x48a   :  { %786 = vrot.lane.b32.xlu2 %v773_v53, %s1406_s0 }
 0x491   :  { %v775_v54 = vpop.f32.mrf.mxu2 }
 0x493   :  { %v534_v56 = vpop.permute.xlu1 %533 }
 0x494   :  { %v544_v57 = vsel %vm303_vm8, %v351_v19, %v534_v56 }
 0x4aa   :  { %v538_v55 = vpop.permute.xlu0 %537 }
 0x4ab   :  { %v546_v59 = vsel %vm545_vm10, %v544_v57, %v538_v55 }
 0x4b2   :  { %v783_v4 = vpop.permute.xlu2 %782 }
 0x4c1   :  { %v779_v1 = vpop.permute.xlu0 %778 }
 0x4c2   :  { %v789_v5 = vsel %vm303_vm8, %v596_v47, %v779_v1  ;;  %v1213_v47 = vld [vmem:[%s1735_s12] ss:$0 sm:$0xff] }
 0x4c3   :  { %v790_v6 = vsel %vm545_vm10, %v789_v5, %v783_v4 }
 0x4c9   :  { %v542_v60 = vpop.permute.xlu0 %541 }
 0x4ca   :  { %v548_v61 = vsel %vm547_vm11, %v546_v59, %v542_v60  ;;  %v1214_v60 = vld [vmem:[%s1737_s14] ss:$0 sm:$0xff] }
 0x4cb   :  { %549 = vst.msk [vmem:[#allocation2] sm:$0xff] %vm127_vm0, %v548_v61 }
 0x4d2   :  { %v793_v63 = vld [vmem:[#allocation2] sm:$0xff] }
 0x4d3   :  { %898 = vst.msk [vmem:[#allocation2] sm:$0xff] %vm127_vm0, %v1407_v3 }
 0x4e4   :  { %v787_v8 = vpop.permute.xlu2 %786 }
 0x4e5   :  { %v791_v9 = vsel %vm547_vm11, %v790_v6, %v787_v8  ;;  %v1188_v6 = vld [vmem:[%s1738_s15 + $0x18] sm:$0xff] }
 0x4e6   :  { %792 = vst.msk [vmem:[#allocation2 + $0x8] sm:$0xff] %vm127_vm0, %v791_v9  ;;  %1040 = vmatpush.bf16.msrb.mxu1 %v1188_v6 }
 0x4ed   :  { %v794_v11 = vld [vmem:[#allocation2 + $0x8] sm:$0xff] }
 0x4ee   :  { %899 = vst.msk [vmem:[#allocation2 + $0x8] sm:$0xff] %vm127_vm0, %v1407_v3  ;;  %v795_v12 = vpack.c.bf16 %v794_v11, %v793_v63 }
 0x4f0   :  { %1143 = vmatmul.msk.bf16.vlgmr.msra.gmra.mxu3 %vm127_vm0, %v795_v12  ;;  %v1187_v12 = vld [vmem:[%s1738_s15 + $0x10] sm:$0xff] }
 0x4f1   :  { %1041 = vmatpush.bf16.msrb.mxu1 %v1187_v12 }
 0x573   :  { %v828_v13 = vpop.f32.mrf.mxu3 }
 0x574   :  { %v829_v15 = vadd.f32 %v1211_v7, %v828_v13 }
 0x576   :  { %v833_v14 = vadd.f32 %v829_v15, %v1516_v0  ;;  %v1186_v15 = vld [vmem:[%s1738_s15 + $0x8] sm:$0xff] }
 0x577   :  { %1042 = vmatpush.bf16.msrb.mxu1 %v1186_v15 }
 0x578   :  { %835 = vst.msk [vmem:[#allocation3] sm:$0xff] %vm127_vm0, %v833_v14  ;;  %v839_v16 = vsel %vm127_vm0, %v833_v14, 0.0 }
 0x579   :  { %840 = vadd.xlane.f32.xlu1 %v839_v16 }
 0x57b   :  { %v830_v17 = vpop.f32.mrf.mxu3 }
 0x57c   :  { %v831_v18 = vadd.f32 %v1211_v7, %v830_v17 }
 0x57e   :  { %v834_v19 = vadd.f32 %v831_v18, %v1523_v2 }
 0x580   :  { %836 = vst.msk [vmem:[#allocation3 + $0x8] sm:$0xff] %vm127_vm0, %v834_v19  ;;  %v842_v20 = vsel %vm127_vm0, %v834_v19, 0.0 }
 0x581   :  { %843 = vadd.xlane.f32.xlu0 %v842_v20  ;;  %v1185_v20 = vld [vmem:[%s1738_s15] sm:$0xff] }
 0x582   :  { %1043 = vmatpush.bf16.msrb.mxu1 %v1185_v20 }
 0x5ec   :  { %v841_v21 = vpop.xlane.xlu1 %840 }
 0x5ed   :  { %v845_v22 = vmul.f32 %v841_v21, %v1527_v10 }
 0x5ef   :  { %v847_v23 = vsub.f32 %v833_v14, %v845_v22 }
 0x5f1   :  { %v849_v24 = vmul.f32 %v847_v23, %v847_v23 }
 0x5f3   :  { %v851_v0 = vsel %vm127_vm0, %v849_v24, 0.0 }
 0x5f4   :  { %v844_v25 = vpop.xlane.xlu0 %843  ;;  %852 = vadd.xlane.f32.xlu2 %v851_v0 }
 0x5f5   :  { %v846_v26 = vmul.f32 %v844_v25, %v1527_v10 }
 0x5f7   :  { %v848_v27 = vsub.f32 %v834_v19, %v846_v26 }
 0x5f9   :  { %v850_v28 = vmul.f32 %v848_v27, %v848_v27 }
 0x5fb   :  { %v854_v2 = vsel %vm127_vm0, %v850_v28, 0.0 }
 0x5fc   :  { %855 = vadd.xlane.f32.xlu1 %v854_v2 }
 0x667   :  { %v853_v29 = vpop.xlane.xlu2 %852 }
 0x668   :  { %v857_v30 = vmul.f32 %v853_v29, %v1527_v10 }
 0x66a   :  { %v859_v31 = vadd.f32 1e-05, %v857_v30 }
 0x66c   :  { %1254 = vrsqrt.f32 %v859_v31  ;;  %vm867_vm13 = vweird.f32 %v859_v31 }
 0x66f   :  { %v856_v33 = vpop.xlane.xlu1 %855 }
 0x670   :  { %v858_v34 = vmul.f32 %v856_v33, %v1527_v10 }
 0x672   :  { %v1255_v36 = vpop.eup %1254  ;;  %v860_v37 = vadd.f32 1e-05, %v858_v34 }
 0x673   :  { %v862_v38 = vmul.f32 %v1255_v36, %v859_v31  ;;  %vm868_vm12 = vweird.f32 %v1255_v36 }
 0x674   :  { %1256 = vrsqrt.f32 %v860_v37  ;;  %vm869_vm14 = vmor %vm867_vm13, %vm868_vm12  ;;  %vm877_vm2 = vweird.f32 %v860_v37 }
 0x675   :  { %v863_v39 = vmul.f32 %v1255_v36, %v862_v38 }
 0x677   :  { %v864_v40 = vmul.f32 0.5, %v863_v39 }
 0x679   :  { %v865_v41 = vsub.f32 1.5, %v864_v40 }
 0x67a   :  { %v1257_v42 = vpop.eup %1256 }
 0x67b   :  { %v866_v43 = vmul.f32 %v1255_v36, %v865_v41  ;;  %v872_v44 = vmul.f32 %v1257_v42, %v860_v37  ;;  %vm878_vm15 = vweird.f32 %v1257_v42 }
 0x67c   :  { %vm879_vm3 = vmor %vm877_vm2, %vm878_vm15 }
 0x67d   :  { %v870_v10 = vsel %vm869_vm14, %v1255_v36, %v866_v43  ;;  %v873_v46 = vmul.f32 %v1257_v42, %v872_v44 }
 0x67e   :  { %v881_v48 = vmul.f32 %v870_v10, %v847_v23 }
 0x67f   :  { %v874_v49 = vmul.f32 0.5, %v873_v46 }
 0x680   :  { %v886_v50 = vmul.f32 %v1212_v45, %v881_v48 }
 0x681   :  { %v875_v51 = vsub.f32 1.5, %v874_v49 }
 0x682   :  { %v891_v52 = vadd.f32 %v1213_v47, %v886_v50 }
 0x683   :  { %v876_v53 = vmul.f32 %v1257_v42, %v875_v51 }
 0x684   :  { %v893_v54 = vpack.c.bf16 %v891_v52, %v891_v52 }
 0x685   :  { %v880_v55 = vsel %vm879_vm3, %v1257_v42, %v876_v53 }
 0x686   :  { %896 = vst.msk [vmem:[#allocation4] sm:$0xf] %vm895_vm1, %v893_v54  ;;  %v882_v1 = vmul.f32 %v880_v55, %v848_v27 }
 0x688   :  { %v887_v56 = vmul.f32 %v1212_v45, %v882_v1  ;;  %v1408_v45 = vmov -1.0  }
 0x68a   :  { %v892_v57 = vadd.f32 %v1213_v47, %v887_v56 }
 0x68c   :  { %v894_v58 = vpack.c.bf16 %v892_v57, %v892_v57  ;;  %v997_v57 = vld [vmem:[#allocation2] sm:$0xff] }
 0x68e   :  { %897 = vst.msk [vmem:[#allocation4 + $0x4] sm:$0xf] %vm895_vm1, %v894_v58 }
 0x695   :  { %v1182_v59 = vld [vmem:[#allocation4] sm:$0xff] }
 0x696   :  { %1156 = vmatmul.msk.bf16.vlgmr.msrb.gmra.mxu0 %vm127_vm0, %v1182_v59 }
 0x713   :  { %v940_v61 = vpop.f32.mrf.mxu0 }
 0x714   :  { %v1696_v62 = vadd.f32 %v1214_v60, %v940_v61  ;;  %v1215_v61 = vld [vmem:[%s1739_s16] ss:$0 sm:$0xff]  ;;  %s1410_s16 = smov 128  }
 0x716   :  { %v947_v63 = vmul.f32 0.70710677, %v1696_v62  ;;  %v945_v52 = vmul.f32 0.5, %v1696_v62 }
 0x718   :  { %v953_v3 = vand.u32 2147483647, %v947_v63  ;;  %vm949_vm4 = vcmp.ge.f32.partialorder %v947_v63, 0.0 }
 0x719   :  { %v951_v10 = vsel %vm949_vm4, 1.0, %v1408_v45 }
 0x71a   :  { %v955_v4 = vmul.f32 0.3275911, %v953_v3  ;;  %v979_v16 = vsub.f32 0.0, %v953_v3 }
 0x71b   :  { %v942_v5 = vpop.f32.mrf.mxu0 }
 0x71c   :  { %v957_v8 = vadd.f32 1.0, %v955_v4  ;;  %v943_v9 = vadd.f32 %v1214_v60, %v942_v5  ;;  %v981_v21 = vmul.f32 %v979_v16, %v953_v3  ;;  %v998_v60 = vld [vmem:[#allocation2 + $0x8] sm:$0xff]  ;;  %v1065_v5 = vld [vmem:[#allocation3] sm:$0xff] }
 0x71e   :  { %1258 = vrcp.f32 %v957_v8  ;;  %v948_v11 = vmul.f32 0.70710677, %v943_v9  ;;  %v983_v0 = vmul.f32 1.442695, %v981_v21  ;;  %v946_v53 = vmul.f32 0.5, %v943_v9 }
 0x720   :  { %v954_v7 = vand.u32 2147483647, %v948_v11  ;;  %vm950_vm5 = vcmp.ge.f32.partialorder %v948_v11, 0.0  ;;  %v1066_v11 = vld [vmem:[#allocation3 + $0x8] sm:$0xff] }
 0x721   :  { %v952_v49 = vsel %vm950_vm5, 1.0, %v1408_v45 }
 0x722   :  { %v956_v13 = vmul.f32 0.3275911, %v954_v7  ;;  %v980_v25 = vsub.f32 0.0, %v954_v7 }
 0x724   :  { %v1259_v14 = vpop.eup %1258  ;;  %v958_v17 = vadd.f32 1.0, %v956_v13  ;;  %v982_v29 = vmul.f32 %v980_v25, %v954_v7 }
 0x725   :  { %v961_v18 = vmul.f32 1.0614054, %v1259_v14 }
 0x726   :  { %1260 = vrcp.f32 %v958_v17  ;;  %v985_v34 = vmul.f32 1.442695, %v982_v29 }
 0x727   :  { %v963_v19 = vadd.f32 -1.4531521, %v961_v18  ;;  %1262 = vpow2.f32 %v983_v0 }
 0x728   :  { %1264 = vpow2.f32 %v985_v34 }
 0x729   :  { %v965_v22 = vmul.f32 %v1259_v14, %v963_v19 }
 0x72b   :  { %v967_v23 = vadd.f32 1.4214138, %v965_v22 }
 0x72c   :  { %v1261_v24 = vpop.eup %1260 }
 0x72d   :  { %v969_v26 = vmul.f32 %v1259_v14, %v967_v23  ;;  %v962_v27 = vmul.f32 1.0614054, %v1261_v24  ;;  %v1263_v37 = vpop.eup %1262 }
 0x72e   :  { %v1265_v44 = vpop.eup %1264 }
 0x72f   :  { %v971_v28 = vadd.f32 -0.28449672, %v969_v26  ;;  %v964_v2 = vadd.f32 -1.4531521, %v962_v27 }
 0x731   :  { %v973_v30 = vmul.f32 %v1259_v14, %v971_v28  ;;  %v966_v31 = vmul.f32 %v1261_v24, %v964_v2 }
 0x733   :  { %v975_v32 = vadd.f32 0.2548296, %v973_v30  ;;  %v968_v33 = vadd.f32 1.4214138, %v966_v31 }
 0x735   :  { %v977_v35 = vmul.f32 %v1259_v14, %v975_v32  ;;  %v970_v36 = vmul.f32 %v1261_v24, %v968_v33 }
 0x737   :  { %v987_v38 = vmul.f32 %v1263_v37, %v977_v35  ;;  %v972_v39 = vadd.f32 -0.28449672, %v970_v36 }
 0x739   :  { %v974_v40 = vmul.f32 %v1261_v24, %v972_v39  ;;  %v989_v41 = vsub.f32 1.0, %v987_v38 }
 0x73b   :  { %v976_v42 = vadd.f32 0.2548296, %v974_v40  ;;  %v991_v46 = vmul.f32 %v989_v41, %v951_v10 }
 0x73d   :  { %v978_v43 = vmul.f32 %v1261_v24, %v976_v42  ;;  %v993_v50 = vadd.f32 1.0, %v991_v46 }
 0x73f   :  { %v988_v47 = vmul.f32 %v1265_v44, %v978_v43  ;;  %v995_v55 = vmul.f32 %v993_v50, %v945_v52 }
 0x741   :  { %v990_v48 = vsub.f32 1.0, %v988_v47 }
 0x743   :  { %v992_v51 = vmul.f32 %v990_v48, %v952_v49 }
 0x745   :  { %v994_v54 = vadd.f32 1.0, %v992_v51 }
 0x747   :  { %v996_v1 = vmul.f32 %v994_v54, %v946_v53 }
 0x749   :  { %v999_v56 = vpack.c.bf16 %v996_v1, %v995_v55 }
 0x74b   :  { %1173 = vmatmul.msk.bf16.vlgmr.msrb.gmra.mxu1 %vm1032_vm6, %v999_v56 }
 0x7c8   :  { %v1045_v58 = vpop.f32.mrf.mxu1 }
 0x7c9   :  { %v1050_v59 = vadd.f32 %v1045_v58, %v997_v57 }
 0x7cb   :  { %1052 = vst.msk [vmem:[#allocation2] sm:$0xff] %vm127_vm0, %v1050_v59 }
 0x7d0   :  { %v1047_v63 = vpop.f32.mrf.mxu1 }
 0x7d1   :  { %v1051_v3 = vadd.f32 %v1047_v63, %v998_v60 }
 0x7d2   :  { %v1057_v62 = vld [vmem:[#allocation2] sm:$0xff] }
 0x7d3   :  { %1053 = vst.msk [vmem:[#allocation2 + $0x8] sm:$0xff] %vm127_vm0, %v1051_v3  ;;  %v1063_v4 = vadd.f32 %v1215_v61, %v1057_v62 }
 0x7d5   :  { %v1067_v6 = vadd.f32 %v1065_v5, %v1063_v4 }
 0x7d7   :  { %1069 = vst.msk [vmem:[#allocation13] sm:$0xff] %vm127_vm0, %v1067_v6 }
 0x7da   :  { %v1058_v8 = vld [vmem:[#allocation2 + $0x8] sm:$0xff] }
 0x7db   :  { %v1064_v9 = vadd.f32 %v1215_v61, %v1058_v8 }
 0x7dd   :  { %v1068_v12 = vadd.f32 %v1066_v11, %v1064_v9 }
 0x7df   :  { %1070 = vst.msk [vmem:[#allocation13 + $0x8] sm:$0xff] %vm127_vm0, %v1068_v12 }
 0x7e0   :  { %1083 = dma.vmem_to_hbm [thread:$0]  %s1076_s25, 256, %s1078_s26, [#allocation7], %s1410_s16, %s1410_s16, %s1404_s28  }
 0x7e1   :  { %1392 = dma.done.wait [#allocation7], 256  }
 0x7e2   :  { %1393 = vsyncadd [#allocation7], 4294967040 }
 0x7e3   :  { %1088 = vsyncpa [#allocation6], 1 }
 0x7e4   :  { %1089 = vsyncpa [#allocation9], 1 }
 0x7e5   :  { %1090 = vsyncpa [#allocation12], 1 }
 0x7e6   :  { %1091 = vsyncpa [#allocation7], 1 }

</bundles_post_ra>
